<compile_context>
chip_gen: v7x
topology: tpu7x:2x2x1
jax: 0.10.0
libtpu: 0.0.40
codegen_flags: <defaults>
</compile_context>

<pallas_src>
import jax
import jax.numpy as jnp
from jax.experimental import pallas as pl
from jax.experimental.pallas import tpu as pltpu

# ---- fixed dimensions implied by the module -------------------------------
FEAT_C = 1408          # EfficientNet-B2 feature channels (classifier in_features)
HIDDEN = 512           # Linear(1408, 512)
NUM_CLASSES = 1        # Linear(512, num_classes=1)
OUT_PAD = 128          # lane-dense padded output width (>= NUM_CLASSES)
BN_EPS = 1e-5


def _head_kernel(feat_ref, w1_ref, b1_ref, w2_ref, b2_ref, out_ref):
    """Fused head: global-sum-pool -> Linear(+1/HW folded) -> ReLU -> Linear(BN folded)."""
    tb = feat_ref.shape[0]
    hw = feat_ref.shape[1]

    # Global average pool: 1/HW is pre-folded into w1, so a plain sum suffices.
    # Accumulate slab-by-slab (each slab is (TB, C)) so the full (TB, HW, C)
    # tile is never materialized as a separate f32 temp; upcast happens per
    # slab, so this also supports a bf16-producing backbone for free.
    def _acc(k, acc):
        return acc + feat_ref[:, k, :].astype(jnp.float32)

    pooled = jax.lax.fori_loop(
        0, hw, _acc, jnp.zeros((tb, FEAT_C), jnp.float32), unroll=True)   # (TB, C)

    # Dropout(p=0.3) -- eval mode => identity.

    # Linear(1408, 512) with 1/HW folded into the weight.
    h = jnp.dot(pooled, w1_ref[...],
                preferred_element_type=jnp.float32) + b1_ref[...]          # (TB, 512)

    # ReLU
    h = jnp.maximum(h, 0.0)

    # BatchNorm1d(512) eval-mode affine folded into w2/b2. Dropout -- identity.

    # Linear(512, num_classes), padded to 128 output lanes (lane-dense stores).
    out = jnp.dot(h, w2_ref[...],
                  preferred_element_type=jnp.float32) + b2_ref[...]        # (TB, OUT_PAD)
    out_ref[...] = out.astype(out_ref.dtype)


def _fold_params(params, hw):
    """Fold eval-mode BN into W2/b2, fold 1/HW into W1, pad second linear to 128 lanes."""
    w1, b1, gamma, beta, run_mean, run_var, w2, b2 = params

    inv_std = jax.lax.rsqrt(run_var + BN_EPS)                # (1, HIDDEN)
    scale = gamma * inv_std                                  # (1, HIDDEN)
    shift = beta - run_mean * scale                          # (1, HIDDEN)

    # BN(h) = scale*h + shift, then @W2 + b2  ==  h @ (scale^T * W2) + (shift@W2 + b2)
    w2_f = w2 * scale.reshape(HIDDEN, 1)                     # (HIDDEN, NUM_CLASSES)
    b2_f = b2 + shift @ w2                                   # (1, NUM_CLASSES)

    # mean-pool @ W1  ==  sum-pool @ (W1 / HW)
    w1_f = w1 * (1.0 / float(hw))                            # (C, HIDDEN)

    # Pad the tiny second linear to a lane-dense 128-wide output.
    w2_p = jnp.zeros((HIDDEN, OUT_PAD), jnp.float32).at[:, :NUM_CLASSES].set(w2_f)
    b2_p = jnp.zeros((1, OUT_PAD), jnp.float32).at[:, :NUM_CLASSES].set(b2_f)
    return w1_f, b1, w2_p, b2_p


def _vmem_capacity_bytes():
    """Physical VMEM of the current chip (clamped, with a conservative fallback)."""
    try:
        cap = int(pltpu.get_tpu_info().vmem_capacity_bytes)
    except Exception:
        cap = 64 * 1024 * 1024          # v7x per-TC size: safe lower bound
    return max(32 * 1024 * 1024, min(cap, 128 * 1024 * 1024))


def _pick_batch_tile(batch, hw, itemsize, vmem_cap):
    """Largest batch tile whose double-buffered feat stream fits ~35% of VMEM."""
    feat_budget = int(0.35 * vmem_cap)
    bytes_per_row = hw * FEAT_C * itemsize
    cap_rows = feat_budget // (2 * bytes_per_row)            # 2 = double buffering
    tb = max(8, min(128, (cap_rows // 8) * 8))               # multiple of 8
    if batch <= tb:
        return batch                                         # single step, full batch
    return tb


def face_recognition_head(feat, params):
    """feat: (B, HW, C) backbone features (f32 or bf16). Returns logits (B, NUM_CLASSES) f32."""
    B, HW, C = feat.shape
    assert C == FEAT_C

    w1_f, b1, w2_p, b2_p = _fold_params(params, HW)

    vmem_cap = _vmem_capacity_bytes()
    tb = _pick_batch_tile(B, HW, feat.dtype.itemsize, vmem_cap)
    grid = (pl.cdiv(B, tb),)   # ragged tail handled by Pallas partial blocks

    # Advisory cost estimate: this kernel is dominated by the single feat read.
    cost = pl.CostEstimate(
        flops=2 * B * (HW * C + C * HIDDEN + HIDDEN * OUT_PAD),
        transcendentals=0,
        bytes_accessed=(B * HW * C * feat.dtype.itemsize
                        + C * HIDDEN * 4 + HIDDEN * OUT_PAD * 4
                        + B * OUT_PAD * 4),
    )

    in_specs = [
        # feat tile advances along the batch grid axis (auto double-buffered DMA),
        # streamed in its NATIVE dtype (no standalone cast / pad passes over HBM).
        pl.BlockSpec((tb, HW, C), lambda b: (b, 0, 0)),
        # Weights: constant index_map -> fetched once, stay VMEM-resident.
        pl.BlockSpec((C, HIDDEN), lambda b: (0, 0)),
        pl.BlockSpec((1, HIDDEN), lambda b: (0, 0)),
        pl.BlockSpec((HIDDEN, OUT_PAD), lambda b: (0, 0)),
        pl.BlockSpec((1, OUT_PAD), lambda b: (0, 0)),
    ]
    out_specs = pl.BlockSpec((tb, OUT_PAD), lambda b: (b, 0))

    out_padded = pl.pallas_call(
        _head_kernel,
        out_shape=jax.ShapeDtypeStruct((B, OUT_PAD), jnp.float32),
        grid=grid,
        in_specs=in_specs,
        out_specs=out_specs,
        compiler_params=pltpu.CompilerParams(
            # Batch axis is independent -> shard across both TCs on v7x; neutral elsewhere.
            dimension_semantics=("parallel",),
            # Explicit scoped-VMEM limit so the intended tile/pipeline depth compiles
            # on every generation (default scoped limit is far below physical VMEM).
            vmem_limit_bytes=int(0.75 * vmem_cap),
        ),
        cost_estimate=cost,
    )(feat, w1_f, b1, w2_p, b2_p)

    return out_padded[:, :NUM_CLASSES]


def init_params(key):
    """Deterministic synthetic parameters matching the module's shapes."""
    k1, k2, k3, k4, k5, k6, k7, k8 = jax.random.split(key, 8)
    # Linear(1408, 512): torch weight is (512, 1408); we store the transpose.
    w1 = jax.random.normal(k1, (FEAT_C, HIDDEN), jnp.float32) * 0.02
    b1 = jax.random.normal(k2, (1, HIDDEN), jnp.float32) * 0.01
    # BatchNorm1d(512) params / running stats (non-trivial to exercise folding).
    gamma = 1.0 + 0.1 * jax.random.normal(k3, (1, HIDDEN), jnp.float32)
    beta = 0.05 * jax.random.normal(k4, (1, HIDDEN), jnp.float32)
    run_mean = 0.1 * jax.random.normal(k5, (1, HIDDEN), jnp.float32)
    run_var = jax.random.uniform(k6, (1, HIDDEN), jnp.float32, 0.5, 1.5)
    # Linear(512, num_classes): torch weight (num_classes, 512) -> transpose.
    w2 = jax.random.normal(k7, (HIDDEN, NUM_CLASSES), jnp.float32) * 0.02
    b2 = jax.random.normal(k8, (1, NUM_CLASSES), jnp.float32) * 0.01
    return (w1, b1, gamma, beta, run_mean, run_var, w2, b2)


def reference_head(feat, params):
    """Pure-JAX reference of the same forward pass (eval mode), all f32."""
    w1, b1, gamma, beta, run_mean, run_var, w2, b2 = params
    pooled = jnp.mean(feat.astype(jnp.float32), axis=1)
    h = pooled @ w1 + b1
    h = jnp.maximum(h, 0.0)
    h = (h - run_mean) * jax.lax.rsqrt(run_var + BN_EPS) * gamma + beta
    return h @ w2 + b2


if __name__ == "__main__":
    key = jax.random.PRNGKey(0)
    k_feat, k_params = jax.random.split(key)

    # Small example: batch=2, 4x4 spatial feature map from the backbone,
    # C=1408 channels (fixed by the module's classifier).
    B, H, W = 2, 4, 4
    feat = jax.random.normal(k_feat, (B, H * W, FEAT_C), jnp.float32)

    params = init_params(k_params)

    out = face_recognition_head(feat, params)
    out = jax.block_until_ready(out)
    assert out.shape == (B, NUM_CLASSES)

    # Full-f32 path end-to-end now (no bf16 feat quantization), so compare
    # tightly against the f32 reference (only folding/assoc-order differences).
    ref_f32 = reference_head(feat, params)
    assert jnp.allclose(out, ref_f32, atol=1e-3, rtol=1e-3), "mismatch vs f32 reference"

    print("KERNEL_OK")
</pallas_src>

<mosaic_0001>
module attributes {stable_mosaic.version = 11 : i64} {
  func.func @_head_kernel(%arg0: i32, %arg1: memref<2x16x1408xf32, #tpu.memory_space<vmem>>, %arg2: memref<1408x512xf32, #tpu.memory_space<vmem>>, %arg3: memref<1x512xf32, #tpu.memory_space<vmem>>, %arg4: memref<512x128xf32, #tpu.memory_space<vmem>>, %arg5: memref<1x128xf32, #tpu.memory_space<vmem>>, %arg6: memref<2x128xf32, #tpu.memory_space<vmem>>) attributes {dimension_semantics = [#tpu.dimension_semantics<parallel>], iteration_bounds = array<i64: 1>, scalar_prefetch = 0 : i64, scratch_operands = 0 : i64, tpu.core_type = #tpu.core_type<tc>, window_params = [{transform_indices = @transform_0, window_bounds = array<i64: 2, 16, 1408>}, {pipeline_mode = #tpu.pipeline_mode<synchronous>, transform_indices = @transform_1, window_bounds = array<i64: 1408, 512>}, {pipeline_mode = #tpu.pipeline_mode<synchronous>, transform_indices = @transform_2, window_bounds = array<i64: 1, 512>}, {pipeline_mode = #tpu.pipeline_mode<synchronous>, transform_indices = @transform_3, window_bounds = array<i64: 512, 128>}, {pipeline_mode = #tpu.pipeline_mode<synchronous>, transform_indices = @transform_4, window_bounds = array<i64: 1, 128>}, {transform_indices = @transform_5, window_bounds = array<i64: 2, 128>}]} {
    %cst = arith.constant 0.000000e+00 : f32
    %0 = vector.broadcast %cst : f32 to vector<2x1408xf32>
    %c0_i32 = arith.constant 0 : i32
    %c0 = arith.constant 0 : index
    %1 = arith.index_cast %c0_i32 : i32 to index
    %c0_0 = arith.constant 0 : index
    %2 = vector.load %arg1[%c0, %1, %c0_0] : memref<2x16x1408xf32, #tpu.memory_space<vmem>>, vector<2x1x1408xf32>
    %3 = vector.shape_cast %2 : vector<2x1x1408xf32> to vector<2x1408xf32>
    %4 = arith.addf %0, %3 : vector<2x1408xf32>
    %c1_i32 = arith.constant 1 : i32
    %c0_1 = arith.constant 0 : index
    %5 = arith.index_cast %c1_i32 : i32 to index
    %c0_2 = arith.constant 0 : index
    %6 = vector.load %arg1[%c0_1, %5, %c0_2] : memref<2x16x1408xf32, #tpu.memory_space<vmem>>, vector<2x1x1408xf32>
    %7 = vector.shape_cast %6 : vector<2x1x1408xf32> to vector<2x1408xf32>
    %8 = arith.addf %4, %7 : vector<2x1408xf32>
    %c2_i32 = arith.constant 2 : i32
    %c0_3 = arith.constant 0 : index
    %9 = arith.index_cast %c2_i32 : i32 to index
    %c0_4 = arith.constant 0 : index
    %10 = vector.load %arg1[%c0_3, %9, %c0_4] : memref<2x16x1408xf32, #tpu.memory_space<vmem>>, vector<2x1x1408xf32>
    %11 = vector.shape_cast %10 : vector<2x1x1408xf32> to vector<2x1408xf32>
    %12 = arith.addf %8, %11 : vector<2x1408xf32>
    %c3_i32 = arith.constant 3 : i32
    %c0_5 = arith.constant 0 : index
    %13 = arith.index_cast %c3_i32 : i32 to index
    %c0_6 = arith.constant 0 : index
    %14 = vector.load %arg1[%c0_5, %13, %c0_6] : memref<2x16x1408xf32, #tpu.memory_space<vmem>>, vector<2x1x1408xf32>
    %15 = vector.shape_cast %14 : vector<2x1x1408xf32> to vector<2x1408xf32>
    %16 = arith.addf %12, %15 : vector<2x1408xf32>
    %c4_i32 = arith.constant 4 : i32
    %c0_7 = arith.constant 0 : index
    %17 = arith.index_cast %c4_i32 : i32 to index
    %c0_8 = arith.constant 0 : index
    %18 = vector.load %arg1[%c0_7, %17, %c0_8] : memref<2x16x1408xf32, #tpu.memory_space<vmem>>, vector<2x1x1408xf32>
    %19 = vector.shape_cast %18 : vector<2x1x1408xf32> to vector<2x1408xf32>
    %20 = arith.addf %16, %19 : vector<2x1408xf32>
    %c5_i32 = arith.constant 5 : i32
    %c0_9 = arith.constant 0 : index
    %21 = arith.index_cast %c5_i32 : i32 to index
    %c0_10 = arith.constant 0 : index
    %22 = vector.load %arg1[%c0_9, %21, %c0_10] : memref<2x16x1408xf32, #tpu.memory_space<vmem>>, vector<2x1x1408xf32>
    %23 = vector.shape_cast %22 : vector<2x1x1408xf32> to vector<2x1408xf32>
    %24 = arith.addf %20, %23 : vector<2x1408xf32>
    %c6_i32 = arith.constant 6 : i32
    %c0_11 = arith.constant 0 : index
    %25 = arith.index_cast %c6_i32 : i32 to index
    %c0_12 = arith.constant 0 : index
    %26 = vector.load %arg1[%c0_11, %25, %c0_12] : memref<2x16x1408xf32, #tpu.memory_space<vmem>>, vector<2x1x1408xf32>
    %27 = vector.shape_cast %26 : vector<2x1x1408xf32> to vector<2x1408xf32>
    %28 = arith.addf %24, %27 : vector<2x1408xf32>
    %c7_i32 = arith.constant 7 : i32
    %c0_13 = arith.constant 0 : index
    %29 = arith.index_cast %c7_i32 : i32 to index
    %c0_14 = arith.constant 0 : index
    %30 = vector.load %arg1[%c0_13, %29, %c0_14] : memref<2x16x1408xf32, #tpu.memory_space<vmem>>, vector<2x1x1408xf32>
    %31 = vector.shape_cast %30 : vector<2x1x1408xf32> to vector<2x1408xf32>
    %32 = arith.addf %28, %31 : vector<2x1408xf32>
    %c8_i32 = arith.constant 8 : i32
    %c0_15 = arith.constant 0 : index
    %33 = arith.index_cast %c8_i32 : i32 to index
    %c0_16 = arith.constant 0 : index
    %34 = vector.load %arg1[%c0_15, %33, %c0_16] : memref<2x16x1408xf32, #tpu.memory_space<vmem>>, vector<2x1x1408xf32>
    %35 = vector.shape_cast %34 : vector<2x1x1408xf32> to vector<2x1408xf32>
    %36 = arith.addf %32, %35 : vector<2x1408xf32>
    %c9_i32 = arith.constant 9 : i32
    %c0_17 = arith.constant 0 : index
    %37 = arith.index_cast %c9_i32 : i32 to index
    %c0_18 = arith.constant 0 : index
    %38 = vector.load %arg1[%c0_17, %37, %c0_18] : memref<2x16x1408xf32, #tpu.memory_space<vmem>>, vector<2x1x1408xf32>
    %39 = vector.shape_cast %38 : vector<2x1x1408xf32> to vector<2x1408xf32>
    %40 = arith.addf %36, %39 : vector<2x1408xf32>
    %c10_i32 = arith.constant 10 : i32
    %c0_19 = arith.constant 0 : index
    %41 = arith.index_cast %c10_i32 : i32 to index
    %c0_20 = arith.constant 0 : index
    %42 = vector.load %arg1[%c0_19, %41, %c0_20] : memref<2x16x1408xf32, #tpu.memory_space<vmem>>, vector<2x1x1408xf32>
    %43 = vector.shape_cast %42 : vector<2x1x1408xf32> to vector<2x1408xf32>
    %44 = arith.addf %40, %43 : vector<2x1408xf32>
    %c11_i32 = arith.constant 11 : i32
    %c0_21 = arith.constant 0 : index
    %45 = arith.index_cast %c11_i32 : i32 to index
    %c0_22 = arith.constant 0 : index
    %46 = vector.load %arg1[%c0_21, %45, %c0_22] : memref<2x16x1408xf32, #tpu.memory_space<vmem>>, vector<2x1x1408xf32>
    %47 = vector.shape_cast %46 : vector<2x1x1408xf32> to vector<2x1408xf32>
    %48 = arith.addf %44, %47 : vector<2x1408xf32>
    %c12_i32 = arith.constant 12 : i32
    %c0_23 = arith.constant 0 : index
    %49 = arith.index_cast %c12_i32 : i32 to index
    %c0_24 = arith.constant 0 : index
    %50 = vector.load %arg1[%c0_23, %49, %c0_24] : memref<2x16x1408xf32, #tpu.memory_space<vmem>>, vector<2x1x1408xf32>
    %51 = vector.shape_cast %50 : vector<2x1x1408xf32> to vector<2x1408xf32>
    %52 = arith.addf %48, %51 : vector<2x1408xf32>
    %c13_i32 = arith.constant 13 : i32
    %c0_25 = arith.constant 0 : index
    %53 = arith.index_cast %c13_i32 : i32 to index
    %c0_26 = arith.constant 0 : index
    %54 = vector.load %arg1[%c0_25, %53, %c0_26] : memref<2x16x1408xf32, #tpu.memory_space<vmem>>, vector<2x1x1408xf32>
    %55 = vector.shape_cast %54 : vector<2x1x1408xf32> to vector<2x1408xf32>
    %56 = arith.addf %52, %55 : vector<2x1408xf32>
    %c14_i32 = arith.constant 14 : i32
    %c0_27 = arith.constant 0 : index
    %57 = arith.index_cast %c14_i32 : i32 to index
    %c0_28 = arith.constant 0 : index
    %58 = vector.load %arg1[%c0_27, %57, %c0_28] : memref<2x16x1408xf32, #tpu.memory_space<vmem>>, vector<2x1x1408xf32>
    %59 = vector.shape_cast %58 : vector<2x1x1408xf32> to vector<2x1408xf32>
    %60 = arith.addf %56, %59 : vector<2x1408xf32>
    %c15_i32 = arith.constant 15 : i32
    %c0_29 = arith.constant 0 : index
    %61 = arith.index_cast %c15_i32 : i32 to index
    %c0_30 = arith.constant 0 : index
    %62 = vector.load %arg1[%c0_29, %61, %c0_30] : memref<2x16x1408xf32, #tpu.memory_space<vmem>>, vector<2x1x1408xf32>
    %63 = vector.shape_cast %62 : vector<2x1x1408xf32> to vector<2x1408xf32>
    %64 = arith.addf %60, %63 : vector<2x1408xf32>
    %c16_i32 = arith.constant 16 : i32
    %c0_31 = arith.constant 0 : index
    %c0_32 = arith.constant 0 : index
    %65 = vector.load %arg2[%c0_31, %c0_32] : memref<1408x512xf32, #tpu.memory_space<vmem>>, vector<1408x512xf32>
    %cst_33 = arith.constant dense<0.000000e+00> : vector<2x512xf32>
    %66 = tpu.matmul %64, %65, %cst_33 {dimension_numbers = #tpu.dot_dimension_numbers<[1], [0], [0], [1], [0, 0, 1, 1], [], []>} : vector<2x1408xf32>, vector<1408x512xf32>, vector<2x512xf32> -> vector<2x512xf32>
    %c0_34 = arith.constant 0 : index
    %c0_35 = arith.constant 0 : index
    %67 = vector.load %arg3[%c0_34, %c0_35] : memref<1x512xf32, #tpu.memory_space<vmem>>, vector<1x512xf32>
    %68 = vector.broadcast %67 : vector<1x512xf32> to vector<2x512xf32>
    %69 = arith.addf %66, %68 : vector<2x512xf32>
    %cst_36 = arith.constant 0.000000e+00 : f32
    %70 = vector.broadcast %cst_36 : f32 to vector<2x512xf32>
    %71 = arith.maximumf %69, %70 : vector<2x512xf32>
    %c0_37 = arith.constant 0 : index
    %c0_38 = arith.constant 0 : index
    %72 = vector.load %arg4[%c0_37, %c0_38] : memref<512x128xf32, #tpu.memory_space<vmem>>, vector<512x128xf32>
    %cst_39 = arith.constant dense<0.000000e+00> : vector<2x128xf32>
    %73 = tpu.matmul %71, %72, %cst_39 {dimension_numbers = #tpu.dot_dimension_numbers<[1], [0], [0], [1], [0, 0, 1, 1], [], []>} : vector<2x512xf32>, vector<512x128xf32>, vector<2x128xf32> -> vector<2x128xf32>
    %c0_40 = arith.constant 0 : index
    %c0_41 = arith.constant 0 : index
    %74 = vector.load %arg5[%c0_40, %c0_41] : memref<1x128xf32, #tpu.memory_space<vmem>>, vector<1x128xf32>
    %75 = vector.broadcast %74 : vector<1x128xf32> to vector<2x128xf32>
    %76 = arith.addf %73, %75 : vector<2x128xf32>
    %c0_42 = arith.constant 0 : index
    %c0_43 = arith.constant 0 : index
    %77 = vector.load %arg6[%c0_42, %c0_43] : memref<2x128xf32, #tpu.memory_space<vmem>>, vector<2x128xf32>
    tpu.vector_store %arg6[%c0_42, %c0_43], %76 {strides = array<i32>} : memref<2x128xf32, #tpu.memory_space<vmem>>, vector<2x128xf32>,
    return
  }
  func.func @transform_0(%arg0: i32) -> (i32, i32, i32) {
    %c0_i32 = arith.constant 0 : i32
    %c0_i32_0 = arith.constant 0 : i32
    %c0_i32_1 = arith.constant 0 : i32
    return %arg0, %c0_i32, %c0_i32_0 : i32, i32, i32
  }
  func.func @transform_1(%arg0: i32) -> (i32, i32) {
    %c0_i32 = arith.constant 0 : i32
    %c0_i32_0 = arith.constant 0 : i32
    %c0_i32_1 = arith.constant 0 : i32
    return %c0_i32, %c0_i32_0 : i32, i32
  }
  func.func @transform_2(%arg0: i32) -> (i32, i32) {
    %c0_i32 = arith.constant 0 : i32
    %c0_i32_0 = arith.constant 0 : i32
    %c0_i32_1 = arith.constant 0 : i32
    return %c0_i32, %c0_i32_0 : i32, i32
  }
  func.func @transform_3(%arg0: i32) -> (i32, i32) {
    %c0_i32 = arith.constant 0 : i32
    %c0_i32_0 = arith.constant 0 : i32
    %c0_i32_1 = arith.constant 0 : i32
    return %c0_i32, %c0_i32_0 : i32, i32
  }
  func.func @transform_4(%arg0: i32) -> (i32, i32) {
    %c0_i32 = arith.constant 0 : i32
    %c0_i32_0 = arith.constant 0 : i32
    %c0_i32_1 = arith.constant 0 : i32
    return %c0_i32, %c0_i32_0 : i32, i32
  }
  func.func @transform_5(%arg0: i32) -> (i32, i32) {
    %c0_i32 = arith.constant 0 : i32
    %c0_i32_0 = arith.constant 0 : i32
    return %arg0, %c0_i32 : i32, i32
  }
}

</mosaic_0001>

<bundles_post_ra>
// kernel: tpu_custom_call.1
= control target key start
LH: loop header
LB: loop body
LE: loop exit
PB: predicated region body
PF: predicated region fallthrough
CT: control target
= control target key end

     0   :  { %10 = vsyncpa [#allocation3], 0  ;;  %s3496_s0 = inlined_call_operand.hbm [shape: f32[2,16,1408], index: 0, kind: input, shape index: {}]   ;;  %s3497_s1 = inlined_call_operand.hbm [shape: f32[1408,512], index: 1, kind: input, shape index: {}]   ;;  %s3498_s2 = inlined_call_operand.hbm [shape: f32[1,512], index: 2, kind: input, shape index: {}]   ;;  %s3499_s3 = inlined_call_operand.hbm [shape: f32[512,128], index: 3, kind: input, shape index: {}]   ;;  %s3500_s4 = inlined_call_operand.hbm [shape: f32[1,128], index: 4, kind: input, shape index: {}]   ;;  %s3501_s5 = inlined_call_operand.hbm [shape: f32[2,128], index: 5, kind: output, shape index: {}]  }
   0x1   :  { %11 = vsyncpa [#allocation6], 0 }
   0x2   :  { %12 = vsyncpa [#allocation9], 0 }
   0x3   :  { %13 = vsyncpa [#allocation4], 0  ;;  %s3257_s18 = smov [#allocation5]   ;;  %s3117_s22 = scalar_lea.hbm %s3497_s1, 90112 }
   0x4   :  { %s31_s19 = sshll.u32 %s3257_s18, 4  ;;  %p3118_p0 = scmp.ne.s32.totalorder %s3497_s1, %s3117_s22  ;;  %s32_s19 = int_to_ptr.vmem [resolvable:$true] %s31_s19 }
   0x5   :  { %p3121_p1 = scmp.lt.u32.totalorder %s3117_s22, %s3497_s1 }
   0x7   :  { %p3123_p2 = pnand %p3121_p1, %p3118_p0 }
   0x9   :  { %3126 = shalt.err (!%p3123_p2)
}
   0xa   :  { %s3127_s27 = scalar_lea.vmem %s32_s19, 90112  ;;  %p3132_p4 = scmp.lt.s32.totalorder %s32_s19, %s32_s19 }
   0xb   :  { %p3128_p3 = scmp.ne.s32.totalorder %s32_s19, %s3127_s27  ;;  %p3133_p5 = scmp.lt.s32.totalorder %s3127_s27, %s3127_s27 }
   0xd   :  { %p3134_p6 = por %p3133_p5, %p3132_p4 }
   0xf   :  { %p3135_p7 = pnand %p3134_p6, %p3128_p3 }
  0x11   :  { %3138 = shalt.err (!%p3135_p7)
}
  0x12   :  { %s3258_s28 = smov 512   ;;  %s3259_s29 = smov 32  }
  0x13   :  { %37 = dma.hbm_to_vmem [thread:$0]  %s3497_s1, 90112, %s32_s19, [#allocation6], %s3258_s28, %s3258_s28, %s3259_s29  }
  0x14   :  { %s3260_s7 = smov [#allocation8]   ;;  %s3139_s11 = scalar_lea.hbm %s3499_s3, 8192 }
  0x15   :  { %s53_s8 = sshll.u32 %s3260_s7, 4  ;;  %p3140_p8 = scmp.ne.s32.totalorder %s3499_s3, %s3139_s11  ;;  %s54_s8 = int_to_ptr.vmem [resolvable:$true] %s53_s8 }
  0x16   :  { %p3143_p9 = scmp.lt.u32.totalorder %s3139_s11, %s3499_s3 }
  0x18   :  { %p3145_p10 = pnand %p3143_p9, %p3140_p8 }
  0x1a   :  { %3148 = shalt.err (!%p3145_p10)
}
  0x1b   :  { %s3149_s16 = scalar_lea.vmem %s54_s8, 8192  ;;  %p3154_p12 = scmp.lt.s32.totalorder %s54_s8, %s54_s8 }
  0x1c   :  { %p3150_p11 = scmp.ne.s32.totalorder %s54_s8, %s3149_s16  ;;  %p3155_p13 = scmp.lt.s32.totalorder %s3149_s16, %s3149_s16 }
  0x1e   :  { %p3156_p0 = por %p3155_p13, %p3154_p12 }
  0x20   :  { %p3157_p1 = pnand %p3156_p0, %p3150_p11 }
  0x22   :  { %3160 = shalt.err (!%p3157_p1)
}
  0x23   :  { %s3261_s1 = smov 128   ;;  %s3262_s17 = smov 8  }
  0x24   :  { %59 = dma.hbm_to_vmem [thread:$0]  %s3499_s3, 8192, %s54_s8, [#allocation9], %s3261_s1, %s3261_s1, %s3262_s17  }
  0x25   :  { %s3263_s20 = smov [#allocation2]   ;;  %s3161_s24 = scalar_lea.hbm %s3496_s0, 5632 }
  0x26   :  { %s19_s21 = sshll.u32 %s3263_s20, 4  ;;  %p3162_p2 = scmp.ne.s32.totalorder %s3496_s0, %s3161_s24  ;;  %s20_s21 = int_to_ptr.vmem [resolvable:$true] %s19_s21 }
  0x27   :  { %p3165_p3 = scmp.lt.u32.totalorder %s3161_s24, %s3496_s0 }
  0x29   :  { %p3167_p4 = pnand %p3165_p3, %p3162_p2 }
  0x2b   :  { %3170 = shalt.err (!%p3167_p4)
}
  0x2c   :  { %s3171_s29 = scalar_lea.vmem %s20_s21, 5632  ;;  %p3176_p6 = scmp.lt.s32.totalorder %s20_s21, %s20_s21 }
  0x2d   :  { %p3172_p5 = scmp.ne.s32.totalorder %s20_s21, %s3171_s29  ;;  %p3177_p7 = scmp.lt.s32.totalorder %s3171_s29, %s3171_s29 }
  0x2f   :  { %p3178_p8 = por %p3177_p7, %p3176_p6 }
  0x31   :  { %p3179_p9 = pnand %p3178_p8, %p3172_p5 }
  0x33   :  { %3182 = shalt.err (!%p3179_p9)
}
  0x34   :  { %s3264_s3 = smov 1408   ;;  %s3265_s30 = smov 88  }
  0x35   :  { %25 = dma.hbm_to_vmem [thread:$0]  %s3496_s0, 5632, %s20_s21, [#allocation3], %s3264_s3, %s3264_s3, %s3265_s30  }
  0x36   :  { %s3266_s8 = smov [#allocation7]   ;;  %s3267_s10 = smov [#allocation10]  }
  0x37   :  { %s44_s9 = sshll.u32 %s3266_s8, 4  ;;  %s66_s11 = sshll.u32 %s3267_s10, 4  ;;  %s45_s9 = int_to_ptr.vmem [resolvable:$true] %s44_s9  ;;  %s67_s11 = int_to_ptr.vmem [resolvable:$true] %s66_s11 }
  0x38   :  { %s3183_s14 = scalar_lea.hbm %s3498_s2, 64 }
  0x39   :  { %p3184_p10 = scmp.ne.s32.totalorder %s3498_s2, %s3183_s14  ;;  %p3187_p11 = scmp.lt.u32.totalorder %s3183_s14, %s3498_s2 }
  0x3b   :  { %p3189_p12 = pnand %p3187_p11, %p3184_p10 }
  0x3d   :  { %3192 = shalt.err (!%p3189_p12)
}
  0x3e   :  { %s3193_s0 = scalar_lea.vmem %s45_s9, 64  ;;  %p3198_p0 = scmp.lt.s32.totalorder %s45_s9, %s45_s9 }
  0x3f   :  { %p3194_p13 = scmp.ne.s32.totalorder %s45_s9, %s3193_s0  ;;  %p3199_p1 = scmp.lt.s32.totalorder %s3193_s0, %s3193_s0 }
  0x41   :  { %p3200_p2 = por %p3199_p1, %p3198_p0 }
  0x43   :  { %p3201_p3 = pnand %p3200_p2, %p3194_p13 }
  0x45   :  { %3204 = shalt.err (!%p3201_p3)
}
  0x46   :  { %47 = dma.hbm_to_vmem [thread:$0]  %s3498_s2, 64, %s45_s9, [#allocation6]  }
  0x47   :  { %s3205_s22 = scalar_lea.hbm %s3500_s4, 16 }
  0x48   :  { %p3206_p4 = scmp.ne.s32.totalorder %s3500_s4, %s3205_s22  ;;  %p3209_p5 = scmp.lt.u32.totalorder %s3205_s22, %s3500_s4 }
  0x4a   :  { %p3211_p6 = pnand %p3209_p5, %p3206_p4 }
  0x4c   :  { %3214 = shalt.err (!%p3211_p6)
}
  0x4d   :  { %s3215_s27 = scalar_lea.vmem %s67_s11, 16  ;;  %s3219_s28 = scalar_lea.vmem %s67_s11, 32 }
  0x4e   :  { %p3216_p7 = scmp.ne.s32.totalorder %s67_s11, %s3215_s27  ;;  %p3220_p8 = scmp.lt.s32.totalorder %s67_s11, %s67_s11 }
  0x4f   :  { %p3221_p9 = scmp.lt.s32.totalorder %s3219_s28, %s3215_s27 }
  0x51   :  { %p3222_p10 = por %p3221_p9, %p3220_p8 }
  0x53   :  { %p3223_p11 = pnand %p3222_p10, %p3216_p7 }
  0x55   :  { %3226 = shalt.err (!%p3223_p11)
}
  0x56   :  { %69 = dma.hbm_to_vmem [thread:$0]  %s3500_s4, 16, %s67_s11, [#allocation9]  }
  0x57   :  { %3249 = dma.done.wait [#allocation3], 5632  }
  0x58   :  { %3250 = vsyncadd [#allocation3], 4294961664 }
  0x59   :  { %3251 = dma.done.wait [#allocation6], 90176  }
  0x5a   :  { %3252 = vsyncadd [#allocation6], 4294877120 }
  0x5b   :  { %3253 = dma.done.wait [#allocation9], 8208  }
  0x5c   :  { %3254 = vsyncadd [#allocation9], 4294959088  ;;  %v341_v0 = vld [vmem:[#allocation5 + $0x8] sm:$0xff]  ;;  %v343_v2 = vld [vmem:[#allocation5 + $0x18] sm:$0xff]  ;;  %s3270_s4 = smov [#allocation11]  }
  0x5d   :  { %v345_v1 = vld [vmem:[#allocation5 + $0x28] sm:$0xff]  ;;  %v347_v4 = vld [vmem:[#allocation5 + $0x38] sm:$0xff]  ;;  %v340_v5 = vld [vmem:[#allocation5] sm:$0xff]  ;;  %s2229_s3 = sshll.u32 %s3270_s4, 4  ;;  %s2230_s3 = int_to_ptr.vmem [resolvable:$true] %s2229_s3 }
  0x5e   :  { %v2311_v3 = vpack.c.bf16 %v345_v1, %v341_v0  ;;  %v344_v6 = vld [vmem:[#allocation5 + $0x20] sm:$0xff]  ;;  %v2663_v7 = vpack.c.bf16 %v347_v4, %v343_v2  ;;  %v342_v9 = vld [vmem:[#allocation5 + $0x10] sm:$0xff]  ;;  %v349_v11 = vld [vmem:[#allocation5 + $0x48] sm:$0xff]  ;;  %s3227_s30 = scalar_lea.vmem %s2230_s3, 32  ;;  %p3232_p13 = scmp.lt.s32.totalorder %s2230_s3, %s2230_s3 }
  0x5f   :  { %v2313_v8 = vpack.c.bf16 %v344_v6, %v340_v5  ;;  %v346_v10 = vld [vmem:[#allocation5 + $0x30] sm:$0xff]  ;;  %v353_v13 = vld [vmem:[#allocation5 + $0x68] sm:$0xff]  ;;  %v351_v14 = vld [vmem:[#allocation5 + $0x58] sm:$0xff]  ;;  %p3228_p12 = scmp.ne.s32.totalorder %s2230_s3, %s3227_s30  ;;  %p3233_p0 = scmp.lt.s32.totalorder %s3227_s30, %s3227_s30 }
  0x60   :  { %2312 = vmatprep.subr.bf16.mxu0 %v2311_v3  ;;  %v2665_v12 = vpack.c.bf16 %v346_v10, %v342_v9  ;;  %v355_v15 = vld [vmem:[#allocation5 + $0x78] sm:$0xff]  ;;  %2664 = vmatprep.subr.bf16.mxu1 %v2663_v7  ;;  %v2315_v16 = vpack.c.bf16 %v353_v13, %v349_v11  ;;  %v348_v18 = vld [vmem:[#allocation5 + $0x40] sm:$0xff]  ;;  %v350_v20 = vld [vmem:[#allocation5 + $0x50] sm:$0xff] }
  0x61   :  { %2314 = vmatpush1.bf16.msra.mxu0 %v2313_v8  ;;  %v2667_v17 = vpack.c.bf16 %v355_v15, %v351_v14  ;;  %v352_v19 = vld [vmem:[#allocation5 + $0x60] sm:$0xff]  ;;  %v354_v22 = vld [vmem:[#allocation5 + $0x70] sm:$0xff]  ;;  %v357_v23 = vld [vmem:[#allocation5 + $0x88] sm:$0xff]  ;;  %p3234_p1 = por %p3233_p0, %p3232_p13 }
  0x62   :  { %2666 = vmatpush1.bf16.msra.mxu1 %v2665_v12  ;;  %v2317_v21 = vpack.c.bf16 %v352_v19, %v348_v18  ;;  %v361_v24 = vld [vmem:[#allocation5 + $0xa8] sm:$0xff]  ;;  %2316 = vmatprep.subr.bf16.mxu0 %v2315_v16  ;;  %v2669_v25 = vpack.c.bf16 %v354_v22, %v350_v20  ;;  %v359_v27 = vld [vmem:[#allocation5 + $0x98] sm:$0xff]  ;;  %v356_v29 = vld [vmem:[#allocation5 + $0x80] sm:$0xff] }
  0x63   :  { %2668 = vmatprep.subr.bf16.mxu1 %v2667_v17  ;;  %v2319_v26 = vpack.c.bf16 %v361_v24, %v357_v23  ;;  %v363_v28 = vld [vmem:[#allocation5 + $0xb8] sm:$0xff]  ;;  %v360_v31 = vld [vmem:[#allocation5 + $0xa0] sm:$0xff]  ;;  %v358_v32 = vld [vmem:[#allocation5 + $0x90] sm:$0xff]  ;;  %p3235_p2 = pnand %p3234_p1, %p3228_p12 }
  0x64   :  { %v2671_v30 = vpack.c.bf16 %v363_v28, %v359_v27  ;;  %v362_v33 = vld [vmem:[#allocation5 + $0xb0] sm:$0xff]  ;;  %v2321_v34 = vpack.c.bf16 %v360_v31, %v356_v29  ;;  %v365_v35 = vld [vmem:[#allocation5 + $0xc8] sm:$0xff]  ;;  %v367_v37 = vld [vmem:[#allocation5 + $0xd8] sm:$0xff] }
  0x65   :  { %2318 = vmatpush1.bf16.msra.mxu0 %v2317_v21  ;;  %v369_v36 = vld [vmem:[#allocation5 + $0xe8] sm:$0xff]  ;;  %v2673_v38 = vpack.c.bf16 %v362_v33, %v358_v32  ;;  %v371_v40 = vld [vmem:[#allocation5 + $0xf8] sm:$0xff]  ;;  %v364_v41 = vld [vmem:[#allocation5 + $0xc0] sm:$0xff] }
  0x66   :  { %2670 = vmatpush1.bf16.msra.mxu1 %v2669_v25  ;;  %2320 = vmatprep.subr.bf16.mxu0 %v2319_v26  ;;  %v2323_v39 = vpack.c.bf16 %v369_v36, %v365_v35  ;;  %v368_v42 = vld [vmem:[#allocation5 + $0xe0] sm:$0xff]  ;;  %v2675_v43 = vpack.c.bf16 %v371_v40, %v367_v37  ;;  %v366_v44 = vld [vmem:[#allocation5 + $0xd0] sm:$0xff]  ;;  %v373_v46 = vld [vmem:[#allocation5 + $0x108] sm:$0xff] }
  0x67   :  { %2672 = vmatprep.subr.bf16.mxu1 %v2671_v30  ;;  %v370_v45 = vld [vmem:[#allocation5 + $0xf0] sm:$0xff]  ;;  %v377_v47 = vld [vmem:[#allocation5 + $0x128] sm:$0xff]  ;;  %v375_v48 = vld [vmem:[#allocation5 + $0x118] sm:$0xff]  ;;  %v2325_v50 = vpack.c.bf16 %v368_v42, %v364_v41 }
  0x68   :  { %v379_v49 = vld [vmem:[#allocation5 + $0x138] sm:$0xff]  ;;  %v2677_v51 = vpack.c.bf16 %v370_v45, %v366_v44  ;;  %v2327_v52 = vpack.c.bf16 %v377_v47, %v373_v46  ;;  %v372_v53 = vld [vmem:[#allocation5 + $0x100] sm:$0xff]  ;;  %v374_v55 = vld [vmem:[#allocation5 + $0x110] sm:$0xff] }
  0x69   :  { %2322 = vmatpush1.bf16.msra.mxu0 %v2321_v34  ;;  %v376_v54 = vld [vmem:[#allocation5 + $0x120] sm:$0xff]  ;;  %v2679_v56 = vpack.c.bf16 %v379_v49, %v375_v48  ;;  %v378_v57 = vld [vmem:[#allocation5 + $0x130] sm:$0xff]  ;;  %v381_v58 = vld [vmem:[#allocation5 + $0x148] sm:$0xff] }
  0x6a   :  { %2674 = vmatpush1.bf16.msra.mxu1 %v2673_v38  ;;  %2324 = vmatprep.subr.bf16.mxu0 %v2323_v39  ;;  %v385_v59 = vld [vmem:[#allocation5 + $0x168] sm:$0xff]  ;;  %v383_v60 = vld [vmem:[#allocation5 + $0x158] sm:$0xff]  ;;  %v2329_v62 = vpack.c.bf16 %v376_v54, %v372_v53  ;;  %v2681_v63 = vpack.c.bf16 %v378_v57, %v374_v55  ;;  %v380_v1 = vld [vmem:[#allocation5 + $0x140] sm:$0xff] }
  0x6b   :  { %2676 = vmatprep.subr.bf16.mxu1 %v2675_v43  ;;  %v387_v61 = vld [vmem:[#allocation5 + $0x178] sm:$0xff]  ;;  %v2331_v0 = vpack.c.bf16 %v385_v59, %v381_v58  ;;  %v384_v2 = vld [vmem:[#allocation5 + $0x160] sm:$0xff]  ;;  %v382_v3 = vld [vmem:[#allocation5 + $0x150] sm:$0xff] }
  0x6c   :  { %v2683_v4 = vpack.c.bf16 %v387_v61, %v383_v60  ;;  %v386_v5 = vld [vmem:[#allocation5 + $0x170] sm:$0xff]  ;;  %v389_v6 = vld [vmem:[#allocation5 + $0x188] sm:$0xff]  ;;  %v391_v8 = vld [vmem:[#allocation5 + $0x198] sm:$0xff]  ;;  %v2333_v10 = vpack.c.bf16 %v384_v2, %v380_v1 }
  0x6d   :  { %2326 = vmatpush1.bf16.msra.mxu0 %v2325_v50  ;;  %v393_v7 = vld [vmem:[#allocation5 + $0x1a8] sm:$0xff]  ;;  %v395_v9 = vld [vmem:[#allocation5 + $0x1b8] sm:$0xff]  ;;  %v2685_v11 = vpack.c.bf16 %v386_v5, %v382_v3  ;;  %v388_v13 = vld [vmem:[#allocation5 + $0x180] sm:$0xff] }
  0x6e   :  { %2678 = vmatpush1.bf16.msra.mxu1 %v2677_v51  ;;  %2328 = vmatprep.subr.bf16.mxu0 %v2327_v52  ;;  %v2335_v12 = vpack.c.bf16 %v393_v7, %v389_v6  ;;  %v392_v14 = vld [vmem:[#allocation5 + $0x1a0] sm:$0xff]  ;;  %v390_v15 = vld [vmem:[#allocation5 + $0x190] sm:$0xff]  ;;  %v2687_v16 = vpack.c.bf16 %v395_v9, %v391_v8  ;;  %v397_v18 = vld [vmem:[#allocation5 + $0x1c8] sm:$0xff] }
  0x6f   :  { %2680 = vmatprep.subr.bf16.mxu1 %v2679_v56  ;;  %v394_v17 = vld [vmem:[#allocation5 + $0x1b0] sm:$0xff]  ;;  %v401_v19 = vld [vmem:[#allocation5 + $0x1e8] sm:$0xff]  ;;  %v399_v20 = vld [vmem:[#allocation5 + $0x1d8] sm:$0xff]  ;;  %v2337_v22 = vpack.c.bf16 %v392_v14, %v388_v13 }
  0x70   :  { %v403_v21 = vld [vmem:[#allocation5 + $0x1f8] sm:$0xff]  ;;  %v2689_v23 = vpack.c.bf16 %v394_v17, %v390_v15  ;;  %v2339_v24 = vpack.c.bf16 %v401_v19, %v397_v18  ;;  %v396_v25 = vld [vmem:[#allocation5 + $0x1c0] sm:$0xff]  ;;  %v398_v27 = vld [vmem:[#allocation5 + $0x1d0] sm:$0xff] }
  0x71   :  { %2330 = vmatpush1.bf16.msra.mxu0 %v2329_v62  ;;  %v400_v26 = vld [vmem:[#allocation5 + $0x1e0] sm:$0xff]  ;;  %v2691_v28 = vpack.c.bf16 %v403_v21, %v399_v20  ;;  %v402_v29 = vld [vmem:[#allocation5 + $0x1f0] sm:$0xff]  ;;  %v405_v30 = vld [vmem:[#allocation5 + $0x208] sm:$0xff] }
  0x72   :  { %2682 = vmatpush1.bf16.msra.mxu1 %v2681_v63  ;;  %2332 = vmatprep.subr.bf16.mxu0 %v2331_v0  ;;  %v409_v31 = vld [vmem:[#allocation5 + $0x228] sm:$0xff]  ;;  %v407_v32 = vld [vmem:[#allocation5 + $0x218] sm:$0xff]  ;;  %v2341_v34 = vpack.c.bf16 %v400_v26, %v396_v25  ;;  %v2693_v35 = vpack.c.bf16 %v402_v29, %v398_v27  ;;  %v404_v37 = vld [vmem:[#allocation5 + $0x200] sm:$0xff] }
  0x73   :  { %2684 = vmatprep.subr.bf16.mxu1 %v2683_v4  ;;  %v411_v33 = vld [vmem:[#allocation5 + $0x238] sm:$0xff]  ;;  %v2343_v36 = vpack.c.bf16 %v409_v31, %v405_v30  ;;  %v408_v38 = vld [vmem:[#allocation5 + $0x220] sm:$0xff]  ;;  %v406_v39 = vld [vmem:[#allocation5 + $0x210] sm:$0xff]  ;;  %v1046_v4 = vlaneseq }
  0x74   :  { %v2695_v40 = vpack.c.bf16 %v411_v33, %v407_v32  ;;  %v410_v41 = vld [vmem:[#allocation5 + $0x230] sm:$0xff]  ;;  %v413_v42 = vld [vmem:[#allocation5 + $0x248] sm:$0xff]  ;;  %v415_v44 = vld [vmem:[#allocation5 + $0x258] sm:$0xff]  ;;  %v2345_v46 = vpack.c.bf16 %v408_v38, %v404_v37 }
  0x75   :  { %2334 = vmatpush1.bf16.msra.mxu0 %v2333_v10  ;;  %v417_v43 = vld [vmem:[#allocation5 + $0x268] sm:$0xff]  ;;  %v419_v45 = vld [vmem:[#allocation5 + $0x278] sm:$0xff]  ;;  %v2697_v47 = vpack.c.bf16 %v410_v41, %v406_v39  ;;  %v412_v49 = vld [vmem:[#allocation5 + $0x240] sm:$0xff]  ;;  %v3361_v20 = vshrl.u32 %v1046_v4, 7 }
  0x76   :  { %2686 = vmatpush1.bf16.msra.mxu1 %v2685_v11  ;;  %2336 = vmatprep.subr.bf16.mxu0 %v2335_v12  ;;  %v2347_v48 = vpack.c.bf16 %v417_v43, %v413_v42  ;;  %v416_v50 = vld [vmem:[#allocation5 + $0x260] sm:$0xff]  ;;  %v414_v51 = vld [vmem:[#allocation5 + $0x250] sm:$0xff]  ;;  %v2699_v52 = vpack.c.bf16 %v419_v45, %v415_v44  ;;  %v421_v54 = vld [vmem:[#allocation5 + $0x288] sm:$0xff] }
  0x77   :  { %2688 = vmatprep.subr.bf16.mxu1 %v2687_v16  ;;  %v418_v53 = vld [vmem:[#allocation5 + $0x270] sm:$0xff]  ;;  %v425_v55 = vld [vmem:[#allocation5 + $0x2a8] sm:$0xff]  ;;  %v423_v56 = vld [vmem:[#allocation5 + $0x298] sm:$0xff]  ;;  %v2349_v58 = vpack.c.bf16 %v416_v50, %v412_v49 }
  0x78   :  { %v427_v57 = vld [vmem:[#allocation5 + $0x2b8] sm:$0xff]  ;;  %v2701_v59 = vpack.c.bf16 %v418_v53, %v414_v51  ;;  %v2351_v60 = vpack.c.bf16 %v425_v55, %v421_v54  ;;  %v420_v61 = vld [vmem:[#allocation5 + $0x280] sm:$0xff]  ;;  %v422_v63 = vld [vmem:[#allocation5 + $0x290] sm:$0xff] }
  0x79   :  { %2338 = vmatpush1.bf16.msra.mxu0 %v2337_v22  ;;  %v424_v62 = vld [vmem:[#allocation5 + $0x2a0] sm:$0xff]  ;;  %v2703_v0 = vpack.c.bf16 %v427_v57, %v423_v56  ;;  %v426_v1 = vld [vmem:[#allocation5 + $0x2b0] sm:$0xff]  ;;  %v429_v2 = vld [vmem:[#allocation5 + $0x2c8] sm:$0xff] }
  0x7a   :  { %2690 = vmatpush1.bf16.msra.mxu1 %v2689_v23  ;;  %2340 = vmatprep.subr.bf16.mxu0 %v2339_v24  ;;  %v433_v3 = vld [vmem:[#allocation5 + $0x2e8] sm:$0xff]  ;;  %v431_v5 = vld [vmem:[#allocation5 + $0x2d8] sm:$0xff]  ;;  %v2353_v7 = vpack.c.bf16 %v424_v62, %v420_v61  ;;  %v428_v8 = vld [vmem:[#allocation5 + $0x2c0] sm:$0xff]  ;;  %v2705_v11 = vpack.c.bf16 %v426_v1, %v422_v63 }
  0x7b   :  { %2692 = vmatprep.subr.bf16.mxu1 %v2691_v28  ;;  %v435_v6 = vld [vmem:[#allocation5 + $0x2f8] sm:$0xff]  ;;  %v432_v9 = vld [vmem:[#allocation5 + $0x2e0] sm:$0xff]  ;;  %v430_v10 = vld [vmem:[#allocation5 + $0x2d0] sm:$0xff]  ;;  %v2355_v12 = vpack.c.bf16 %v433_v3, %v429_v2 }
  0x7c   :  { %v434_v13 = vld [vmem:[#allocation5 + $0x2f0] sm:$0xff]  ;;  %v437_v14 = vld [vmem:[#allocation5 + $0x308] sm:$0xff]  ;;  %v2707_v16 = vpack.c.bf16 %v435_v6, %v431_v5  ;;  %v439_v17 = vld [vmem:[#allocation5 + $0x318] sm:$0xff]  ;;  %v2357_v27 = vpack.c.bf16 %v432_v9, %v428_v8 }
  0x7d   :  { %2342 = vmatpush1.bf16.msra.mxu0 %v2341_v34  ;;  %v441_v15 = vld [vmem:[#allocation5 + $0x328] sm:$0xff]  ;;  %v443_v18 = vld [vmem:[#allocation5 + $0x338] sm:$0xff]  ;;  %v3363_v21 = vld [vmem:[#allocation5 + $0x300] sm:$0xff]  ;;  %v2709_v33 = vpack.c.bf16 %v434_v13, %v430_v10 }
  0x7e   :  { %2694 = vmatpush1.bf16.msra.mxu1 %v2693_v35  ;;  %2344 = vmatprep.subr.bf16.mxu0 %v2343_v36  ;;  %v85_v19 = vld [vmem:[#allocation2] ss:$8 sm:$0xf]  ;;  %v101_v32 = vld [vmem:[#allocation2 + $0x1] ss:$8 sm:$0xf]  ;;  %v2359_v34 = vpack.c.bf16 %v441_v15, %v437_v14 }
  0x7f   :  { %2696 = vmatprep.subr.bf16.mxu1 %v2695_v40  ;;  %v3365_v22 = vld [vmem:[#allocation5 + $0x320] sm:$0xff]  ;;  %v3367_v23 = vld [vmem:[#allocation5 + $0x310] sm:$0xff]  ;;  %v3371_v28 = vld [vmem:[#allocation5 + $0x348] sm:$0xff]  ;;  %v2711_v40 = vpack.c.bf16 %v443_v18, %v439_v17 }
  0x80   :  { %v3369_v24 = vld [vmem:[#allocation5 + $0x330] sm:$0xff]  ;;  %v3373_v29 = vld [vmem:[#allocation5 + $0x368] sm:$0xff]  ;;  %v3375_v35 = vld [vmem:[#allocation5 + $0x358] sm:$0xff]  ;;  %v2361_v51 = vpack.c.bf16 %v3365_v22, %v3363_v21 }
  0x81   :  { %2346 = vmatpush1.bf16.msra.mxu0 %v2345_v46  ;;  %v86_v25 = vld [vmem:[#allocation2] ss:$8 sm:$0xf0]  ;;  %v102_v38 = vld [vmem:[#allocation2 + $0x1] ss:$8 sm:$0xf0] }
  0x82   :  { %2698 = vmatpush1.bf16.msra.mxu1 %v2697_v47  ;;  %2348 = vmatprep.subr.bf16.mxu0 %v2347_v48  ;;  %v91_v26 = vld [vmem:[#allocation2 + $0xb0] ss:$8 sm:$0xf]  ;;  %v87_v30 = vor.u32 %v86_v25, %v85_v19  ;;  %v107_v39 = vld [vmem:[#allocation2 + $0xb1] ss:$8 sm:$0xf]  ;;  %v103_v41 = vor.u32 %v102_v38, %v101_v32 }
  0x83   :  { %2700 = vmatprep.subr.bf16.mxu1 %v2699_v52  ;;  %v92_v31 = vld [vmem:[#allocation2 + $0xb0] ss:$8 sm:$0xf0]  ;;  %v108_v42 = vld [vmem:[#allocation2 + $0xb1] ss:$8 sm:$0xf0]  ;;  %v2713_v52 = vpack.c.bf16 %v3369_v24, %v3367_v23 }
  0x84   :  { %v3377_v36 = vld [vmem:[#allocation5 + $0x378] sm:$0xff]  ;;  %v93_v37 = vor.u32 %v92_v31, %v91_v26  ;;  %v3379_v44 = vld [vmem:[#allocation5 + $0x340] sm:$0xff]  ;;  %v3383_v46 = vld [vmem:[#allocation5 + $0x350] sm:$0xff]  ;;  %v109_v48 = vor.u32 %v108_v42, %v107_v39  ;;  %v112_v55 = vadd.f32 %v103_v41, %v87_v30 }
  0x85   :  { %2350 = vmatpush1.bf16.msra.mxu0 %v2349_v58  ;;  %v117_v43 = vld [vmem:[#allocation2 + $0x2] ss:$8 sm:$0xf]  ;;  %v133_v58 = vld [vmem:[#allocation2 + $0x3] ss:$8 sm:$0xf]  ;;  %v2715_v2 = vpack.c.bf16 %v3377_v36, %v3375_v35 }
  0x86   :  { %2702 = vmatpush1.bf16.msra.mxu1 %v2701_v59  ;;  %2352 = vmatprep.subr.bf16.mxu0 %v2351_v60  ;;  %v3381_v45 = vld [vmem:[#allocation5 + $0x360] sm:$0xff]  ;;  %v3385_v47 = vld [vmem:[#allocation5 + $0x370] sm:$0xff]  ;;  %v3391_v53 = vld [vmem:[#allocation5 + $0x388] sm:$0xff]  ;;  %v2363_v59 = vpack.c.bf16 %v3373_v29, %v3371_v28  ;;  %v114_v62 = vadd.f32 %v109_v48, %v93_v37 }
  0x87   :  { %2704 = vmatprep.subr.bf16.mxu1 %v2703_v0  ;;  %v118_v49 = vld [vmem:[#allocation2 + $0x2] ss:$8 sm:$0xf0]  ;;  %v134_v0 = vld [vmem:[#allocation2 + $0x3] ss:$8 sm:$0xf0]  ;;  %v2365_v15 = vpack.c.bf16 %v3381_v45, %v3379_v44 }
  0x88   :  { %v123_v50 = vld [vmem:[#allocation2 + $0xb2] ss:$8 sm:$0xf]  ;;  %v119_v56 = vor.u32 %v118_v49, %v117_v43  ;;  %v139_v1 = vld [vmem:[#allocation2 + $0xb3] ss:$8 sm:$0xf]  ;;  %v135_v4 = vor.u32 %v134_v0, %v133_v58 }
  0x89   :  { %2354 = vmatpush1.bf16.msra.mxu0 %v2353_v7  ;;  %v3393_v54 = vld [vmem:[#allocation5 + $0x3a8] sm:$0xff]  ;;  %v3397_v60 = vld [vmem:[#allocation5 + $0x398] sm:$0xff]  ;;  %v3403_v7 = vld [vmem:[#allocation5 + $0x380] sm:$0xff] }
  0x8a   :  { %2706 = vmatpush1.bf16.msra.mxu1 %v2705_v11  ;;  %2356 = vmatprep.subr.bf16.mxu0 %v2355_v12  ;;  %v124_v57 = vld [vmem:[#allocation2 + $0xb2] ss:$8 sm:$0xf0]  ;;  %v128_v3 = vadd.f32 %v119_v56, %v112_v55  ;;  %v140_v5 = vld [vmem:[#allocation2 + $0xb3] ss:$8 sm:$0xf0]  ;;  %v2367_v24 = vpack.c.bf16 %v3393_v54, %v3391_v53 }
  0x8b   :  { %2708 = vmatprep.subr.bf16.mxu1 %v2707_v16  ;;  %v3399_v61 = vld [vmem:[#allocation5 + $0x3b8] sm:$0xff]  ;;  %v125_v63 = vor.u32 %v124_v57, %v123_v50  ;;  %v3405_v8 = vld [vmem:[#allocation5 + $0x3a0] sm:$0xff]  ;;  %v3407_v9 = vld [vmem:[#allocation5 + $0x390] sm:$0xff]  ;;  %v141_v12 = vor.u32 %v140_v5, %v139_v1  ;;  %v2717_v16 = vpack.c.bf16 %v3385_v47, %v3383_v46 }
  0x8c   :  { %v149_v6 = vld [vmem:[#allocation2 + $0x4] ss:$8 sm:$0xf]  ;;  %v144_v19 = vadd.f32 %v135_v4, %v128_v3  ;;  %v165_v23 = vld [vmem:[#allocation2 + $0x5] ss:$8 sm:$0xf]  ;;  %v2719_v31 = vpack.c.bf16 %v3399_v61, %v3397_v60  ;;  %v2369_v42 = vpack.c.bf16 %v3405_v8, %v3403_v7 }
  0x8d   :  { %2358 = vmatpush1.bf16.msra.mxu0 %v2357_v27  ;;  %v3409_v10 = vld [vmem:[#allocation5 + $0x3b0] sm:$0xff]  ;;  %v130_v11 = vadd.f32 %v125_v63, %v114_v62  ;;  %v461_v17 = vld [vmem:[#allocation5 + $0x3c8] sm:$0xff]  ;;  %v463_v25 = vld [vmem:[#allocation5 + $0x3d8] sm:$0xff] }
  0x8e   :  { %2710 = vmatpush1.bf16.msra.mxu1 %v2709_v33  ;;  %2360 = vmatprep.subr.bf16.mxu0 %v2359_v34  ;;  %v150_v13 = vld [vmem:[#allocation2 + $0x4] ss:$8 sm:$0xf0]  ;;  %v166_v29 = vld [vmem:[#allocation2 + $0x5] ss:$8 sm:$0xf0]  ;;  %v2721_v43 = vpack.c.bf16 %v3409_v10, %v3407_v9 }
  0x8f   :  { %2712 = vmatprep.subr.bf16.mxu1 %v2711_v40  ;;  %v155_v14 = vld [vmem:[#allocation2 + $0xb4] ss:$8 sm:$0xf]  ;;  %v151_v21 = vor.u32 %v150_v13, %v149_v6  ;;  %v146_v27 = vadd.f32 %v141_v12, %v130_v11  ;;  %v171_v30 = vld [vmem:[#allocation2 + $0xb5] ss:$8 sm:$0xf]  ;;  %v167_v33 = vor.u32 %v166_v29, %v165_v23 }
  0x90   :  { %v465_v18 = vld [vmem:[#allocation5 + $0x3e8] sm:$0xff]  ;;  %v467_v26 = vld [vmem:[#allocation5 + $0x3f8] sm:$0xff]  ;;  %v460_v36 = vld [vmem:[#allocation5 + $0x3c0] sm:$0xff] }
  0x91   :  { %2362 = vmatpush1.bf16.msra.mxu0 %v2361_v51  ;;  %v156_v22 = vld [vmem:[#allocation2 + $0xb4] ss:$8 sm:$0xf0]  ;;  %v160_v32 = vadd.f32 %v151_v21, %v144_v19  ;;  %v172_v34 = vld [vmem:[#allocation2 + $0xb5] ss:$8 sm:$0xf0]  ;;  %v2371_v50 = vpack.c.bf16 %v465_v18, %v461_v17  ;;  %v2723_v55 = vpack.c.bf16 %v467_v26, %v463_v25 }
  0x92   :  { %2714 = vmatpush1.bf16.msra.mxu1 %v2713_v52  ;;  %2364 = vmatprep.subr.bf16.mxu0 %v2363_v59  ;;  %v157_v28 = vor.u32 %v156_v22, %v155_v14  ;;  %v181_v35 = vld [vmem:[#allocation2 + $0x6] ss:$8 sm:$0xf]  ;;  %v173_v39 = vor.u32 %v172_v34, %v171_v30  ;;  %v197_v49 = vld [vmem:[#allocation2 + $0x7] ss:$8 sm:$0xf] }
  0x93   :  { %2716 = vmatprep.subr.bf16.mxu1 %v2715_v2  ;;  %v464_v37 = vld [vmem:[#allocation5 + $0x3e0] sm:$0xff]  ;;  %v462_v44 = vld [vmem:[#allocation5 + $0x3d0] sm:$0xff]  ;;  %v176_v46 = vadd.f32 %v167_v33, %v160_v32 }
  0x94   :  { %v162_v38 = vadd.f32 %v157_v28, %v146_v27  ;;  %v182_v40 = vld [vmem:[#allocation2 + $0x6] ss:$8 sm:$0xf0]  ;;  %v198_v53 = vld [vmem:[#allocation2 + $0x7] ss:$8 sm:$0xf0]  ;;  %v2373_v0 = vpack.c.bf16 %v464_v37, %v460_v36 }
  0x95   :  { %v187_v41 = vld [vmem:[#allocation2 + $0xb6] ss:$8 sm:$0xf]  ;;  %2366 = vmatpush1.bf16.msra.mxu0 %v2365_v15  ;;  %v183_v47 = vor.u32 %v182_v40, %v181_v35  ;;  %v203_v54 = vld [vmem:[#allocation2 + $0xb7] ss:$8 sm:$0xf]  ;;  %v199_v57 = vor.u32 %v198_v53, %v197_v49 }
  0x96   :  { %v466_v45 = vld [vmem:[#allocation5 + $0x3f0] sm:$0xff]  ;;  %2718 = vmatpush1.bf16.msra.mxu1 %v2717_v16  ;;  %2368 = vmatprep.subr.bf16.mxu0 %v2367_v24  ;;  %v178_v51 = vadd.f32 %v173_v39, %v162_v38 }
  0x97   :  { %v188_v48 = vld [vmem:[#allocation2 + $0xb6] ss:$8 sm:$0xf0]  ;;  %2720 = vmatprep.subr.bf16.mxu1 %v2719_v31  ;;  %v192_v56 = vadd.f32 %v183_v47, %v176_v46  ;;  %v204_v58 = vld [vmem:[#allocation2 + $0xb7] ss:$8 sm:$0xf0]  ;;  %v2725_v5 = vpack.c.bf16 %v466_v45, %v462_v44 }
  0x98   :  { %v189_v52 = vor.u32 %v188_v48, %v187_v41  ;;  %v213_v59 = vld [vmem:[#allocation2 + $0x58] ss:$8 sm:$0xf]  ;;  %v205_v61 = vor.u32 %v204_v58, %v203_v54  ;;  %v229_v4 = vld [vmem:[#allocation2 + $0x59] ss:$8 sm:$0xf] }
  0x99   :  { %v214_v62 = vld [vmem:[#allocation2 + $0x58] ss:$8 sm:$0xf0]  ;;  %2370 = vmatpush1.bf16.msra.mxu0 %v2369_v42  ;;  %v208_v1 = vadd.f32 %v199_v57, %v192_v56  ;;  %v230_v8 = vld [vmem:[#allocation2 + $0x59] ss:$8 sm:$0xf0] }
  0x9a   :  { %v194_v60 = vadd.f32 %v189_v52, %v178_v51  ;;  %v219_v63 = vld [vmem:[#allocation2 + $0x108] ss:$8 sm:$0xf]  ;;  %v215_v2 = vor.u32 %v214_v62, %v213_v59  ;;  %2722 = vmatpush1.bf16.msra.mxu1 %v2721_v43  ;;  %2372 = vmatprep.subr.bf16.mxu0 %v2371_v50  ;;  %v235_v9 = vld [vmem:[#allocation2 + $0x109] ss:$8 sm:$0xf]  ;;  %v231_v11 = vor.u32 %v230_v8, %v229_v4 }
  0x9b   :  { %v220_v3 = vld [vmem:[#allocation2 + $0x108] ss:$8 sm:$0xf0]  ;;  %2724 = vmatprep.subr.bf16.mxu1 %v2723_v55  ;;  %v236_v12 = vld [vmem:[#allocation2 + $0x109] ss:$8 sm:$0xf0] }
  0x9c   :  { %v210_v6 = vadd.f32 %v205_v61, %v194_v60  ;;  %v221_v7 = vor.u32 %v220_v3, %v219_v63  ;;  %v224_v10 = vadd.f32 %v215_v2, %v208_v1  ;;  %v245_v13 = vld [vmem:[#allocation2 + $0x5a] ss:$8 sm:$0xf]  ;;  %v237_v15 = vor.u32 %v236_v12, %v235_v9  ;;  %v261_v22 = vld [vmem:[#allocation2 + $0x5b] ss:$8 sm:$0xf] }
  0x9d   :  { %v246_v16 = vld [vmem:[#allocation2 + $0x5a] ss:$8 sm:$0xf0]  ;;  %2374 = vmatpush1.bf16.msra.mxu0 %v2373_v0  ;;  %v262_v25 = vld [vmem:[#allocation2 + $0x5b] ss:$8 sm:$0xf0] }
  0x9e   :  { %v226_v14 = vadd.f32 %v221_v7, %v210_v6  ;;  %v251_v17 = vld [vmem:[#allocation2 + $0x10a] ss:$8 sm:$0xf]  ;;  %v240_v18 = vadd.f32 %v231_v11, %v224_v10  ;;  %v247_v19 = vor.u32 %v246_v16, %v245_v13  ;;  %2726 = vmatpush1.bf16.msra.mxu1 %v2725_v5  ;;  %v267_v26 = vld [vmem:[#allocation2 + $0x10b] ss:$8 sm:$0xf]  ;;  %v263_v28 = vor.u32 %v262_v25, %v261_v22 }
  0x9f   :  { %v252_v21 = vld [vmem:[#allocation2 + $0x10a] ss:$8 sm:$0xf0]  ;;  %v268_v29 = vld [vmem:[#allocation2 + $0x10b] ss:$8 sm:$0xf0] }
  0xa0   :  { %v242_v23 = vadd.f32 %v237_v15, %v226_v14  ;;  %v253_v24 = vor.u32 %v252_v21, %v251_v17  ;;  %v256_v27 = vadd.f32 %v247_v19, %v240_v18  ;;  %v277_v30 = vld [vmem:[#allocation2 + $0x5c] ss:$8 sm:$0xf]  ;;  %v269_v32 = vor.u32 %v268_v29, %v267_v26  ;;  %v293_v38 = vld [vmem:[#allocation2 + $0x5d] ss:$8 sm:$0xf] }
  0xa1   :  { %v278_v33 = vld [vmem:[#allocation2 + $0x5c] ss:$8 sm:$0xf0]  ;;  %v294_v41 = vld [vmem:[#allocation2 + $0x5d] ss:$8 sm:$0xf0] }
  0xa2   :  { %v258_v31 = vadd.f32 %v253_v24, %v242_v23  ;;  %v283_v34 = vld [vmem:[#allocation2 + $0x10c] ss:$8 sm:$0xf]  ;;  %v272_v35 = vadd.f32 %v263_v28, %v256_v27  ;;  %v279_v36 = vor.u32 %v278_v33, %v277_v30  ;;  %v299_v42 = vld [vmem:[#allocation2 + $0x10d] ss:$8 sm:$0xf]  ;;  %v295_v46 = vor.u32 %v294_v41, %v293_v38 }
  0xa3   :  { %v284_v37 = vld [vmem:[#allocation2 + $0x10c] ss:$8 sm:$0xf0]  ;;  %v3268_v43 = vmov 1966171168  }
  0xa4   :  { %v274_v39 = vadd.f32 %v269_v32, %v258_v31  ;;  %v285_v40 = vor.u32 %v284_v37, %v283_v34  ;;  %v1073_v44 = vunpack.c.l.s4 %v3268_v43  ;;  %v288_v45 = vadd.f32 %v279_v36, %v272_v35  ;;  %v300_v47 = vld [vmem:[#allocation2 + $0x10d] ss:$8 sm:$0xf0]  ;;  %v309_v48 = vld [vmem:[#allocation2 + $0x5e] ss:$8 sm:$0xf] }
  0xa5   :  { %v301_v50 = vor.u32 %v300_v47, %v299_v42  ;;  %v310_v51 = vld [vmem:[#allocation2 + $0x5e] ss:$8 sm:$0xf0]  ;;  %v325_v56 = vld [vmem:[#allocation2 + $0x5f] ss:$8 sm:$0xf] }
  0xa6   :  { %v290_v49 = vadd.f32 %v285_v40, %v274_v39  ;;  %v315_v52 = vld [vmem:[#allocation2 + $0x10e] ss:$8 sm:$0xf]  ;;  %v304_v53 = vadd.f32 %v295_v46, %v288_v45  ;;  %v311_v54 = vor.u32 %v310_v51, %v309_v48  ;;  %v326_v59 = vld [vmem:[#allocation2 + $0x5f] ss:$8 sm:$0xf0]  ;;  %v1074_v61 = vunpack.c.0.s8 %v1073_v44 }
  0xa7   :  { %v316_v55 = vld [vmem:[#allocation2 + $0x10e] ss:$8 sm:$0xf0]  ;;  %v331_v60 = vld [vmem:[#allocation2 + $0x10f] ss:$8 sm:$0xf]  ;;  %v327_v63 = vor.u32 %v326_v59, %v325_v56 }
  0xa8   :  { %v306_v57 = vadd.f32 %v301_v50, %v290_v49  ;;  %v317_v58 = vor.u32 %v316_v55, %v315_v52  ;;  %v320_v62 = vadd.f32 %v311_v54, %v304_v53  ;;  %v332_v0 = vld [vmem:[#allocation2 + $0x10f] ss:$8 sm:$0xf0]  ;;  %v3428_v11 = vsub.s32 %v1074_v61, %v3361_v20 }
  0xa9   :  { %v469_v1 = vld [vmem:[#allocation5 + $0x408] sm:$0xff]  ;;  %v333_v4 = vor.u32 %v332_v0, %v331_v60  ;;  %v471_v6 = vld [vmem:[#allocation5 + $0x418] sm:$0xff]  ;;  %v468_v15 = vld [vmem:[#allocation5 + $0x400] sm:$0xff] }
  0xaa   :  { %v473_v2 = vld [vmem:[#allocation5 + $0x428] sm:$0xff]  ;;  %v322_v3 = vadd.f32 %v317_v58, %v306_v57  ;;  %v475_v7 = vld [vmem:[#allocation5 + $0x438] sm:$0xff]  ;;  %v3423_v8 = vadd.f32 %v327_v63, %v320_v62  ;;  %v472_v16 = vld [vmem:[#allocation5 + $0x420] sm:$0xff] }
  0xab   :  { %v2375_v5 = vpack.c.bf16 %v473_v2, %v469_v1  ;;  %v2727_v9 = vpack.c.bf16 %v475_v7, %v471_v6  ;;  %v470_v17 = vld [vmem:[#allocation5 + $0x410] sm:$0xff]  ;;  %v477_v19 = vld [vmem:[#allocation5 + $0x448] sm:$0xff]  ;;  %v479_v23 = vld [vmem:[#allocation5 + $0x458] sm:$0xff]  ;;  %v2377_v27 = vpack.c.bf16 %v472_v16, %v468_v15 }
  0xac   :  { %v3425_v10 = vadd.f32 %v333_v4, %v322_v3  ;;  %v474_v18 = vld [vmem:[#allocation5 + $0x430] sm:$0xff]  ;;  %v481_v22 = vld [vmem:[#allocation5 + $0x468] sm:$0xff]  ;;  %v483_v24 = vld [vmem:[#allocation5 + $0x478] sm:$0xff] }
  0xad   :  { %2376 = vmatprep.subr.bf16.mxu0 %v2375_v5  ;;  %2728 = vmatprep.subr.bf16.mxu1 %v2727_v9  ;;  %v2729_v28 = vpack.c.bf16 %v474_v18, %v470_v17  ;;  %v476_v29 = vld [vmem:[#allocation5 + $0x440] sm:$0xff]  ;;  %v2379_v31 = vpack.c.bf16 %v481_v22, %v477_v19  ;;  %v2731_v32 = vpack.c.bf16 %v483_v24, %v479_v23  ;;  %v478_v33 = vld [vmem:[#allocation5 + $0x450] sm:$0xff]  ;;  %v485_v35 = vld [vmem:[#allocation5 + $0x488] sm:$0xff] }
  0xae   :  { %v1070_v12 = vcombine.low %v3423_v8, %v3425_v10  ;;  %v1071_v13 = vcombine.high %v3423_v8, %v3425_v10  ;;  %v480_v30 = vld [vmem:[#allocation5 + $0x460] sm:$0xff]  ;;  %v482_v34 = vld [vmem:[#allocation5 + $0x470] sm:$0xff]  ;;  %v489_v36 = vld [vmem:[#allocation5 + $0x4a8] sm:$0xff] }
  0xaf   :  { %v487_v37 = vld [vmem:[#allocation5 + $0x498] sm:$0xff]  ;;  %v2381_v40 = vpack.c.bf16 %v480_v30, %v476_v29  ;;  %v2733_v41 = vpack.c.bf16 %v482_v34, %v478_v33  ;;  %v484_v42 = vld [vmem:[#allocation5 + $0x480] sm:$0xff]  ;;  %v2383_v44 = vpack.c.bf16 %v489_v36, %v485_v35  ;;  %v486_v46 = vld [vmem:[#allocation5 + $0x490] sm:$0xff] }
  0xb0   :  { %v1078_v14 = vrot.slane %v1070_v12, %v3428_v11  ;;  %v491_v38 = vld [vmem:[#allocation5 + $0x4b8] sm:$0xff]  ;;  %v488_v43 = vld [vmem:[#allocation5 + $0x4a0] sm:$0xff]  ;;  %v490_v47 = vld [vmem:[#allocation5 + $0x4b0] sm:$0xff] }
  0xb1   :  { %v2735_v45 = vpack.c.bf16 %v491_v38, %v487_v37  ;;  %v493_v48 = vld [vmem:[#allocation5 + $0x4c8] sm:$0xff]  ;;  %v495_v50 = vld [vmem:[#allocation5 + $0x4d8] sm:$0xff]  ;;  %v2385_v52 = vpack.c.bf16 %v488_v43, %v484_v42  ;;  %v2737_v53 = vpack.c.bf16 %v490_v47, %v486_v46  ;;  %v492_v54 = vld [vmem:[#allocation5 + $0x4c0] sm:$0xff] }
  0xb2   :  { %v1086_v21 = vcombine.high %v1078_v14, %v1078_v14  ;;  %v3436_v25 = vrot.slane %v1078_v14, %v3428_v11  ;;  %v497_v49 = vld [vmem:[#allocation5 + $0x4e8] sm:$0xff]  ;;  %v499_v51 = vld [vmem:[#allocation5 + $0x4f8] sm:$0xff]  ;;  %v496_v55 = vld [vmem:[#allocation5 + $0x4e0] sm:$0xff] }
  0xb3   :  { %v2387_v56 = vpack.c.bf16 %v497_v49, %v493_v48  ;;  %v2739_v57 = vpack.c.bf16 %v499_v51, %v495_v50  ;;  %v494_v58 = vld [vmem:[#allocation5 + $0x4d0] sm:$0xff]  ;;  %v501_v60 = vld [vmem:[#allocation5 + $0x508] sm:$0xff]  ;;  %v503_v62 = vld [vmem:[#allocation5 + $0x518] sm:$0xff]  ;;  %v2389_v0 = vpack.c.bf16 %v496_v55, %v492_v54 }
  0xb4   :  { %v1108_v26 = vrot.slane %v1086_v21, %v3428_v11  ;;  %v498_v59 = vld [vmem:[#allocation5 + $0x4f0] sm:$0xff]  ;;  %v505_v61 = vld [vmem:[#allocation5 + $0x528] sm:$0xff]  ;;  %v507_v63 = vld [vmem:[#allocation5 + $0x538] sm:$0xff]  ;;  %v1116_v10 = vcombine.high %v3436_v25, %v3436_v25 }
  0xb5   :  { %v2741_v1 = vpack.c.bf16 %v498_v59, %v494_v58  ;;  %v500_v2 = vld [vmem:[#allocation5 + $0x500] sm:$0xff]  ;;  %v2391_v4 = vpack.c.bf16 %v505_v61, %v501_v60  ;;  %v2743_v5 = vpack.c.bf16 %v507_v63, %v503_v62  ;;  %v502_v6 = vld [vmem:[#allocation5 + $0x510] sm:$0xff]  ;;  %v509_v9 = vld [vmem:[#allocation5 + $0x548] sm:$0xff] }
  0xb6   :  { %1219 = vmatprep.mubr.f32.mxu0 %v1108_v26  ;;  %1645 = vmatprep.mubr.f32.mxu1 %v1108_v26  ;;  %v1118_v39 = vcombine.high %v1108_v26, %v1108_v26  ;;  %v504_v3 = vld [vmem:[#allocation5 + $0x520] sm:$0xff]  ;;  %v506_v7 = vld [vmem:[#allocation5 + $0x530] sm:$0xff]  ;;  %v513_v12 = vld [vmem:[#allocation5 + $0x568] sm:$0xff] }
  0xb7   :  { %1220 = vmatmul.mubr.f32.vlgmr.msra.gmra.mrb[0].mxu0 %v3436_v25  ;;  %1646 = vmatmul.mubr.f32.vlgmr.msra.gmra.mrb[0].mxu1 %v3436_v25  ;;  %v511_v14 = vld [vmem:[#allocation5 + $0x558] sm:$0xff]  ;;  %v2393_v16 = vpack.c.bf16 %v504_v3, %v500_v2  ;;  %v2745_v17 = vpack.c.bf16 %v506_v7, %v502_v6  ;;  %v508_v18 = vld [vmem:[#allocation5 + $0x540] sm:$0xff]  ;;  %v2395_v21 = vpack.c.bf16 %v513_v12, %v509_v9  ;;  %v510_v23 = vld [vmem:[#allocation5 + $0x550] sm:$0xff] }
  0xb8   :  { %2378 = vmatpush1.bf16.msra.mxu0 %v2377_v27  ;;  %2730 = vmatpush1.bf16.msra.mxu1 %v2729_v28  ;;  %v515_v15 = vld [vmem:[#allocation5 + $0x578] sm:$0xff]  ;;  %v512_v19 = vld [vmem:[#allocation5 + $0x560] sm:$0xff]  ;;  %v514_v24 = vld [vmem:[#allocation5 + $0x570] sm:$0xff] }
  0xb9   :  { %2380 = vmatprep.subr.bf16.mxu0 %v2379_v31  ;;  %2732 = vmatprep.subr.bf16.mxu1 %v2731_v32  ;;  %v2747_v22 = vpack.c.bf16 %v515_v15, %v511_v14  ;;  %v517_v26 = vld [vmem:[#allocation5 + $0x588] sm:$0xff]  ;;  %v519_v28 = vld [vmem:[#allocation5 + $0x598] sm:$0xff]  ;;  %v2397_v30 = vpack.c.bf16 %v512_v19, %v508_v18  ;;  %v2749_v31 = vpack.c.bf16 %v514_v24, %v510_v23  ;;  %v516_v32 = vld [vmem:[#allocation5 + $0x580] sm:$0xff] }
  0xba   :  { %1290 = vmatprep.mubr.f32.mxu0 %v1118_v39  ;;  %1716 = vmatprep.mubr.f32.mxu1 %v1118_v39  ;;  %v521_v27 = vld [vmem:[#allocation5 + $0x5a8] sm:$0xff]  ;;  %v523_v29 = vld [vmem:[#allocation5 + $0x5b8] sm:$0xff]  ;;  %v520_v33 = vld [vmem:[#allocation5 + $0x5a0] sm:$0xff] }
  0xbb   :  { %v2399_v34 = vpack.c.bf16 %v521_v27, %v517_v26  ;;  %v2751_v35 = vpack.c.bf16 %v523_v29, %v519_v28  ;;  %v518_v36 = vld [vmem:[#allocation5 + $0x590] sm:$0xff]  ;;  %v525_v38 = vld [vmem:[#allocation5 + $0x5c8] sm:$0xff]  ;;  %v2401_v42 = vpack.c.bf16 %v520_v33, %v516_v32 }
  0xbc   :  { %2382 = vmatpush1.bf16.msra.mxu0 %v2381_v40  ;;  %2734 = vmatpush1.bf16.msra.mxu1 %v2733_v41  ;;  %v522_v37 = vld [vmem:[#allocation5 + $0x5b0] sm:$0xff]  ;;  %v529_v39 = vld [vmem:[#allocation5 + $0x5e8] sm:$0xff]  ;;  %v527_v40 = vld [vmem:[#allocation5 + $0x5d8] sm:$0xff] }
  0xbd   :  { %2384 = vmatprep.subr.bf16.mxu0 %v2383_v44  ;;  %2736 = vmatprep.subr.bf16.mxu1 %v2735_v45  ;;  %v531_v41 = vld [vmem:[#allocation5 + $0x5f8] sm:$0xff]  ;;  %v2753_v43 = vpack.c.bf16 %v522_v37, %v518_v36  ;;  %v524_v44 = vld [vmem:[#allocation5 + $0x5c0] sm:$0xff]  ;;  %v2403_v46 = vpack.c.bf16 %v529_v39, %v525_v38  ;;  %v526_v48 = vld [vmem:[#allocation5 + $0x5d0] sm:$0xff] }
  0xbe   :  { %v528_v45 = vld [vmem:[#allocation5 + $0x5e0] sm:$0xff]  ;;  %v2755_v47 = vpack.c.bf16 %v531_v41, %v527_v40  ;;  %v530_v49 = vld [vmem:[#allocation5 + $0x5f0] sm:$0xff]  ;;  %v533_v50 = vld [vmem:[#allocation5 + $0x608] sm:$0xff] }
  0xbf   :  { %v537_v51 = vld [vmem:[#allocation5 + $0x628] sm:$0xff]  ;;  %v2405_v54 = vpack.c.bf16 %v528_v45, %v524_v44  ;;  %v2757_v55 = vpack.c.bf16 %v530_v49, %v526_v48  ;;  %v534_v60 = vld [vmem:[#allocation5 + $0x610] sm:$0xff] }
  0xc0   :  { %2386 = vmatpush1.bf16.msra.mxu0 %v2385_v52  ;;  %2738 = vmatpush1.bf16.msra.mxu1 %v2737_v53  ;;  %v535_v52 = vld [vmem:[#allocation5 + $0x618] sm:$0xff]  ;;  %v2407_v58 = vpack.c.bf16 %v537_v51, %v533_v50  ;;  %v538_v61 = vld [vmem:[#allocation5 + $0x630] sm:$0xff]  ;;  %v541_v62 = vld [vmem:[#allocation5 + $0x648] sm:$0xff] }
  0xc1   :  { %2388 = vmatprep.subr.bf16.mxu0 %v2387_v56  ;;  %2740 = vmatprep.subr.bf16.mxu1 %v2739_v57  ;;  %v539_v53 = vld [vmem:[#allocation5 + $0x638] sm:$0xff]  ;;  %v532_v56 = vld [vmem:[#allocation5 + $0x600] sm:$0xff]  ;;  %v545_v63 = vld [vmem:[#allocation5 + $0x668] sm:$0xff]  ;;  %v2761_v3 = vpack.c.bf16 %v538_v61, %v534_v60 }
  0xc2   :  { %v536_v57 = vld [vmem:[#allocation5 + $0x620] sm:$0xff]  ;;  %v2759_v59 = vpack.c.bf16 %v539_v53, %v535_v52  ;;  %v2411_v6 = vpack.c.bf16 %v545_v63, %v541_v62  ;;  %v542_v9 = vld [vmem:[#allocation5 + $0x650] sm:$0xff]  ;;  %v549_v14 = vld [vmem:[#allocation5 + $0x688] sm:$0xff] }
  0xc3   :  { %v2409_v2 = vpack.c.bf16 %v536_v57, %v532_v56  ;;  %v546_v12 = vld [vmem:[#allocation5 + $0x670] sm:$0xff]  ;;  %v553_v15 = vld [vmem:[#allocation5 + $0x6a8] sm:$0xff] }
  0xc4   :  { %2390 = vmatpush1.bf16.msra.mxu0 %v2389_v0  ;;  %2742 = vmatpush1.bf16.msra.mxu1 %v2741_v1  ;;  %v543_v0 = vld [vmem:[#allocation5 + $0x658] sm:$0xff]  ;;  %v2765_v19 = vpack.c.bf16 %v546_v12, %v542_v9  ;;  %v2415_v23 = vpack.c.bf16 %v553_v15, %v549_v14  ;;  %v550_v26 = vld [vmem:[#allocation5 + $0x690] sm:$0xff]  ;;  %v557_v28 = vld [vmem:[#allocation5 + $0x6c8] sm:$0xff] }
  0xc5   :  { %2392 = vmatprep.subr.bf16.mxu0 %v2391_v4  ;;  %2744 = vmatprep.subr.bf16.mxu1 %v2743_v5  ;;  %v547_v1 = vld [vmem:[#allocation5 + $0x678] sm:$0xff]  ;;  %v540_v4 = vld [vmem:[#allocation5 + $0x640] sm:$0xff]  ;;  %v554_v27 = vld [vmem:[#allocation5 + $0x6b0] sm:$0xff] }
  0xc6   :  { %v544_v5 = vld [vmem:[#allocation5 + $0x660] sm:$0xff]  ;;  %v2763_v7 = vpack.c.bf16 %v547_v1, %v543_v0  ;;  %v561_v29 = vld [vmem:[#allocation5 + $0x6e8] sm:$0xff]  ;;  %v2769_v33 = vpack.c.bf16 %v554_v27, %v550_v26  ;;  %v558_v38 = vld [vmem:[#allocation5 + $0x6d0] sm:$0xff] }
  0xc7   :  { %v2413_v18 = vpack.c.bf16 %v544_v5, %v540_v4  ;;  %v2419_v36 = vpack.c.bf16 %v561_v29, %v557_v28  ;;  %v562_v39 = vld [vmem:[#allocation5 + $0x6f0] sm:$0xff]  ;;  %v565_v40 = vld [vmem:[#allocation5 + $0x708] sm:$0xff] }
  0xc8   :  { %2394 = vmatpush1.bf16.msra.mxu0 %v2393_v16  ;;  %2746 = vmatpush1.bf16.msra.mxu1 %v2745_v17  ;;  %v551_v16 = vld [vmem:[#allocation5 + $0x698] sm:$0xff]  ;;  %v569_v41 = vld [vmem:[#allocation5 + $0x728] sm:$0xff]  ;;  %v2773_v45 = vpack.c.bf16 %v562_v39, %v558_v38  ;;  %v566_v50 = vld [vmem:[#allocation5 + $0x710] sm:$0xff] }
  0xc9   :  { %2396 = vmatprep.subr.bf16.mxu0 %v2395_v21  ;;  %2748 = vmatprep.subr.bf16.mxu1 %v2747_v22  ;;  %v555_v17 = vld [vmem:[#allocation5 + $0x6b8] sm:$0xff]  ;;  %v548_v21 = vld [vmem:[#allocation5 + $0x680] sm:$0xff]  ;;  %v2423_v48 = vpack.c.bf16 %v569_v41, %v565_v40  ;;  %v570_v51 = vld [vmem:[#allocation5 + $0x730] sm:$0xff] }
  0xca   :  { %v552_v22 = vld [vmem:[#allocation5 + $0x6a0] sm:$0xff]  ;;  %v2767_v24 = vpack.c.bf16 %v555_v17, %v551_v16  ;;  %v573_v52 = vld [vmem:[#allocation5 + $0x748] sm:$0xff]  ;;  %v2777_v57 = vpack.c.bf16 %v570_v51, %v566_v50  ;;  %v574_v62 = vld [vmem:[#allocation5 + $0x750] sm:$0xff] }
  0xcb   :  { %v2417_v32 = vpack.c.bf16 %v552_v22, %v548_v21  ;;  %v577_v53 = vld [vmem:[#allocation5 + $0x768] sm:$0xff]  ;;  %v578_v63 = vld [vmem:[#allocation5 + $0x770] sm:$0xff]  ;;  %v600_v38 = vld [vmem:[#allocation5 + $0x820] sm:$0xff] }
  0xcc   :  { %2398 = vmatpush1.bf16.msra.mxu0 %v2397_v30  ;;  %2750 = vmatpush1.bf16.msra.mxu1 %v2749_v31  ;;  %v559_v30 = vld [vmem:[#allocation5 + $0x6d8] sm:$0xff]  ;;  %v2427_v60 = vpack.c.bf16 %v577_v53, %v573_v52  ;;  %v581_v0 = vld [vmem:[#allocation5 + $0x788] sm:$0xff]  ;;  %v2781_v5 = vpack.c.bf16 %v578_v63, %v574_v62  ;;  %v582_v14 = vld [vmem:[#allocation5 + $0x790] sm:$0xff] }
  0xcd   :  { %2400 = vmatprep.subr.bf16.mxu0 %v2399_v34  ;;  %2752 = vmatprep.subr.bf16.mxu1 %v2751_v35  ;;  %v563_v31 = vld [vmem:[#allocation5 + $0x6f8] sm:$0xff]  ;;  %v556_v34 = vld [vmem:[#allocation5 + $0x6c0] sm:$0xff]  ;;  %v585_v1 = vld [vmem:[#allocation5 + $0x7a8] sm:$0xff] }
  0xce   :  { %v560_v35 = vld [vmem:[#allocation5 + $0x6e0] sm:$0xff]  ;;  %v2771_v37 = vpack.c.bf16 %v563_v31, %v559_v30  ;;  %v2431_v9 = vpack.c.bf16 %v585_v1, %v581_v0  ;;  %v586_v15 = vld [vmem:[#allocation5 + $0x7b0] sm:$0xff]  ;;  %v589_v16 = vld [vmem:[#allocation5 + $0x7c8] sm:$0xff] }
  0xcf   :  { %v2421_v44 = vpack.c.bf16 %v560_v35, %v556_v34  ;;  %v593_v17 = vld [vmem:[#allocation5 + $0x7e8] sm:$0xff]  ;;  %v2785_v22 = vpack.c.bf16 %v586_v15, %v582_v14  ;;  %v590_v28 = vld [vmem:[#allocation5 + $0x7d0] sm:$0xff]  ;;  %v3445_v34 = vrot.slane %v1071_v13, %v3428_v11 }
  0xd0   :  { %2402 = vmatpush1.bf16.msra.mxu0 %v2401_v42  ;;  %2754 = vmatpush1.bf16.msra.mxu1 %v2753_v43  ;;  %v567_v42 = vld [vmem:[#allocation5 + $0x718] sm:$0xff]  ;;  %v2435_v26 = vpack.c.bf16 %v593_v17, %v589_v16  ;;  %v594_v29 = vld [vmem:[#allocation5 + $0x7f0] sm:$0xff]  ;;  %v597_v30 = vld [vmem:[#allocation5 + $0x808] sm:$0xff] }
  0xd1   :  { %2404 = vmatprep.subr.bf16.mxu0 %v2403_v46  ;;  %2756 = vmatprep.subr.bf16.mxu1 %v2755_v47  ;;  %v571_v43 = vld [vmem:[#allocation5 + $0x738] sm:$0xff]  ;;  %v564_v46 = vld [vmem:[#allocation5 + $0x700] sm:$0xff]  ;;  %v601_v31 = vld [vmem:[#allocation5 + $0x828] sm:$0xff]  ;;  %v1087_v8 = vcombine.high %v3445_v34, %v3445_v34 }
  0xd2   :  { %v568_v47 = vld [vmem:[#allocation5 + $0x720] sm:$0xff]  ;;  %v2775_v49 = vpack.c.bf16 %v571_v43, %v567_v42  ;;  %v2439_v39 = vpack.c.bf16 %v601_v31, %v597_v30  ;;  %v598_v41 = vld [vmem:[#allocation5 + $0x810] sm:$0xff]  ;;  %v605_v43 = vld [vmem:[#allocation5 + $0x848] sm:$0xff] }
  0xd3   :  { %v2425_v56 = vpack.c.bf16 %v568_v47, %v564_v46  ;;  %v602_v42 = vld [vmem:[#allocation5 + $0x830] sm:$0xff]  ;;  %v611_v46 = vld [vmem:[#allocation5 + $0x878] sm:$0xff] }
  0xd4   :  { %2406 = vmatpush1.bf16.msra.mxu0 %v2405_v54  ;;  %2758 = vmatpush1.bf16.msra.mxu1 %v2757_v55  ;;  %v575_v54 = vld [vmem:[#allocation5 + $0x758] sm:$0xff]  ;;  %v2793_v47 = vpack.c.bf16 %v602_v42, %v598_v41  ;;  %v606_v52 = vld [vmem:[#allocation5 + $0x850] sm:$0xff] }
  0xd5   :  { %2408 = vmatprep.subr.bf16.mxu0 %v2407_v58  ;;  %2760 = vmatprep.subr.bf16.mxu1 %v2759_v59  ;;  %v579_v55 = vld [vmem:[#allocation5 + $0x778] sm:$0xff]  ;;  %v572_v58 = vld [vmem:[#allocation5 + $0x740] sm:$0xff]  ;;  %v610_v53 = vld [vmem:[#allocation5 + $0x870] sm:$0xff] }
  0xd6   :  { %v576_v59 = vld [vmem:[#allocation5 + $0x760] sm:$0xff]  ;;  %v2779_v61 = vpack.c.bf16 %v579_v55, %v575_v54  ;;  %v613_v54 = vld [vmem:[#allocation5 + $0x888] sm:$0xff]  ;;  %v614_v0 = vld [vmem:[#allocation5 + $0x890] sm:$0xff] }
  0xd7   :  { %v2429_v4 = vpack.c.bf16 %v576_v59, %v572_v58  ;;  %v617_v55 = vld [vmem:[#allocation5 + $0x8a8] sm:$0xff]  ;;  %v3452_v58 = vrot.slane %v1087_v8, %v3428_v11  ;;  %v2797_v59 = vpack.c.bf16 %v610_v53, %v606_v52  ;;  %v618_v1 = vld [vmem:[#allocation5 + $0x8b0] sm:$0xff]  ;;  %v647_v8 = vld [vmem:[#allocation5 + $0x998] sm:$0xff] }
  0xd8   :  { %2410 = vmatpush1.bf16.msra.mxu0 %v2409_v2  ;;  %2762 = vmatpush1.bf16.msra.mxu1 %v2761_v3  ;;  %v583_v2 = vld [vmem:[#allocation5 + $0x798] sm:$0xff]  ;;  %v2447_v62 = vpack.c.bf16 %v617_v55, %v613_v54  ;;  %v622_v16 = vld [vmem:[#allocation5 + $0x8d0] sm:$0xff]  ;;  %v653_v54 = vld [vmem:[#allocation5 + $0x9c8] sm:$0xff] }
  0xd9   :  { %2412 = vmatprep.subr.bf16.mxu0 %v2411_v6  ;;  %2764 = vmatprep.subr.bf16.mxu1 %v2763_v7  ;;  %v587_v3 = vld [vmem:[#allocation5 + $0x7b8] sm:$0xff]  ;;  %v580_v6 = vld [vmem:[#allocation5 + $0x780] sm:$0xff]  ;;  %v626_v17 = vld [vmem:[#allocation5 + $0x8f0] sm:$0xff] }
  0xda   :  { %v584_v7 = vld [vmem:[#allocation5 + $0x7a0] sm:$0xff]  ;;  %v2783_v12 = vpack.c.bf16 %v587_v3, %v583_v2  ;;  %v621_v2 = vld [vmem:[#allocation5 + $0x8c8] sm:$0xff]  ;;  %v630_v30 = vld [vmem:[#allocation5 + $0x910] sm:$0xff] }
  0xdb   :  { %v2433_v21 = vpack.c.bf16 %v584_v7, %v580_v6  ;;  %v625_v3 = vld [vmem:[#allocation5 + $0x8e8] sm:$0xff]  ;;  %v2801_v7 = vpack.c.bf16 %v618_v1, %v614_v0  ;;  %v634_v31 = vld [vmem:[#allocation5 + $0x930] sm:$0xff] }
  0xdc   :  { %2414 = vmatpush1.bf16.msra.mxu0 %v2413_v18  ;;  %2766 = vmatpush1.bf16.msra.mxu1 %v2765_v19  ;;  %v591_v18 = vld [vmem:[#allocation5 + $0x7d8] sm:$0xff]  ;;  %v2451_v14 = vpack.c.bf16 %v625_v3, %v621_v2  ;;  %v646_v52 = vld [vmem:[#allocation5 + $0x990] sm:$0xff]  ;;  %v657_v55 = vld [vmem:[#allocation5 + $0x9e8] sm:$0xff] }
  0xdd   :  { %2416 = vmatprep.subr.bf16.mxu0 %v2415_v23  ;;  %2768 = vmatprep.subr.bf16.mxu1 %v2767_v24  ;;  %v595_v19 = vld [vmem:[#allocation5 + $0x7f8] sm:$0xff]  ;;  %v588_v23 = vld [vmem:[#allocation5 + $0x7c0] sm:$0xff]  ;;  %v650_v53 = vld [vmem:[#allocation5 + $0x9b0] sm:$0xff] }
  0xde   :  { %v592_v24 = vld [vmem:[#allocation5 + $0x7e0] sm:$0xff]  ;;  %v2787_v27 = vpack.c.bf16 %v595_v19, %v591_v18  ;;  %v629_v18 = vld [vmem:[#allocation5 + $0x908] sm:$0xff]  ;;  %v654_v0 = vld [vmem:[#allocation5 + $0x9d0] sm:$0xff] }
  0xdf   :  { %v2437_v35 = vpack.c.bf16 %v592_v24, %v588_v23  ;;  %v633_v19 = vld [vmem:[#allocation5 + $0x928] sm:$0xff]  ;;  %v2805_v24 = vpack.c.bf16 %v626_v17, %v622_v16  ;;  %v658_v1 = vld [vmem:[#allocation5 + $0x9f0] sm:$0xff] }
  0xe0   :  { %2418 = vmatpush1.bf16.msra.mxu0 %v2417_v32  ;;  %2770 = vmatpush1.bf16.msra.mxu1 %v2769_v33  ;;  %v599_v32 = vld [vmem:[#allocation5 + $0x818] sm:$0xff]  ;;  %v661_v2 = vld [vmem:[#allocation5 + $0xa08] sm:$0xff]  ;;  %v662_v16 = vld [vmem:[#allocation5 + $0xa10] sm:$0xff] }
  0xe1   :  { %2420 = vmatprep.subr.bf16.mxu0 %v2419_v36  ;;  %2772 = vmatprep.subr.bf16.mxu1 %v2771_v37  ;;  %v603_v33 = vld [vmem:[#allocation5 + $0x838] sm:$0xff]  ;;  %v2789_v36 = vpack.c.bf16 %v594_v29, %v590_v28  ;;  %v596_v37 = vld [vmem:[#allocation5 + $0x800] sm:$0xff]  ;;  %v2455_v28 = vpack.c.bf16 %v633_v19, %v629_v18  ;;  %v665_v3 = vld [vmem:[#allocation5 + $0xa28] sm:$0xff] }
  0xe2   :  { %v2791_v40 = vpack.c.bf16 %v603_v33, %v599_v32  ;;  %v2441_v13 = vpack.c.bf16 %v600_v38, %v596_v37  ;;  %v637_v32 = vld [vmem:[#allocation5 + $0x948] sm:$0xff]  ;;  %v2809_v38 = vpack.c.bf16 %v634_v31, %v630_v30  ;;  %v666_v17 = vld [vmem:[#allocation5 + $0xa30] sm:$0xff] }
  0xe3   :  { %v641_v33 = vld [vmem:[#allocation5 + $0x968] sm:$0xff]  ;;  %v670_v30 = vld [vmem:[#allocation5 + $0xa50] sm:$0xff] }
  0xe4   :  { %2422 = vmatpush1.bf16.msra.mxu0 %v2421_v44  ;;  %2774 = vmatpush1.bf16.msra.mxu1 %v2773_v45  ;;  %v609_v44 = vld [vmem:[#allocation5 + $0x868] sm:$0xff]  ;;  %v607_v45 = vld [vmem:[#allocation5 + $0x858] sm:$0xff]  ;;  %v2459_v41 = vpack.c.bf16 %v641_v33, %v637_v32  ;;  %v674_v31 = vld [vmem:[#allocation5 + $0xa70] sm:$0xff] }
  0xe5   :  { %2424 = vmatprep.subr.bf16.mxu0 %v2423_v48  ;;  %2776 = vmatprep.subr.bf16.mxu1 %v2775_v49  ;;  %v604_v48 = vld [vmem:[#allocation5 + $0x840] sm:$0xff]  ;;  %v2443_v50 = vpack.c.bf16 %v609_v44, %v605_v43  ;;  %v2795_v51 = vpack.c.bf16 %v611_v46, %v607_v45  ;;  %v638_v43 = vld [vmem:[#allocation5 + $0x950] sm:$0xff]  ;;  %v645_v45 = vld [vmem:[#allocation5 + $0x988] sm:$0xff] }
  0xe6   :  { %v608_v49 = vld [vmem:[#allocation5 + $0x860] sm:$0xff]  ;;  %v642_v44 = vld [vmem:[#allocation5 + $0x970] sm:$0xff]  ;;  %v649_v46 = vld [vmem:[#allocation5 + $0x9a8] sm:$0xff] }
  0xe7   :  { %v2445_v25 = vpack.c.bf16 %v608_v49, %v604_v48  ;;  %v644_v48 = vld [vmem:[#allocation5 + $0x980] sm:$0xff]  ;;  %v669_v18 = vld [vmem:[#allocation5 + $0xa48] sm:$0xff] }
  0xe8   :  { %2426 = vmatpush1.bf16.msra.mxu0 %v2425_v56  ;;  %2778 = vmatpush1.bf16.msra.mxu1 %v2777_v57  ;;  %v615_v56 = vld [vmem:[#allocation5 + $0x898] sm:$0xff]  ;;  %v648_v49 = vld [vmem:[#allocation5 + $0x9a0] sm:$0xff]  ;;  %v673_v19 = vld [vmem:[#allocation5 + $0xa68] sm:$0xff] }
  0xe9   :  { %2428 = vmatprep.subr.bf16.mxu0 %v2427_v60  ;;  %2780 = vmatprep.subr.bf16.mxu1 %v2779_v61  ;;  %v619_v57 = vld [vmem:[#allocation5 + $0x8b8] sm:$0xff]  ;;  %v612_v60 = vld [vmem:[#allocation5 + $0x880] sm:$0xff]  ;;  %v677_v32 = vld [vmem:[#allocation5 + $0xa88] sm:$0xff] }
  0xea   :  { %v616_v61 = vld [vmem:[#allocation5 + $0x8a0] sm:$0xff]  ;;  %v2799_v63 = vpack.c.bf16 %v619_v57, %v615_v56  ;;  %v655_v56 = vld [vmem:[#allocation5 + $0x9d8] sm:$0xff]  ;;  %v681_v33 = vld [vmem:[#allocation5 + $0xaa8] sm:$0xff] }
  0xeb   :  { %v2449_v6 = vpack.c.bf16 %v616_v61, %v612_v60  ;;  %v659_v57 = vld [vmem:[#allocation5 + $0x9f8] sm:$0xff]  ;;  %v652_v60 = vld [vmem:[#allocation5 + $0x9c0] sm:$0xff] }
  0xec   :  { %2430 = vmatpush1.bf16.msra.mxu0 %v2429_v4  ;;  %2782 = vmatpush1.bf16.msra.mxu1 %v2781_v5  ;;  %v623_v4 = vld [vmem:[#allocation5 + $0x8d8] sm:$0xff]  ;;  %v656_v61 = vld [vmem:[#allocation5 + $0x9e0] sm:$0xff] }
  0xed   :  { %2432 = vmatprep.subr.bf16.mxu0 %v2431_v9  ;;  %2784 = vmatprep.subr.bf16.mxu1 %v2783_v12  ;;  %v627_v5 = vld [vmem:[#allocation5 + $0x8f8] sm:$0xff]  ;;  %v620_v9 = vld [vmem:[#allocation5 + $0x8c0] sm:$0xff] }
  0xee   :  { %v624_v12 = vld [vmem:[#allocation5 + $0x8e0] sm:$0xff]  ;;  %v2803_v15 = vpack.c.bf16 %v627_v5, %v623_v4  ;;  %v663_v4 = vld [vmem:[#allocation5 + $0xa18] sm:$0xff] }
  0xef   :  { %v2453_v23 = vpack.c.bf16 %v624_v12, %v620_v9  ;;  %v667_v5 = vld [vmem:[#allocation5 + $0xa38] sm:$0xff]  ;;  %v660_v9 = vld [vmem:[#allocation5 + $0xa00] sm:$0xff] }
  0xf0   :  { %2434 = vmatpush1.bf16.msra.mxu0 %v2433_v21  ;;  %2786 = vmatpush1.bf16.msra.mxu1 %v2785_v22  ;;  %v631_v21 = vld [vmem:[#allocation5 + $0x918] sm:$0xff]  ;;  %v664_v12 = vld [vmem:[#allocation5 + $0xa20] sm:$0xff] }
  0xf1   :  { %2436 = vmatprep.subr.bf16.mxu0 %v2435_v26  ;;  %2788 = vmatprep.subr.bf16.mxu1 %v2787_v27  ;;  %v635_v22 = vld [vmem:[#allocation5 + $0x938] sm:$0xff]  ;;  %v628_v26 = vld [vmem:[#allocation5 + $0x900] sm:$0xff] }
  0xf2   :  { %v632_v27 = vld [vmem:[#allocation5 + $0x920] sm:$0xff]  ;;  %v2807_v29 = vpack.c.bf16 %v635_v22, %v631_v21  ;;  %v671_v21 = vld [vmem:[#allocation5 + $0xa58] sm:$0xff] }
  0xf3   :  { %v2457_v37 = vpack.c.bf16 %v632_v27, %v628_v26  ;;  %v675_v22 = vld [vmem:[#allocation5 + $0xa78] sm:$0xff]  ;;  %v668_v26 = vld [vmem:[#allocation5 + $0xa40] sm:$0xff] }
  0xf4   :  { %2438 = vmatpush1.bf16.msra.mxu0 %v2437_v35  ;;  %2790 = vmatpush1.bf16.msra.mxu1 %v2789_v36  ;;  %v639_v35 = vld [vmem:[#allocation5 + $0x958] sm:$0xff]  ;;  %v672_v27 = vld [vmem:[#allocation5 + $0xa60] sm:$0xff] }
  0xf5   :  { %2440 = vmatprep.subr.bf16.mxu0 %v2439_v39  ;;  %2792 = vmatprep.subr.bf16.mxu1 %v2791_v40  ;;  %v643_v36 = vld [vmem:[#allocation5 + $0x978] sm:$0xff]  ;;  %v636_v39 = vld [vmem:[#allocation5 + $0x940] sm:$0xff] }
  0xf6   :  { %v640_v40 = vld [vmem:[#allocation5 + $0x960] sm:$0xff]  ;;  %v2811_v42 = vpack.c.bf16 %v643_v36, %v639_v35  ;;  %v679_v35 = vld [vmem:[#allocation5 + $0xa98] sm:$0xff] }
  0xf7   :  { %1291 = vmatmul.mubr.f32.vlgmr.msra.gmra.mrb[0].mxu0 %v1116_v10  ;;  %1717 = vmatmul.mubr.f32.vlgmr.msra.gmra.mrb[0].mxu1 %v1116_v10  ;;  %v651_v10 = vld [vmem:[#allocation5 + $0x9b8] sm:$0xff] }
  0xf8   :  { %2442 = vmatpush1.bf16.msra.mxu0 %v2441_v13  ;;  %2794 = vmatpush1.bf16.msra.mxu1 %v2793_v47  ;;  %v2461_v13 = vpack.c.bf16 %v640_v40, %v636_v39  ;;  %v2813_v47 = vpack.c.bf16 %v642_v44, %v638_v43  ;;  %v683_v36 = vld [vmem:[#allocation5 + $0xab8] sm:$0xff]  ;;  %v676_v39 = vld [vmem:[#allocation5 + $0xa80] sm:$0xff]  ;;  %v678_v43 = vld [vmem:[#allocation5 + $0xa90] sm:$0xff] }
  0xf9   :  { %2444 = vmatprep.subr.bf16.mxu0 %v2443_v50  ;;  %2796 = vmatprep.subr.bf16.mxu1 %v2795_v51  ;;  %v2463_v50 = vpack.c.bf16 %v649_v46, %v645_v45  ;;  %v2815_v51 = vpack.c.bf16 %v651_v10, %v647_v8  ;;  %v680_v40 = vld [vmem:[#allocation5 + $0xaa0] sm:$0xff]  ;;  %v682_v44 = vld [vmem:[#allocation5 + $0xab0] sm:$0xff]  ;;  %v685_v45 = vld [vmem:[#allocation5 + $0xac8] sm:$0xff] }
  0xfa   :  { %1361 = vmatprep.mubr.f32.mxu0 %v3452_v58  ;;  %1787 = vmatprep.mubr.f32.mxu1 %v3452_v58  ;;  %v689_v46 = vld [vmem:[#allocation5 + $0xae8] sm:$0xff]  ;;  %v687_v8 = vld [vmem:[#allocation5 + $0xad8] sm:$0xff] }
  0xfb   :  { %v691_v10 = vld [vmem:[#allocation5 + $0xaf8] sm:$0xff] }
  0xfc   :  { %2446 = vmatpush1.bf16.msra.mxu0 %v2445_v25  ;;  %2798 = vmatpush1.bf16.msra.mxu1 %v2797_v59  ;;  %v2465_v25 = vpack.c.bf16 %v648_v49, %v644_v48  ;;  %v2817_v59 = vpack.c.bf16 %v650_v53, %v646_v52  ;;  %v684_v48 = vld [vmem:[#allocation5 + $0xac0] sm:$0xff]  ;;  %v686_v52 = vld [vmem:[#allocation5 + $0xad0] sm:$0xff] }
  0xfd   :  { %2448 = vmatprep.subr.bf16.mxu0 %v2447_v62  ;;  %2800 = vmatprep.subr.bf16.mxu1 %v2799_v63  ;;  %v2467_v62 = vpack.c.bf16 %v657_v55, %v653_v54  ;;  %v2819_v63 = vpack.c.bf16 %v659_v57, %v655_v56  ;;  %v688_v49 = vld [vmem:[#allocation5 + $0xae0] sm:$0xff]  ;;  %v690_v53 = vld [vmem:[#allocation5 + $0xaf0] sm:$0xff]  ;;  %v693_v54 = vld [vmem:[#allocation5 + $0xb08] sm:$0xff] }
  0xfe   :  { %v697_v55 = vld [vmem:[#allocation5 + $0xb28] sm:$0xff]  ;;  %v695_v56 = vld [vmem:[#allocation5 + $0xb18] sm:$0xff] }
  0xff   :  { %v699_v57 = vld [vmem:[#allocation5 + $0xb38] sm:$0xff] }
 0x100   :  { %2450 = vmatpush1.bf16.msra.mxu0 %v2449_v6  ;;  %2802 = vmatpush1.bf16.msra.mxu1 %v2801_v7  ;;  %v2469_v6 = vpack.c.bf16 %v656_v61, %v652_v60  ;;  %v2821_v7 = vpack.c.bf16 %v658_v1, %v654_v0  ;;  %v692_v60 = vld [vmem:[#allocation5 + $0xb00] sm:$0xff]  ;;  %v694_v0 = vld [vmem:[#allocation5 + $0xb10] sm:$0xff] }
 0x101   :  { %2452 = vmatprep.subr.bf16.mxu0 %v2451_v14  ;;  %2804 = vmatprep.subr.bf16.mxu1 %v2803_v15  ;;  %v2471_v14 = vpack.c.bf16 %v665_v3, %v661_v2  ;;  %v2823_v15 = vpack.c.bf16 %v667_v5, %v663_v4  ;;  %v696_v61 = vld [vmem:[#allocation5 + $0xb20] sm:$0xff]  ;;  %v698_v1 = vld [vmem:[#allocation5 + $0xb30] sm:$0xff]  ;;  %v701_v2 = vld [vmem:[#allocation5 + $0xb48] sm:$0xff] }
 0x102   :  { %v705_v3 = vld [vmem:[#allocation5 + $0xb68] sm:$0xff]  ;;  %v703_v4 = vld [vmem:[#allocation5 + $0xb58] sm:$0xff] }
 0x103   :  { %v707_v5 = vld [vmem:[#allocation5 + $0xb78] sm:$0xff] }
 0x104   :  { %2454 = vmatpush1.bf16.msra.mxu0 %v2453_v23  ;;  %2806 = vmatpush1.bf16.msra.mxu1 %v2805_v24  ;;  %v2473_v23 = vpack.c.bf16 %v664_v12, %v660_v9  ;;  %v2825_v24 = vpack.c.bf16 %v666_v17, %v662_v16  ;;  %v700_v9 = vld [vmem:[#allocation5 + $0xb40] sm:$0xff]  ;;  %v702_v16 = vld [vmem:[#allocation5 + $0xb50] sm:$0xff] }
 0x105   :  { %2456 = vmatprep.subr.bf16.mxu0 %v2455_v28  ;;  %2808 = vmatprep.subr.bf16.mxu1 %v2807_v29  ;;  %v2475_v28 = vpack.c.bf16 %v673_v19, %v669_v18  ;;  %v2827_v29 = vpack.c.bf16 %v675_v22, %v671_v21  ;;  %v704_v12 = vld [vmem:[#allocation5 + $0xb60] sm:$0xff]  ;;  %v706_v17 = vld [vmem:[#allocation5 + $0xb70] sm:$0xff]  ;;  %v709_v18 = vld [vmem:[#allocation5 + $0xb88] sm:$0xff] }
 0x106   :  { %v713_v19 = vld [vmem:[#allocation5 + $0xba8] sm:$0xff]  ;;  %v711_v21 = vld [vmem:[#allocation5 + $0xb98] sm:$0xff] }
 0x107   :  { %v715_v22 = vld [vmem:[#allocation5 + $0xbb8] sm:$0xff] }
 0x108   :  { %2458 = vmatpush1.bf16.msra.mxu0 %v2457_v37  ;;  %2810 = vmatpush1.bf16.msra.mxu1 %v2809_v38  ;;  %v2477_v37 = vpack.c.bf16 %v672_v27, %v668_v26  ;;  %v2829_v38 = vpack.c.bf16 %v674_v31, %v670_v30  ;;  %v708_v26 = vld [vmem:[#allocation5 + $0xb80] sm:$0xff]  ;;  %v710_v30 = vld [vmem:[#allocation5 + $0xb90] sm:$0xff] }
 0x109   :  { %2460 = vmatprep.subr.bf16.mxu0 %v2459_v41  ;;  %2812 = vmatprep.subr.bf16.mxu1 %v2811_v42  ;;  %v2479_v41 = vpack.c.bf16 %v681_v33, %v677_v32  ;;  %v2831_v42 = vpack.c.bf16 %v683_v36, %v679_v35  ;;  %v712_v27 = vld [vmem:[#allocation5 + $0xba0] sm:$0xff]  ;;  %v714_v31 = vld [vmem:[#allocation5 + $0xbb0] sm:$0xff]  ;;  %v717_v32 = vld [vmem:[#allocation5 + $0xbc8] sm:$0xff] }
 0x10a   :  { %v721_v33 = vld [vmem:[#allocation5 + $0xbe8] sm:$0xff]  ;;  %v719_v35 = vld [vmem:[#allocation5 + $0xbd8] sm:$0xff] }
 0x10b   :  { %v723_v36 = vld [vmem:[#allocation5 + $0xbf8] sm:$0xff] }
 0x10c   :  { %2462 = vmatpush1.bf16.msra.mxu0 %v2461_v13  ;;  %2814 = vmatpush1.bf16.msra.mxu1 %v2813_v47  ;;  %v2481_v13 = vpack.c.bf16 %v680_v40, %v676_v39  ;;  %v2833_v47 = vpack.c.bf16 %v682_v44, %v678_v43  ;;  %v716_v39 = vld [vmem:[#allocation5 + $0xbc0] sm:$0xff]  ;;  %v718_v43 = vld [vmem:[#allocation5 + $0xbd0] sm:$0xff] }
 0x10d   :  { %2464 = vmatprep.subr.bf16.mxu0 %v2463_v50  ;;  %2816 = vmatprep.subr.bf16.mxu1 %v2815_v51  ;;  %v2483_v50 = vpack.c.bf16 %v689_v46, %v685_v45  ;;  %v2835_v51 = vpack.c.bf16 %v691_v10, %v687_v8  ;;  %v720_v40 = vld [vmem:[#allocation5 + $0xbe0] sm:$0xff]  ;;  %v722_v44 = vld [vmem:[#allocation5 + $0xbf0] sm:$0xff]  ;;  %v725_v45 = vld [vmem:[#allocation5 + $0xc08] sm:$0xff] }
 0x10e   :  { %v729_v46 = vld [vmem:[#allocation5 + $0xc28] sm:$0xff]  ;;  %v727_v8 = vld [vmem:[#allocation5 + $0xc18] sm:$0xff] }
 0x10f   :  { %v731_v10 = vld [vmem:[#allocation5 + $0xc38] sm:$0xff] }
 0x110   :  { %2466 = vmatpush1.bf16.msra.mxu0 %v2465_v25  ;;  %2818 = vmatpush1.bf16.msra.mxu1 %v2817_v59  ;;  %v2485_v25 = vpack.c.bf16 %v688_v49, %v684_v48  ;;  %v2837_v59 = vpack.c.bf16 %v690_v53, %v686_v52  ;;  %v724_v48 = vld [vmem:[#allocation5 + $0xc00] sm:$0xff]  ;;  %v726_v52 = vld [vmem:[#allocation5 + $0xc10] sm:$0xff] }
 0x111   :  { %2468 = vmatprep.subr.bf16.mxu0 %v2467_v62  ;;  %2820 = vmatprep.subr.bf16.mxu1 %v2819_v63  ;;  %v2487_v62 = vpack.c.bf16 %v697_v55, %v693_v54  ;;  %v2839_v63 = vpack.c.bf16 %v699_v57, %v695_v56  ;;  %v728_v49 = vld [vmem:[#allocation5 + $0xc20] sm:$0xff]  ;;  %v730_v53 = vld [vmem:[#allocation5 + $0xc30] sm:$0xff]  ;;  %v733_v54 = vld [vmem:[#allocation5 + $0xc48] sm:$0xff] }
 0x112   :  { %v737_v55 = vld [vmem:[#allocation5 + $0xc68] sm:$0xff]  ;;  %v735_v56 = vld [vmem:[#allocation5 + $0xc58] sm:$0xff] }
 0x113   :  { %v739_v57 = vld [vmem:[#allocation5 + $0xc78] sm:$0xff] }
 0x114   :  { %2470 = vmatpush1.bf16.msra.mxu0 %v2469_v6  ;;  %2822 = vmatpush1.bf16.msra.mxu1 %v2821_v7  ;;  %v2489_v6 = vpack.c.bf16 %v696_v61, %v692_v60  ;;  %v2841_v7 = vpack.c.bf16 %v698_v1, %v694_v0  ;;  %v2857_v60 = vpack.c.bf16 %v730_v53, %v726_v52  ;;  %v732_v61 = vld [vmem:[#allocation5 + $0xc40] sm:$0xff]  ;;  %v734_v1 = vld [vmem:[#allocation5 + $0xc50] sm:$0xff] }
 0x115   :  { %2472 = vmatprep.subr.bf16.mxu0 %v2471_v14  ;;  %2824 = vmatprep.subr.bf16.mxu1 %v2823_v15  ;;  %v2491_v14 = vpack.c.bf16 %v705_v3, %v701_v2  ;;  %v2843_v15 = vpack.c.bf16 %v707_v5, %v703_v4  ;;  %v2859_v0 = vpack.c.bf16 %v739_v57, %v735_v56  ;;  %v738_v2 = vld [vmem:[#allocation5 + $0xc70] sm:$0xff]  ;;  %v741_v3 = vld [vmem:[#allocation5 + $0xc88] sm:$0xff]  ;;  %v743_v5 = vld [vmem:[#allocation5 + $0xc98] sm:$0xff] }
 0x116   :  { %v745_v4 = vld [vmem:[#allocation5 + $0xca8] sm:$0xff]  ;;  %v766_v52 = vld [vmem:[#allocation5 + $0xd50] sm:$0xff]  ;;  %v775_v56 = vld [vmem:[#allocation5 + $0xd98] sm:$0xff] }
 0x117   :  { %v770_v53 = vld [vmem:[#allocation5 + $0xd70] sm:$0xff]  ;;  %v779_v57 = vld [vmem:[#allocation5 + $0xdb8] sm:$0xff] }
 0x118   :  { %2474 = vmatpush1.bf16.msra.mxu0 %v2473_v23  ;;  %2826 = vmatpush1.bf16.msra.mxu1 %v2825_v24  ;;  %v2493_v23 = vpack.c.bf16 %v704_v12, %v700_v9  ;;  %v2845_v24 = vpack.c.bf16 %v706_v17, %v702_v16  ;;  %v2861_v9 = vpack.c.bf16 %v738_v2, %v734_v1  ;;  %v740_v12 = vld [vmem:[#allocation5 + $0xc80] sm:$0xff]  ;;  %v742_v17 = vld [vmem:[#allocation5 + $0xc90] sm:$0xff] }
 0x119   :  { %2476 = vmatprep.subr.bf16.mxu0 %v2475_v28  ;;  %2828 = vmatprep.subr.bf16.mxu1 %v2827_v29  ;;  %v2495_v28 = vpack.c.bf16 %v713_v19, %v709_v18  ;;  %v2847_v29 = vpack.c.bf16 %v715_v22, %v711_v21  ;;  %v746_v18 = vld [vmem:[#allocation5 + $0xcb0] sm:$0xff]  ;;  %v749_v19 = vld [vmem:[#allocation5 + $0xcc8] sm:$0xff]  ;;  %v751_v22 = vld [vmem:[#allocation5 + $0xcd8] sm:$0xff] }
 0x11a   :  { %v753_v21 = vld [vmem:[#allocation5 + $0xce8] sm:$0xff]  ;;  %v774_v1 = vld [vmem:[#allocation5 + $0xd90] sm:$0xff] }
 0x11b   :  { %v778_v2 = vld [vmem:[#allocation5 + $0xdb0] sm:$0xff] }
 0x11c   :  { %2478 = vmatpush1.bf16.msra.mxu0 %v2477_v37  ;;  %2830 = vmatpush1.bf16.msra.mxu1 %v2829_v38  ;;  %v2497_v37 = vpack.c.bf16 %v712_v27, %v708_v26  ;;  %v2849_v38 = vpack.c.bf16 %v714_v31, %v710_v30  ;;  %v748_v26 = vld [vmem:[#allocation5 + $0xcc0] sm:$0xff]  ;;  %v750_v30 = vld [vmem:[#allocation5 + $0xcd0] sm:$0xff] }
 0x11d   :  { %2480 = vmatprep.subr.bf16.mxu0 %v2479_v41  ;;  %2832 = vmatprep.subr.bf16.mxu1 %v2831_v42  ;;  %v2499_v41 = vpack.c.bf16 %v721_v33, %v717_v32  ;;  %v2851_v42 = vpack.c.bf16 %v723_v36, %v719_v35  ;;  %v752_v27 = vld [vmem:[#allocation5 + $0xce0] sm:$0xff]  ;;  %v754_v31 = vld [vmem:[#allocation5 + $0xcf0] sm:$0xff]  ;;  %v757_v32 = vld [vmem:[#allocation5 + $0xd08] sm:$0xff] }
 0x11e   :  { %v761_v33 = vld [vmem:[#allocation5 + $0xd28] sm:$0xff]  ;;  %v759_v35 = vld [vmem:[#allocation5 + $0xd18] sm:$0xff] }
 0x11f   :  { %v763_v36 = vld [vmem:[#allocation5 + $0xd38] sm:$0xff] }
 0x120   :  { %2482 = vmatpush1.bf16.msra.mxu0 %v2481_v13  ;;  %2834 = vmatpush1.bf16.msra.mxu1 %v2833_v47  ;;  %v2501_v13 = vpack.c.bf16 %v720_v40, %v716_v39  ;;  %v2853_v47 = vpack.c.bf16 %v722_v44, %v718_v43  ;;  %v756_v39 = vld [vmem:[#allocation5 + $0xd00] sm:$0xff]  ;;  %v758_v43 = vld [vmem:[#allocation5 + $0xd10] sm:$0xff] }
 0x121   :  { %2484 = vmatprep.subr.bf16.mxu0 %v2483_v50  ;;  %2836 = vmatprep.subr.bf16.mxu1 %v2835_v51  ;;  %v2503_v50 = vpack.c.bf16 %v729_v46, %v725_v45  ;;  %v2855_v51 = vpack.c.bf16 %v731_v10, %v727_v8  ;;  %v760_v40 = vld [vmem:[#allocation5 + $0xd20] sm:$0xff]  ;;  %v762_v44 = vld [vmem:[#allocation5 + $0xd30] sm:$0xff]  ;;  %v765_v45 = vld [vmem:[#allocation5 + $0xd48] sm:$0xff] }
 0x122   :  { %v769_v46 = vld [vmem:[#allocation5 + $0xd68] sm:$0xff]  ;;  %v767_v8 = vld [vmem:[#allocation5 + $0xd58] sm:$0xff] }
 0x123   :  { %v771_v10 = vld [vmem:[#allocation5 + $0xd78] sm:$0xff] }
 0x124   :  { %2486 = vmatpush1.bf16.msra.mxu0 %v2485_v25  ;;  %2838 = vmatpush1.bf16.msra.mxu1 %v2837_v59  ;;  %v3458_v25 = vrot.slane %v3445_v34, %v3428_v11  ;;  %v2505_v59 = vpack.c.bf16 %v728_v49, %v724_v48  ;;  %v1119_v34 = vcombine.high %v3452_v58, %v3452_v58  ;;  %v755_v58 = vld [vmem:[#allocation5 + $0xcf8] sm:$0xff]  ;;  %v764_v48 = vld [vmem:[#allocation5 + $0xd40] sm:$0xff] }
 0x125   :  { %2488 = vmatprep.subr.bf16.mxu0 %v2487_v62  ;;  %2840 = vmatprep.subr.bf16.mxu1 %v2839_v63  ;;  %v736_v62 = vld [vmem:[#allocation5 + $0xc60] sm:$0xff]  ;;  %v2507_v63 = vpack.c.bf16 %v737_v55, %v733_v54  ;;  %v773_v54 = vld [vmem:[#allocation5 + $0xd88] sm:$0xff] }
 0x126   :  { %v768_v49 = vld [vmem:[#allocation5 + $0xd60] sm:$0xff]  ;;  %v777_v55 = vld [vmem:[#allocation5 + $0xda8] sm:$0xff] }
 0x128   :  { %2490 = vmatpush1.bf16.msra.mxu0 %v2489_v6  ;;  %2842 = vmatpush1.bf16.msra.mxu1 %v2841_v7  ;;  %v747_v6 = vld [vmem:[#allocation5 + $0xcb8] sm:$0xff]  ;;  %v2509_v7 = vpack.c.bf16 %v736_v62, %v732_v61  ;;  %v772_v61 = vld [vmem:[#allocation5 + $0xd80] sm:$0xff] }
 0x129   :  { %2492 = vmatprep.subr.bf16.mxu0 %v2491_v14  ;;  %2844 = vmatprep.subr.bf16.mxu1 %v2843_v15  ;;  %v744_v14 = vld [vmem:[#allocation5 + $0xca0] sm:$0xff]  ;;  %v2511_v15 = vpack.c.bf16 %v745_v4, %v741_v3  ;;  %v2863_v16 = vpack.c.bf16 %v747_v6, %v743_v5  ;;  %v781_v3 = vld [vmem:[#allocation5 + $0xdc8] sm:$0xff]  ;;  %v783_v5 = vld [vmem:[#allocation5 + $0xdd8] sm:$0xff] }
 0x12a   :  { %v776_v62 = vld [vmem:[#allocation5 + $0xda0] sm:$0xff]  ;;  %v785_v4 = vld [vmem:[#allocation5 + $0xde8] sm:$0xff]  ;;  %v787_v6 = vld [vmem:[#allocation5 + $0xdf8] sm:$0xff] }
 0x12c   :  { %2494 = vmatpush1.bf16.msra.mxu0 %v2493_v23  ;;  %2846 = vmatpush1.bf16.msra.mxu1 %v2845_v24  ;;  %v2513_v23 = vpack.c.bf16 %v744_v14, %v740_v12  ;;  %v2865_v24 = vpack.c.bf16 %v746_v18, %v742_v17  ;;  %v784_v12 = vld [vmem:[#allocation5 + $0xde0] sm:$0xff]  ;;  %v2531_v14 = vpack.c.bf16 %v785_v4, %v781_v3  ;;  %v786_v17 = vld [vmem:[#allocation5 + $0xdf0] sm:$0xff]  ;;  %v789_v18 = vld [vmem:[#allocation5 + $0xe08] sm:$0xff] }
 0x12d   :  { %2496 = vmatprep.subr.bf16.mxu0 %v2495_v28  ;;  %2848 = vmatprep.subr.bf16.mxu1 %v2847_v29  ;;  %v2515_v28 = vpack.c.bf16 %v753_v21, %v749_v19  ;;  %v2867_v29 = vpack.c.bf16 %v755_v58, %v751_v22  ;;  %v793_v19 = vld [vmem:[#allocation5 + $0xe28] sm:$0xff]  ;;  %v791_v21 = vld [vmem:[#allocation5 + $0xe18] sm:$0xff] }
 0x12e   :  { %v795_v22 = vld [vmem:[#allocation5 + $0xe38] sm:$0xff] }
 0x130   :  { %2498 = vmatpush1.bf16.msra.mxu0 %v2497_v37  ;;  %2850 = vmatpush1.bf16.msra.mxu1 %v2849_v38  ;;  %v2517_v37 = vpack.c.bf16 %v752_v27, %v748_v26  ;;  %v2869_v38 = vpack.c.bf16 %v754_v31, %v750_v30  ;;  %v792_v26 = vld [vmem:[#allocation5 + $0xe20] sm:$0xff]  ;;  %v790_v27 = vld [vmem:[#allocation5 + $0xe10] sm:$0xff]  ;;  %v797_v31 = vld [vmem:[#allocation5 + $0xe48] sm:$0xff] }
 0x131   :  { %2500 = vmatprep.subr.bf16.mxu0 %v2499_v41  ;;  %2852 = vmatprep.subr.bf16.mxu1 %v2851_v42  ;;  %v2519_v41 = vpack.c.bf16 %v761_v33, %v757_v32  ;;  %v2871_v42 = vpack.c.bf16 %v763_v36, %v759_v35  ;;  %v794_v30 = vld [vmem:[#allocation5 + $0xe30] sm:$0xff]  ;;  %v801_v32 = vld [vmem:[#allocation5 + $0xe68] sm:$0xff]  ;;  %v799_v33 = vld [vmem:[#allocation5 + $0xe58] sm:$0xff] }
 0x132   :  { %v803_v35 = vld [vmem:[#allocation5 + $0xe78] sm:$0xff]  ;;  %v796_v36 = vld [vmem:[#allocation5 + $0xe40] sm:$0xff] }
 0x134   :  { %2502 = vmatpush1.bf16.msra.mxu0 %v2501_v13  ;;  %2854 = vmatpush1.bf16.msra.mxu1 %v2853_v47  ;;  %v2521_v13 = vpack.c.bf16 %v760_v40, %v756_v39  ;;  %v2873_v47 = vpack.c.bf16 %v762_v44, %v758_v43  ;;  %v802_v39 = vld [vmem:[#allocation5 + $0xe70] sm:$0xff]  ;;  %v809_v43 = vld [vmem:[#allocation5 + $0xea8] sm:$0xff]  ;;  %v807_v44 = vld [vmem:[#allocation5 + $0xe98] sm:$0xff] }
 0x135   :  { %2504 = vmatprep.subr.bf16.mxu0 %v2503_v50  ;;  %2856 = vmatprep.subr.bf16.mxu1 %v2855_v51  ;;  %v2523_v50 = vpack.c.bf16 %v769_v46, %v765_v45  ;;  %v2875_v51 = vpack.c.bf16 %v771_v10, %v767_v8  ;;  %v811_v45 = vld [vmem:[#allocation5 + $0xeb8] sm:$0xff]  ;;  %v89_v46 = vld [vmem:[#allocation2 + $0x40] ss:$8 sm:$0x7]  ;;  %v2539_v10 = vpack.c.bf16 %v801_v32, %v797_v31 }
 0x136   :  { %v95_v8 = vld [vmem:[#allocation2 + $0xf0] ss:$8 sm:$0x7]  ;;  %v2895_v4 = vpack.c.bf16 %v811_v45, %v807_v44  ;;  %v833_v44 = vld [vmem:[#allocation5 + $0xf68] sm:$0xff] }
 0x137   :  { %1362 = vmatmul.mubr.f32.vlgmr.msra.gmra.mrb[0].mxu0 %v3458_v25  ;;  %1788 = vmatmul.mubr.f32.vlgmr.msra.gmra.mrb[0].mxu1 %v3458_v25  ;;  %v827_v31 = vld [vmem:[#allocation5 + $0xf38] sm:$0xff]  ;;  %v820_v32 = vld [vmem:[#allocation5 + $0xf00] sm:$0xff] }
 0x138   :  { %2506 = vmatpush1.bf16.msra.mxu0 %v2505_v59  ;;  %2858 = vmatpush1.bf16.msra.mxu1 %v2857_v60  ;;  %v2525_v59 = vpack.c.bf16 %v768_v49, %v764_v48  ;;  %v2877_v60 = vpack.c.bf16 %v770_v53, %v766_v52  ;;  %v111_v48 = vld [vmem:[#allocation2 + $0xf1] ss:$8 sm:$0x7]  ;;  %v121_v53 = vld [vmem:[#allocation2 + $0x42] ss:$8 sm:$0x7] }
 0x139   :  { %2508 = vmatprep.subr.bf16.mxu0 %v2507_v63  ;;  %2860 = vmatprep.subr.bf16.mxu1 %v2859_v0  ;;  %v2527_v63 = vpack.c.bf16 %v777_v55, %v773_v54  ;;  %v2879_v0 = vpack.c.bf16 %v779_v57, %v775_v56  ;;  %v804_v49 = vld [vmem:[#allocation5 + $0xe80] sm:$0xff]  ;;  %v115_v52 = vadd.f32 %v111_v48, %v95_v8  ;;  %v806_v56 = vld [vmem:[#allocation5 + $0xe90] sm:$0xff]  ;;  %v831_v45 = vld [vmem:[#allocation5 + $0xf58] sm:$0xff] }
 0x13a   :  { %1432 = vmatprep.mubr.f32.mxu0 %v1119_v34  ;;  %1858 = vmatprep.mubr.f32.mxu1 %v1119_v34  ;;  %v2529_v34 = vpack.c.bf16 %v776_v62, %v772_v61  ;;  %v127_v54 = vld [vmem:[#allocation2 + $0xf2] ss:$8 sm:$0x7]  ;;  %v813_v62 = vld [vmem:[#allocation5 + $0xec8] sm:$0xff] }
 0x13b   :  { %v810_v57 = vld [vmem:[#allocation5 + $0xeb0] sm:$0xff] }
 0x13c   :  { %2510 = vmatpush1.bf16.msra.mxu0 %v2509_v7  ;;  %2862 = vmatpush1.bf16.msra.mxu1 %v2861_v9  ;;  %v2881_v7 = vpack.c.bf16 %v778_v2, %v774_v1  ;;  %v780_v9 = vld [vmem:[#allocation5 + $0xdc0] sm:$0xff]  ;;  %v131_v2 = vadd.f32 %v127_v54, %v115_v52  ;;  %v223_v48 = vld [vmem:[#allocation2 + $0x148] ss:$8 sm:$0x7] }
 0x13d   :  { %2512 = vmatprep.subr.bf16.mxu0 %v2511_v15  ;;  %2864 = vmatprep.subr.bf16.mxu1 %v2863_v16  ;;  %v2883_v15 = vpack.c.bf16 %v787_v6, %v783_v5  ;;  %v782_v16 = vld [vmem:[#allocation5 + $0xdd0] sm:$0xff]  ;;  %v2533_v58 = vpack.c.bf16 %v784_v12, %v780_v9  ;;  %v816_v9 = vld [vmem:[#allocation5 + $0xee0] sm:$0xff] }
 0x13e   :  { %v153_v5 = vld [vmem:[#allocation2 + $0x44] ss:$8 sm:$0x7] }
 0x13f   :  { %v159_v6 = vld [vmem:[#allocation2 + $0xf4] ss:$8 sm:$0x7] }
 0x140   :  { %2514 = vmatpush1.bf16.msra.mxu0 %v2513_v23  ;;  %2866 = vmatpush1.bf16.msra.mxu1 %v2865_v24  ;;  %v2885_v23 = vpack.c.bf16 %v786_v17, %v782_v16  ;;  %v788_v24 = vld [vmem:[#allocation5 + $0xe00] sm:$0xff]  ;;  %v814_v16 = vld [vmem:[#allocation5 + $0xed0] sm:$0xff] }
 0x141   :  { %2516 = vmatprep.subr.bf16.mxu0 %v2515_v28  ;;  %2868 = vmatprep.subr.bf16.mxu1 %v2867_v29  ;;  %v2535_v28 = vpack.c.bf16 %v793_v19, %v789_v18  ;;  %v2887_v29 = vpack.c.bf16 %v795_v22, %v791_v21  ;;  %v2537_v40 = vpack.c.bf16 %v792_v26, %v788_v24  ;;  %v818_v17 = vld [vmem:[#allocation5 + $0xef0] sm:$0xff]  ;;  %v821_v22 = vld [vmem:[#allocation5 + $0xf08] sm:$0xff] }
 0x142   :  { %v169_v18 = vld [vmem:[#allocation2 + $0x45] ss:$8 sm:$0x7]  ;;  %v2897_v21 = vpack.c.bf16 %v810_v57, %v806_v56  ;;  %v233_v57 = vld [vmem:[#allocation2 + $0x99] ss:$8 sm:$0x7] }
 0x143   :  { %v175_v19 = vld [vmem:[#allocation2 + $0xf5] ss:$8 sm:$0x7] }
 0x144   :  { %2518 = vmatpush1.bf16.msra.mxu0 %v2517_v37  ;;  %2870 = vmatpush1.bf16.msra.mxu1 %v2869_v38  ;;  %v800_v37 = vld [vmem:[#allocation5 + $0xe60] sm:$0xff]  ;;  %v798_v38 = vld [vmem:[#allocation5 + $0xe50] sm:$0xff] }
 0x145   :  { %2520 = vmatprep.subr.bf16.mxu0 %v2519_v41  ;;  %2872 = vmatprep.subr.bf16.mxu1 %v2871_v42  ;;  %v2889_v41 = vpack.c.bf16 %v794_v30, %v790_v27  ;;  %v805_v42 = vld [vmem:[#allocation5 + $0xe88] sm:$0xff]  ;;  %v2541_v55 = vpack.c.bf16 %v800_v37, %v796_v36  ;;  %v2893_v61 = vpack.c.bf16 %v802_v39, %v798_v38  ;;  %v191_v30 = vld [vmem:[#allocation2 + $0xf6] ss:$8 sm:$0x7] }
 0x146   :  { %v2543_v3 = vpack.c.bf16 %v809_v43, %v805_v42  ;;  %v822_v38 = vld [vmem:[#allocation5 + $0xf10] sm:$0xff]  ;;  %v2901_v42 = vpack.c.bf16 %v818_v17, %v814_v16  ;;  %v829_v43 = vld [vmem:[#allocation5 + $0xf48] sm:$0xff] }
 0x147   :  { %v826_v39 = vld [vmem:[#allocation5 + $0xf30] sm:$0xff]  ;;  %v265_v17 = vld [vmem:[#allocation2 + $0x9b] ss:$8 sm:$0x7] }
 0x148   :  { %2522 = vmatpush1.bf16.msra.mxu0 %v2521_v13  ;;  %2874 = vmatpush1.bf16.msra.mxu1 %v2873_v47  ;;  %v2891_v13 = vpack.c.bf16 %v803_v35, %v799_v33  ;;  %v105_v47 = vld [vmem:[#allocation2 + $0x41] ss:$8 sm:$0x7] }
 0x149   :  { %2524 = vmatprep.subr.bf16.mxu0 %v2523_v50  ;;  %2876 = vmatprep.subr.bf16.mxu1 %v2875_v51  ;;  %v808_v50 = vld [vmem:[#allocation5 + $0xea0] sm:$0xff]  ;;  %v113_v51 = vadd.f32 %v105_v47, %v89_v46  ;;  %v834_v56 = vld [vmem:[#allocation5 + $0xf70] sm:$0xff] }
 0x14a   :  { %v824_v33 = vld [vmem:[#allocation5 + $0xf20] sm:$0xff]  ;;  %v842_v16 = vld [vmem:[#allocation5 + $0xfb0] sm:$0xff] }
 0x14b   :  { %v129_v1 = vadd.f32 %v121_v53, %v113_v51  ;;  %v217_v47 = vld [vmem:[#allocation2 + $0x98] ss:$8 sm:$0x7]  ;;  %v2553_v54 = vpack.c.bf16 %v824_v33, %v820_v32 }
 0x14c   :  { %2526 = vmatpush1.bf16.msra.mxu0 %v2525_v59  ;;  %2878 = vmatpush1.bf16.msra.mxu1 %v2877_v60  ;;  %v137_v59 = vld [vmem:[#allocation2 + $0x43] ss:$8 sm:$0x7] }
 0x14d   :  { %2528 = vmatprep.subr.bf16.mxu0 %v2527_v63  ;;  %2880 = vmatprep.subr.bf16.mxu1 %v2879_v0  ;;  %v143_v60 = vld [vmem:[#allocation2 + $0xf3] ss:$8 sm:$0x7]  ;;  %v817_v63 = vld [vmem:[#allocation5 + $0xee8] sm:$0xff]  ;;  %v145_v12 = vadd.f32 %v137_v59, %v129_v1 }
 0x14e   :  { %v815_v0 = vld [vmem:[#allocation5 + $0xed8] sm:$0xff]  ;;  %v2547_v27 = vpack.c.bf16 %v817_v63, %v813_v62  ;;  %v832_v51 = vld [vmem:[#allocation5 + $0xf60] sm:$0xff]  ;;  %v841_v62 = vld [vmem:[#allocation5 + $0xfa8] sm:$0xff] }
 0x14f   :  { %v161_v24 = vadd.f32 %v153_v5, %v145_v12  ;;  %v239_v59 = vld [vmem:[#allocation2 + $0x149] ss:$8 sm:$0x7]  ;;  %v255_v5 = vld [vmem:[#allocation2 + $0x14a] ss:$8 sm:$0x7] }
 0x150   :  { %2530 = vmatpush1.bf16.msra.mxu0 %v2529_v34  ;;  %2882 = vmatpush1.bf16.msra.mxu1 %v2881_v7  ;;  %v819_v34 = vld [vmem:[#allocation5 + $0xef8] sm:$0xff]  ;;  %v812_v7 = vld [vmem:[#allocation5 + $0xec0] sm:$0xff] }
 0x151   :  { %2532 = vmatprep.subr.bf16.mxu0 %v2531_v14  ;;  %2884 = vmatprep.subr.bf16.mxu1 %v2883_v15  ;;  %v147_v14 = vadd.f32 %v143_v60, %v131_v2  ;;  %v2545_v15 = vpack.c.bf16 %v808_v50, %v804_v49  ;;  %v177_v35 = vadd.f32 %v169_v18, %v161_v24  ;;  %v835_v49 = vld [vmem:[#allocation5 + $0xf78] sm:$0xff]  ;;  %v828_v50 = vld [vmem:[#allocation5 + $0xf40] sm:$0xff] }
 0x152   :  { %v2549_v37 = vpack.c.bf16 %v816_v9, %v812_v7  ;;  %v2905_v60 = vpack.c.bf16 %v826_v39, %v822_v38  ;;  %v839_v63 = vld [vmem:[#allocation5 + $0xf98] sm:$0xff]  ;;  %v2555_v2 = vpack.c.bf16 %v833_v44, %v829_v43  ;;  %v840_v7 = vld [vmem:[#allocation5 + $0xfa0] sm:$0xff] }
 0x153   :  { %v163_v26 = vadd.f32 %v159_v6, %v147_v14  ;;  %v843_v6 = vld [vmem:[#allocation5 + $0xfb8] sm:$0xff]  ;;  %v2557_v14 = vpack.c.bf16 %v832_v51, %v828_v50  ;;  %v848_v32 = vld [vmem:[#allocation5 + $0xfe0] sm:$0xff] }
 0x154   :  { %2534 = vmatpush1.bf16.msra.mxu0 %v2533_v58  ;;  %2886 = vmatpush1.bf16.msra.mxu1 %v2885_v23  ;;  %v825_v58 = vld [vmem:[#allocation5 + $0xf28] sm:$0xff]  ;;  %v823_v23 = vld [vmem:[#allocation5 + $0xf18] sm:$0xff] }
 0x155   :  { %2536 = vmatprep.subr.bf16.mxu0 %v2535_v28  ;;  %2888 = vmatprep.subr.bf16.mxu1 %v2887_v29  ;;  %v2899_v28 = vpack.c.bf16 %v819_v34, %v815_v0  ;;  %v185_v29 = vld [vmem:[#allocation2 + $0x46] ss:$8 sm:$0x7]  ;;  %v179_v36 = vadd.f32 %v175_v19, %v163_v26  ;;  %v271_v18 = vld [vmem:[#allocation2 + $0x14b] ss:$8 sm:$0x7] }
 0x156   :  { %v193_v46 = vadd.f32 %v185_v29, %v177_v35  ;;  %v836_v34 = vld [vmem:[#allocation5 + $0xf80] sm:$0xff]  ;;  %v287_v29 = vld [vmem:[#allocation2 + $0x14c] ss:$8 sm:$0x7] }
 0x157   :  { %v195_v8 = vadd.f32 %v191_v30, %v179_v36  ;;  %v851_v30 = vld [vmem:[#allocation5 + $0xff8] sm:$0xff]  ;;  %v2561_v36 = vpack.c.bf16 %v840_v7, %v836_v34 }
 0x158   :  { %2538 = vmatpush1.bf16.msra.mxu0 %v2537_v40  ;;  %2890 = vmatpush1.bf16.msra.mxu1 %v2889_v41  ;;  %v201_v40 = vld [vmem:[#allocation2 + $0x47] ss:$8 sm:$0x7]  ;;  %v303_v38 = vld [vmem:[#allocation2 + $0x14d] ss:$8 sm:$0x7] }
 0x159   :  { %2540 = vmatprep.subr.bf16.mxu0 %v2539_v10  ;;  %2892 = vmatprep.subr.bf16.mxu1 %v2891_v13  ;;  %v207_v41 = vld [vmem:[#allocation2 + $0xf7] ss:$8 sm:$0x7]  ;;  %v2551_v10 = vpack.c.bf16 %v825_v58, %v821_v22  ;;  %v2903_v13 = vpack.c.bf16 %v827_v31, %v823_v23  ;;  %v209_v52 = vadd.f32 %v201_v40, %v193_v46  ;;  %v849_v22 = vld [vmem:[#allocation5 + $0xfe8] sm:$0xff] }
 0x15a   :  { %v211_v53 = vadd.f32 %v207_v41, %v195_v8  ;;  %v847_v58 = vld [vmem:[#allocation5 + $0xfd8] sm:$0xff]  ;;  %v844_v31 = vld [vmem:[#allocation5 + $0xfc0] sm:$0xff]  ;;  %v846_v40 = vld [vmem:[#allocation5 + $0xfd0] sm:$0xff] }
 0x15b   :  { %v225_v0 = vadd.f32 %v217_v47, %v209_v52  ;;  %v850_v41 = vld [vmem:[#allocation5 + $0xff0] sm:$0xff]  ;;  %v2915_v46 = vpack.c.bf16 %v851_v30, %v847_v58  ;;  %v313_v8 = vld [vmem:[#allocation2 + $0x9e] ss:$8 sm:$0x7]  ;;  %v2565_v51 = vpack.c.bf16 %v848_v32, %v844_v31 }
 0x15c   :  { %2542 = vmatpush1.bf16.msra.mxu0 %v2541_v55  ;;  %2894 = vmatpush1.bf16.msra.mxu1 %v2893_v61  ;;  %v830_v55 = vld [vmem:[#allocation5 + $0xf50] sm:$0xff]  ;;  %v837_v61 = vld [vmem:[#allocation5 + $0xf88] sm:$0xff]  ;;  %v227_v1 = vadd.f32 %v223_v48, %v211_v53  ;;  %v855_v47 = vld [vmem:[#allocation5 + $0x1018] sm:$0xff] }
 0x15d   :  { %2544 = vmatprep.subr.bf16.mxu0 %v2543_v3  ;;  %2896 = vmatprep.subr.bf16.mxu1 %v2895_v4  ;;  %v2907_v3 = vpack.c.bf16 %v835_v49, %v831_v45  ;;  %v249_v4 = vld [vmem:[#allocation2 + $0x9a] ss:$8 sm:$0x7]  ;;  %v241_v9 = vadd.f32 %v233_v57, %v225_v0  ;;  %v2909_v19 = vpack.c.bf16 %v834_v56, %v830_v55  ;;  %v329_v52 = vld [vmem:[#allocation2 + $0x9f] ss:$8 sm:$0x7] }
 0x15e   :  { %v243_v12 = vadd.f32 %v239_v59, %v227_v1  ;;  %v2559_v26 = vpack.c.bf16 %v841_v62, %v837_v61  ;;  %v859_v48 = vld [vmem:[#allocation5 + $0x1038] sm:$0xff]  ;;  %v852_v55 = vld [vmem:[#allocation5 + $0x1000] sm:$0xff]  ;;  %v854_v62 = vld [vmem:[#allocation5 + $0x1010] sm:$0xff] }
 0x15f   :  { %v257_v23 = vadd.f32 %v249_v4, %v241_v9  ;;  %v335_v53 = vld [vmem:[#allocation2 + $0x14f] ss:$8 sm:$0x7]  ;;  %v856_v56 = vld [vmem:[#allocation5 + $0x1020] sm:$0xff]  ;;  %v2919_v61 = vpack.c.bf16 %v859_v48, %v855_v47 }
 0x160   :  { %2546 = vmatpush1.bf16.msra.mxu0 %v2545_v15  ;;  %2898 = vmatpush1.bf16.msra.mxu1 %v2897_v21  ;;  %v838_v15 = vld [vmem:[#allocation5 + $0xf90] sm:$0xff]  ;;  %v845_v21 = vld [vmem:[#allocation5 + $0xfc8] sm:$0xff]  ;;  %v259_v24 = vadd.f32 %v255_v5, %v243_v12  ;;  %v2569_v34 = vpack.c.bf16 %v856_v56, %v852_v55  ;;  %v860_v9 = vld [vmem:[#allocation5 + $0x1040] sm:$0xff] }
 0x161   :  { %2548 = vmatprep.subr.bf16.mxu0 %v2547_v27  ;;  %2900 = vmatprep.subr.bf16.mxu1 %v2899_v28  ;;  %v2911_v27 = vpack.c.bf16 %v843_v6, %v839_v63  ;;  %v281_v28 = vld [vmem:[#allocation2 + $0x9c] ss:$8 sm:$0x7]  ;;  %v273_v33 = vadd.f32 %v265_v17, %v257_v23  ;;  %v2913_v39 = vpack.c.bf16 %v842_v16, %v838_v15  ;;  %v858_v63 = vld [vmem:[#allocation5 + $0x1030] sm:$0xff] }
 0x162   :  { %v275_v35 = vadd.f32 %v271_v18, %v259_v24  ;;  %v2563_v45 = vpack.c.bf16 %v849_v22, %v845_v21  ;;  %v861_v0 = vld [vmem:[#allocation5 + $0x1048] sm:$0xff]  ;;  %v1117_v6 = vcombine.high %v3458_v25, %v3458_v25  ;;  %v2921_v7 = vpack.c.bf16 %v858_v63, %v854_v62  ;;  %v864_v12 = vld [vmem:[#allocation5 + $0x1060] sm:$0xff]  ;;  %v862_v17 = vld [vmem:[#allocation5 + $0x1050] sm:$0xff] }
 0x163   :  { %v289_v43 = vadd.f32 %v281_v28, %v273_v33  ;;  %v865_v1 = vld [vmem:[#allocation5 + $0x1068] sm:$0xff]  ;;  %v866_v18 = vld [vmem:[#allocation5 + $0x1070] sm:$0xff]  ;;  %v871_v22 = vld [vmem:[#allocation5 + $0x1098] sm:$0xff]  ;;  %v2573_v25 = vpack.c.bf16 %v864_v12, %v860_v9 }
 0x164   :  { %2550 = vmatpush1.bf16.msra.mxu0 %v2549_v37  ;;  %2902 = vmatpush1.bf16.msra.mxu1 %v2901_v42  ;;  %v297_v37 = vld [vmem:[#allocation2 + $0x9d] ss:$8 sm:$0x7]  ;;  %v291_v44 = vadd.f32 %v287_v29, %v275_v35  ;;  %v2571_v15 = vpack.c.bf16 %v865_v1, %v861_v0  ;;  %v2925_v24 = vpack.c.bf16 %v866_v18, %v862_v17  ;;  %v870_v31 = vld [vmem:[#allocation5 + $0x1090] sm:$0xff] }
 0x165   :  { %2552 = vmatprep.subr.bf16.mxu0 %v2551_v10  ;;  %2904 = vmatprep.subr.bf16.mxu1 %v2903_v13  ;;  %v853_v42 = vld [vmem:[#allocation5 + $0x1008] sm:$0xff]  ;;  %v305_v49 = vadd.f32 %v297_v37, %v289_v43  ;;  %v875_v58 = vld [vmem:[#allocation5 + $0x10b8] sm:$0xff]  ;;  %v874_v32 = vld [vmem:[#allocation5 + $0x10b0] sm:$0xff] }
 0x166   :  { %v319_v10 = vld [vmem:[#allocation2 + $0x14e] ss:$8 sm:$0x7]  ;;  %v307_v50 = vadd.f32 %v303_v38, %v291_v44  ;;  %v2927_v30 = vpack.c.bf16 %v875_v58, %v871_v22  ;;  %v892_v63 = vld [vmem:[#allocation5 + $0x1140] sm:$0xff] }
 0x167   :  { %v857_v13 = vld [vmem:[#allocation5 + $0x1028] sm:$0xff]  ;;  %v321_v57 = vadd.f32 %v313_v8, %v305_v49  ;;  %v883_v37 = vld [vmem:[#allocation5 + $0x10f8] sm:$0xff]  ;;  %v890_v55 = vld [vmem:[#allocation5 + $0x1130] sm:$0xff] }
 0x168   :  { %2554 = vmatpush1.bf16.msra.mxu0 %v2553_v54  ;;  %2906 = vmatpush1.bf16.msra.mxu1 %v2905_v60  ;;  %v2917_v54 = vpack.c.bf16 %v850_v41, %v846_v40  ;;  %v323_v59 = vadd.f32 %v319_v10, %v307_v50  ;;  %v2567_v60 = vpack.c.bf16 %v857_v13, %v853_v42  ;;  %v873_v21 = vld [vmem:[#allocation5 + $0x10a8] sm:$0xff]  ;;  %v876_v41 = vld [vmem:[#allocation5 + $0x10c0] sm:$0xff]  ;;  %v887_v13 = vld [vmem:[#allocation5 + $0x1118] sm:$0xff] }
 0x169   :  { %2556 = vmatprep.subr.bf16.mxu0 %v2555_v2  ;;  %2908 = vmatprep.subr.bf16.mxu1 %v2907_v3  ;;  %v863_v2 = vld [vmem:[#allocation5 + $0x1058] sm:$0xff]  ;;  %v337_v4 = vadd.f32 %v329_v52, %v321_v57  ;;  %v877_v33 = vld [vmem:[#allocation5 + $0x10c8] sm:$0xff]  ;;  %v2929_v40 = vpack.c.bf16 %v874_v32, %v870_v31  ;;  %v880_v42 = vld [vmem:[#allocation5 + $0x10e0] sm:$0xff] }
 0x16a   :  { %v867_v3 = vld [vmem:[#allocation5 + $0x1078] sm:$0xff]  ;;  %v339_v5 = vadd.f32 %v335_v53, %v323_v59  ;;  %v881_v35 = vld [vmem:[#allocation5 + $0x10e8] sm:$0xff]  ;;  %v2581_v48 = vpack.c.bf16 %v880_v42, %v876_v41  ;;  %v884_v50 = vld [vmem:[#allocation5 + $0x1100] sm:$0xff] }
 0x16b   :  { %v2923_v16 = vpack.c.bf16 %v867_v3, %v863_v2  ;;  %v2579_v43 = vpack.c.bf16 %v881_v35, %v877_v33  ;;  %v885_v8 = vld [vmem:[#allocation5 + $0x1108] sm:$0xff]  ;;  %v891_v47 = vld [vmem:[#allocation5 + $0x1138] sm:$0xff]  ;;  %v896_v0 = vld [vmem:[#allocation5 + $0x1160] sm:$0xff] }
 0x16c   :  { %2558 = vmatpush1.bf16.msra.mxu0 %v2557_v14  ;;  %2910 = vmatpush1.bf16.msra.mxu1 %v2909_v19  ;;  %v1120_v14 = vcombine.low %v337_v4, %v339_v5  ;;  %v869_v19 = vld [vmem:[#allocation5 + $0x1088] sm:$0xff]  ;;  %v2935_v53 = vpack.c.bf16 %v891_v47, %v887_v13  ;;  %v895_v59 = vld [vmem:[#allocation5 + $0x1158] sm:$0xff]  ;;  %v894_v3 = vld [vmem:[#allocation5 + $0x1150] sm:$0xff]  ;;  %v2589_v9 = vpack.c.bf16 %v896_v0, %v892_v63 }
 0x16d   :  { %2560 = vmatprep.subr.bf16.mxu0 %v2559_v26  ;;  %2912 = vmatprep.subr.bf16.mxu1 %v2911_v27  ;;  %v868_v26 = vld [vmem:[#allocation5 + $0x1080] sm:$0xff]  ;;  %v2575_v29 = vpack.c.bf16 %v873_v21, %v869_v19  ;;  %v889_v10 = vld [vmem:[#allocation5 + $0x1128] sm:$0xff]  ;;  %v898_v4 = vld [vmem:[#allocation5 + $0x1170] sm:$0xff] }
 0x16e   :  { %v3467_v23 = vrot.slane %v1120_v14, %v3428_v11  ;;  %v872_v27 = vld [vmem:[#allocation5 + $0x10a0] sm:$0xff]  ;;  %v2583_v52 = vpack.c.bf16 %v889_v10, %v885_v8  ;;  %v893_v56 = vld [vmem:[#allocation5 + $0x1148] sm:$0xff]  ;;  %v2941_v12 = vpack.c.bf16 %v898_v4, %v894_v3  ;;  %v902_v18 = vld [vmem:[#allocation5 + $0x1190] sm:$0xff] }
 0x16f   :  { %v897_v57 = vld [vmem:[#allocation5 + $0x1168] sm:$0xff]  ;;  %v900_v14 = vld [vmem:[#allocation5 + $0x1180] sm:$0xff]  ;;  %v906_v19 = vld [vmem:[#allocation5 + $0x11b0] sm:$0xff] }
 0x170   :  { %2562 = vmatpush1.bf16.msra.mxu0 %v2561_v36  ;;  %2914 = vmatpush1.bf16.msra.mxu1 %v2913_v39  ;;  %v1128_v28 = vcombine.high %v3467_v23, %v3467_v23  ;;  %v879_v36 = vld [vmem:[#allocation5 + $0x10d8] sm:$0xff]  ;;  %v2577_v39 = vpack.c.bf16 %v872_v27, %v868_v26  ;;  %v2587_v1 = vpack.c.bf16 %v897_v57, %v893_v56  ;;  %v901_v5 = vld [vmem:[#allocation5 + $0x1188] sm:$0xff]  ;;  %v908_v27 = vld [vmem:[#allocation5 + $0x11c0] sm:$0xff] }
 0x171   :  { %2564 = vmatprep.subr.bf16.mxu0 %v2563_v45  ;;  %2916 = vmatprep.subr.bf16.mxu1 %v2915_v46  ;;  %v2931_v44 = vpack.c.bf16 %v883_v37, %v879_v36  ;;  %v878_v45 = vld [vmem:[#allocation5 + $0x10d0] sm:$0xff]  ;;  %v909_v21 = vld [vmem:[#allocation5 + $0x11c8] sm:$0xff]  ;;  %v911_v58 = vld [vmem:[#allocation5 + $0x11d8] sm:$0xff]  ;;  %v2945_v26 = vpack.c.bf16 %v906_v19, %v902_v18 }
 0x172   :  { %v1142_v38 = vrot.slane %v1128_v28, %v3428_v11  ;;  %v882_v46 = vld [vmem:[#allocation5 + $0x10f0] sm:$0xff]  ;;  %v913_v22 = vld [vmem:[#allocation5 + $0x11e8] sm:$0xff]  ;;  %v912_v28 = vld [vmem:[#allocation5 + $0x11e0] sm:$0xff] }
 0x173   :  { %v2933_v49 = vpack.c.bf16 %v882_v46, %v878_v45  ;;  %v910_v31 = vld [vmem:[#allocation5 + $0x11d0] sm:$0xff]  ;;  %v917_v33 = vld [vmem:[#allocation5 + $0x1208] sm:$0xff]  ;;  %v919_v36 = vld [vmem:[#allocation5 + $0x1218] sm:$0xff] }
 0x174   :  { %2566 = vmatpush1.bf16.msra.mxu0 %v2565_v51  ;;  %2918 = vmatpush1.bf16.msra.mxu1 %v2917_v54  ;;  %v888_v51 = vld [vmem:[#allocation5 + $0x1120] sm:$0xff]  ;;  %v886_v54 = vld [vmem:[#allocation5 + $0x1110] sm:$0xff]  ;;  %v921_v35 = vld [vmem:[#allocation5 + $0x1228] sm:$0xff] }
 0x175   :  { %2568 = vmatprep.subr.bf16.mxu0 %v2567_v60  ;;  %2920 = vmatprep.subr.bf16.mxu1 %v2919_v61  ;;  %v899_v60 = vld [vmem:[#allocation5 + $0x1178] sm:$0xff]  ;;  %v2585_v61 = vpack.c.bf16 %v888_v51, %v884_v50  ;;  %v2937_v62 = vpack.c.bf16 %v890_v55, %v886_v54  ;;  %v914_v32 = vld [vmem:[#allocation5 + $0x11f0] sm:$0xff]  ;;  %v920_v41 = vld [vmem:[#allocation5 + $0x1220] sm:$0xff]  ;;  %v2599_v42 = vpack.c.bf16 %v921_v35, %v917_v33 }
 0x176   :  { %v2939_v2 = vpack.c.bf16 %v899_v60, %v895_v59  ;;  %v923_v37 = vld [vmem:[#allocation5 + $0x1238] sm:$0xff]  ;;  %v922_v45 = vld [vmem:[#allocation5 + $0x1230] sm:$0xff]  ;;  %v925_v46 = vld [vmem:[#allocation5 + $0x1248] sm:$0xff] }
 0x177   :  { %1433 = vmatmul.mubr.f32.vlgmr.msra.gmra.mrb[0].mxu0 %v1117_v6  ;;  %1859 = vmatmul.mubr.f32.vlgmr.msra.gmra.mrb[0].mxu1 %v1117_v6  ;;  %v905_v6 = vld [vmem:[#allocation5 + $0x11a8] sm:$0xff]  ;;  %v927_v10 = vld [vmem:[#allocation5 + $0x1258] sm:$0xff]  ;;  %v928_v50 = vld [vmem:[#allocation5 + $0x1260] sm:$0xff] }
 0x178   :  { %2570 = vmatpush1.bf16.msra.mxu0 %v2569_v34  ;;  %2922 = vmatpush1.bf16.msra.mxu1 %v2921_v7  ;;  %v903_v34 = vld [vmem:[#allocation5 + $0x1198] sm:$0xff]  ;;  %v929_v8 = vld [vmem:[#allocation5 + $0x1268] sm:$0xff]  ;;  %v930_v54 = vld [vmem:[#allocation5 + $0x1270] sm:$0xff] }
 0x179   :  { %2572 = vmatprep.subr.bf16.mxu0 %v2571_v15  ;;  %2924 = vmatprep.subr.bf16.mxu1 %v2923_v16  ;;  %v907_v7 = vld [vmem:[#allocation5 + $0x11b8] sm:$0xff]  ;;  %v904_v15 = vld [vmem:[#allocation5 + $0x11a0] sm:$0xff]  ;;  %v2591_v16 = vpack.c.bf16 %v905_v6, %v901_v5  ;;  %v2603_v51 = vpack.c.bf16 %v929_v8, %v925_v46  ;;  %v933_v55 = vld [vmem:[#allocation5 + $0x1288] sm:$0xff] }
 0x17a   :  { %1503 = vmatprep.mubr.f32.mxu0 %v1142_v38  ;;  %1929 = vmatprep.mubr.f32.mxu1 %v1142_v38  ;;  %v2943_v17 = vpack.c.bf16 %v907_v7, %v903_v34  ;;  %v2597_v38 = vpack.c.bf16 %v912_v28, %v908_v27  ;;  %v931_v13 = vld [vmem:[#allocation5 + $0x1278] sm:$0xff]  ;;  %v937_v56 = vld [vmem:[#allocation5 + $0x12a8] sm:$0xff]  ;;  %v936_v63 = vld [vmem:[#allocation5 + $0x12a0] sm:$0xff] }
 0x17b   :  { %v935_v57 = vld [vmem:[#allocation5 + $0x1298] sm:$0xff]  ;;  %v2607_v0 = vpack.c.bf16 %v937_v56, %v933_v55  ;;  %v938_v3 = vld [vmem:[#allocation5 + $0x12b0] sm:$0xff]  ;;  %v941_v4 = vld [vmem:[#allocation5 + $0x12c8] sm:$0xff] }
 0x17c   :  { %2574 = vmatpush1.bf16.msra.mxu0 %v2573_v25  ;;  %2926 = vmatpush1.bf16.msra.mxu1 %v2925_v24  ;;  %v915_v25 = vld [vmem:[#allocation5 + $0x11f8] sm:$0xff]  ;;  %v2593_v24 = vpack.c.bf16 %v904_v15, %v900_v14  ;;  %v945_v5 = vld [vmem:[#allocation5 + $0x12e8] sm:$0xff]  ;;  %v944_v14 = vld [vmem:[#allocation5 + $0x12e0] sm:$0xff] }
 0x17d   :  { %2576 = vmatprep.subr.bf16.mxu0 %v2575_v29  ;;  %2928 = vmatprep.subr.bf16.mxu1 %v2927_v30  ;;  %v2595_v29 = vpack.c.bf16 %v913_v22, %v909_v21  ;;  %v2947_v30 = vpack.c.bf16 %v915_v25, %v911_v58  ;;  %v939_v59 = vld [vmem:[#allocation5 + $0x12b8] sm:$0xff]  ;;  %v2611_v15 = vpack.c.bf16 %v945_v5, %v941_v4  ;;  %v946_v18 = vld [vmem:[#allocation5 + $0x12f0] sm:$0xff]  ;;  %v949_v19 = vld [vmem:[#allocation5 + $0x1308] sm:$0xff] }
 0x17e   :  { %v943_v6 = vld [vmem:[#allocation5 + $0x12d8] sm:$0xff]  ;;  %v953_v21 = vld [vmem:[#allocation5 + $0x1328] sm:$0xff]  ;;  %v952_v27 = vld [vmem:[#allocation5 + $0x1320] sm:$0xff] }
 0x17f   :  { %v947_v34 = vld [vmem:[#allocation5 + $0x12f8] sm:$0xff]  ;;  %v2615_v28 = vpack.c.bf16 %v953_v21, %v949_v19  ;;  %v961_v33 = vld [vmem:[#allocation5 + $0x1368] sm:$0xff] }
 0x180   :  { %2578 = vmatpush1.bf16.msra.mxu0 %v2577_v39  ;;  %2930 = vmatpush1.bf16.msra.mxu1 %v2929_v40  ;;  %v2949_v39 = vpack.c.bf16 %v914_v32, %v910_v31  ;;  %v916_v40 = vld [vmem:[#allocation5 + $0x1200] sm:$0xff]  ;;  %v951_v22 = vld [vmem:[#allocation5 + $0x1318] sm:$0xff]  ;;  %v954_v31 = vld [vmem:[#allocation5 + $0x1330] sm:$0xff] }
 0x181   :  { %2580 = vmatprep.subr.bf16.mxu0 %v2579_v43  ;;  %2932 = vmatprep.subr.bf16.mxu1 %v2931_v44  ;;  %v2951_v43 = vpack.c.bf16 %v923_v37, %v919_v36  ;;  %v918_v44 = vld [vmem:[#allocation5 + $0x1210] sm:$0xff]  ;;  %v2601_v47 = vpack.c.bf16 %v920_v41, %v916_v40  ;;  %v955_v58 = vld [vmem:[#allocation5 + $0x1338] sm:$0xff]  ;;  %v957_v32 = vld [vmem:[#allocation5 + $0x1348] sm:$0xff] }
 0x182   :  { %v959_v35 = vld [vmem:[#allocation5 + $0x1358] sm:$0xff]  ;;  %v960_v40 = vld [vmem:[#allocation5 + $0x1360] sm:$0xff]  ;;  %v2619_v41 = vpack.c.bf16 %v961_v33, %v957_v32  ;;  %v969_v46 = vld [vmem:[#allocation5 + $0x13a8] sm:$0xff] }
 0x183   :  { %v963_v36 = vld [vmem:[#allocation5 + $0x1378] sm:$0xff]  ;;  %v977_v55 = vld [vmem:[#allocation5 + $0x13e8] sm:$0xff] }
 0x184   :  { %2582 = vmatpush1.bf16.msra.mxu0 %v2581_v48  ;;  %2934 = vmatpush1.bf16.msra.mxu1 %v2933_v49  ;;  %v2953_v48 = vpack.c.bf16 %v922_v45, %v918_v44  ;;  %v924_v49 = vld [vmem:[#allocation5 + $0x1240] sm:$0xff]  ;;  %v962_v44 = vld [vmem:[#allocation5 + $0x1370] sm:$0xff]  ;;  %v965_v45 = vld [vmem:[#allocation5 + $0x1388] sm:$0xff] }
 0x185   :  { %2584 = vmatprep.subr.bf16.mxu0 %v2583_v52  ;;  %2936 = vmatprep.subr.bf16.mxu1 %v2935_v53  ;;  %v2955_v52 = vpack.c.bf16 %v931_v13, %v927_v10  ;;  %v926_v53 = vld [vmem:[#allocation5 + $0x1250] sm:$0xff]  ;;  %v2605_v60 = vpack.c.bf16 %v928_v50, %v924_v49  ;;  %v967_v8 = vld [vmem:[#allocation5 + $0x1398] sm:$0xff]  ;;  %v968_v49 = vld [vmem:[#allocation5 + $0x13a0] sm:$0xff]  ;;  %v2623_v50 = vpack.c.bf16 %v969_v46, %v965_v45 }
 0x186   :  { %v971_v10 = vld [vmem:[#allocation5 + $0x13b8] sm:$0xff]  ;;  %v985_v4 = vld [vmem:[#allocation5 + $0x1428] sm:$0xff] }
 0x187   :  { %v975_v56 = vld [vmem:[#allocation5 + $0x13d8] sm:$0xff]  ;;  %v993_v19 = vld [vmem:[#allocation5 + $0x1468] sm:$0xff] }
 0x188   :  { %2586 = vmatpush1.bf16.msra.mxu0 %v2585_v61  ;;  %2938 = vmatpush1.bf16.msra.mxu1 %v2937_v62  ;;  %v2957_v61 = vpack.c.bf16 %v930_v54, %v926_v53  ;;  %v932_v62 = vld [vmem:[#allocation5 + $0x1280] sm:$0xff]  ;;  %v970_v53 = vld [vmem:[#allocation5 + $0x13b0] sm:$0xff]  ;;  %v973_v54 = vld [vmem:[#allocation5 + $0x13c8] sm:$0xff] }
 0x189   :  { %2588 = vmatprep.subr.bf16.mxu0 %v2587_v1  ;;  %2940 = vmatprep.subr.bf16.mxu1 %v2939_v2  ;;  %v2959_v1 = vpack.c.bf16 %v939_v59, %v935_v57  ;;  %v934_v2 = vld [vmem:[#allocation5 + $0x1290] sm:$0xff]  ;;  %v2609_v7 = vpack.c.bf16 %v936_v63, %v932_v62  ;;  %v979_v57 = vld [vmem:[#allocation5 + $0x13f8] sm:$0xff]  ;;  %v976_v62 = vld [vmem:[#allocation5 + $0x13e0] sm:$0xff]  ;;  %v2627_v63 = vpack.c.bf16 %v977_v55, %v973_v54 }
 0x18a   :  { %v983_v5 = vld [vmem:[#allocation5 + $0x1418] sm:$0xff]  ;;  %v997_v32 = vld [vmem:[#allocation5 + $0x1488] sm:$0xff] }
 0x18b   :  { %v991_v21 = vld [vmem:[#allocation5 + $0x1458] sm:$0xff]  ;;  %v1001_v33 = vld [vmem:[#allocation5 + $0x14a8] sm:$0xff] }
 0x18c   :  { %2590 = vmatpush1.bf16.msra.mxu0 %v2589_v9  ;;  %2942 = vmatpush1.bf16.msra.mxu1 %v2941_v12  ;;  %v2961_v9 = vpack.c.bf16 %v938_v3, %v934_v2  ;;  %v940_v12 = vld [vmem:[#allocation5 + $0x12c0] sm:$0xff]  ;;  %v978_v2 = vld [vmem:[#allocation5 + $0x13f0] sm:$0xff]  ;;  %v981_v3 = vld [vmem:[#allocation5 + $0x1408] sm:$0xff] }
 0x18d   :  { %2592 = vmatprep.subr.bf16.mxu0 %v2591_v16  ;;  %2944 = vmatprep.subr.bf16.mxu1 %v2943_v17  ;;  %v2963_v16 = vpack.c.bf16 %v947_v34, %v943_v6  ;;  %v942_v17 = vld [vmem:[#allocation5 + $0x12d0] sm:$0xff]  ;;  %v2613_v25 = vpack.c.bf16 %v944_v14, %v940_v12  ;;  %v987_v6 = vld [vmem:[#allocation5 + $0x1438] sm:$0xff]  ;;  %v984_v12 = vld [vmem:[#allocation5 + $0x1420] sm:$0xff]  ;;  %v2631_v14 = vpack.c.bf16 %v985_v4, %v981_v3 }
 0x18e   :  { %v1007_v45 = vld [vmem:[#allocation5 + $0x14d8] sm:$0xff]  ;;  %v1017_v54 = vld [vmem:[#allocation5 + $0x1528] sm:$0xff] }
 0x18f   :  { %v1011_v46 = vld [vmem:[#allocation5 + $0x14f8] sm:$0xff]  ;;  %v1025_v3 = vld [vmem:[#allocation5 + $0x1568] sm:$0xff] }
 0x190   :  { %2594 = vmatpush1.bf16.msra.mxu0 %v2593_v24  ;;  %2946 = vmatpush1.bf16.msra.mxu1 %v2945_v26  ;;  %v2965_v24 = vpack.c.bf16 %v946_v18, %v942_v17  ;;  %v948_v26 = vld [vmem:[#allocation5 + $0x1300] sm:$0xff]  ;;  %v986_v17 = vld [vmem:[#allocation5 + $0x1430] sm:$0xff]  ;;  %v989_v18 = vld [vmem:[#allocation5 + $0x1448] sm:$0xff] }
 0x191   :  { %2596 = vmatprep.subr.bf16.mxu0 %v2595_v29  ;;  %2948 = vmatprep.subr.bf16.mxu1 %v2947_v30  ;;  %v2967_v29 = vpack.c.bf16 %v955_v58, %v951_v22  ;;  %v950_v30 = vld [vmem:[#allocation5 + $0x1310] sm:$0xff]  ;;  %v2617_v37 = vpack.c.bf16 %v952_v27, %v948_v26  ;;  %v995_v22 = vld [vmem:[#allocation5 + $0x1478] sm:$0xff]  ;;  %v3474_v58 = vrot.slane %v3467_v23, %v3428_v11  ;;  %v988_v26 = vld [vmem:[#allocation5 + $0x1440] sm:$0xff] }
 0x192   :  { %v992_v27 = vld [vmem:[#allocation5 + $0x1460] sm:$0xff]  ;;  %v1015_v55 = vld [vmem:[#allocation5 + $0x1518] sm:$0xff] }
 0x193   :  { %v2637_v11 = vpack.c.bf16 %v992_v27, %v988_v26  ;;  %v1023_v4 = vld [vmem:[#allocation5 + $0x1558] sm:$0xff]  ;;  %v1032_v26 = vld [vmem:[#allocation5 + $0x15a0] sm:$0xff] }
 0x194   :  { %2598 = vmatpush1.bf16.msra.mxu0 %v2597_v38  ;;  %2950 = vmatpush1.bf16.msra.mxu1 %v2949_v39  ;;  %v2969_v38 = vpack.c.bf16 %v954_v31, %v950_v30  ;;  %v956_v39 = vld [vmem:[#allocation5 + $0x1340] sm:$0xff]  ;;  %v990_v30 = vld [vmem:[#allocation5 + $0x1450] sm:$0xff] }
 0x195   :  { %2600 = vmatprep.subr.bf16.mxu0 %v2599_v42  ;;  %2952 = vmatprep.subr.bf16.mxu1 %v2951_v43  ;;  %v2971_v42 = vpack.c.bf16 %v963_v36, %v959_v35  ;;  %v958_v43 = vld [vmem:[#allocation5 + $0x1350] sm:$0xff]  ;;  %v2621_v13 = vpack.c.bf16 %v960_v40, %v956_v39  ;;  %v999_v35 = vld [vmem:[#allocation5 + $0x1498] sm:$0xff]  ;;  %v2639_v39 = vpack.c.bf16 %v1001_v33, %v997_v32  ;;  %v1041_v32 = vld [vmem:[#allocation5 + $0x15e8] sm:$0xff] }
 0x196   :  { %v994_v31 = vld [vmem:[#allocation5 + $0x1470] sm:$0xff]  ;;  %v1003_v36 = vld [vmem:[#allocation5 + $0x14b8] sm:$0xff] }
 0x197   :  { %v2989_v23 = vpack.c.bf16 %v994_v31, %v990_v30  ;;  %v2991_v40 = vpack.c.bf16 %v1003_v36, %v999_v35  ;;  %v1034_v30 = vld [vmem:[#allocation5 + $0x15b0] sm:$0xff]  ;;  %v1037_v31 = vld [vmem:[#allocation5 + $0x15c8] sm:$0xff]  ;;  %v1039_v33 = vld [vmem:[#allocation5 + $0x15d8] sm:$0xff] }
 0x198   :  { %2602 = vmatpush1.bf16.msra.mxu0 %v2601_v47  ;;  %2954 = vmatpush1.bf16.msra.mxu1 %v2953_v48  ;;  %v2973_v47 = vpack.c.bf16 %v962_v44, %v958_v43  ;;  %v964_v48 = vld [vmem:[#allocation5 + $0x1380] sm:$0xff]  ;;  %v1005_v43 = vld [vmem:[#allocation5 + $0x14c8] sm:$0xff]  ;;  %v1043_v35 = vld [vmem:[#allocation5 + $0x15f8] sm:$0xff] }
 0x199   :  { %2604 = vmatprep.subr.bf16.mxu0 %v2603_v51  ;;  %2956 = vmatprep.subr.bf16.mxu1 %v2955_v52  ;;  %v2975_v51 = vpack.c.bf16 %v971_v10, %v967_v8  ;;  %v966_v52 = vld [vmem:[#allocation5 + $0x1390] sm:$0xff]  ;;  %v2625_v59 = vpack.c.bf16 %v968_v49, %v964_v48  ;;  %v1009_v44 = vld [vmem:[#allocation5 + $0x14e8] sm:$0xff]  ;;  %v3269_v8 = vmov 0.0   ;;  %v1008_v48 = vld [vmem:[#allocation5 + $0x14e0] sm:$0xff] }
 0x19a   :  { %v2643_v49 = vpack.c.bf16 %v1009_v44, %v1005_v43  ;;  %v2028_v43 = vld [vmem:[#allocation8 + $0x88] sm:$0xff]  ;;  %v2059_v44 = vld [vmem:[#allocation8 + $0x180] sm:$0xff] }
 0x19c   :  { %2606 = vmatpush1.bf16.msra.mxu0 %v2605_v60  ;;  %2958 = vmatpush1.bf16.msra.mxu1 %v2957_v61  ;;  %v2977_v60 = vpack.c.bf16 %v970_v53, %v966_v52  ;;  %v972_v61 = vld [vmem:[#allocation5 + $0x13c0] sm:$0xff]  ;;  %v1010_v52 = vld [vmem:[#allocation5 + $0x14f0] sm:$0xff]  ;;  %v1013_v53 = vld [vmem:[#allocation5 + $0x1508] sm:$0xff] }
 0x19d   :  { %2608 = vmatprep.subr.bf16.mxu0 %v2607_v0  ;;  %2960 = vmatprep.subr.bf16.mxu1 %v2959_v1  ;;  %v2979_v0 = vpack.c.bf16 %v979_v57, %v975_v56  ;;  %v974_v1 = vld [vmem:[#allocation5 + $0x13d0] sm:$0xff]  ;;  %v2629_v34 = vpack.c.bf16 %v976_v62, %v972_v61  ;;  %v1019_v56 = vld [vmem:[#allocation5 + $0x1538] sm:$0xff]  ;;  %v1016_v61 = vld [vmem:[#allocation5 + $0x1520] sm:$0xff]  ;;  %v2647_v62 = vpack.c.bf16 %v1017_v54, %v1013_v53 }
 0x19e   :  { %v2061_v53 = vld [vmem:[#allocation8 + $0x190] sm:$0xff]  ;;  %v2062_v54 = vld [vmem:[#allocation8 + $0x198] sm:$0xff] }
 0x1a0   :  { %2610 = vmatpush1.bf16.msra.mxu0 %v2609_v7  ;;  %2962 = vmatpush1.bf16.msra.mxu1 %v2961_v9  ;;  %v2981_v7 = vpack.c.bf16 %v978_v2, %v974_v1  ;;  %v980_v9 = vld [vmem:[#allocation5 + $0x1400] sm:$0xff]  ;;  %v1018_v1 = vld [vmem:[#allocation5 + $0x1530] sm:$0xff]  ;;  %v1021_v2 = vld [vmem:[#allocation5 + $0x1548] sm:$0xff] }
 0x1a1   :  { %2612 = vmatprep.subr.bf16.mxu0 %v2611_v15  ;;  %2964 = vmatprep.subr.bf16.mxu1 %v2963_v16  ;;  %v2983_v15 = vpack.c.bf16 %v987_v6, %v983_v5  ;;  %v982_v16 = vld [vmem:[#allocation5 + $0x1410] sm:$0xff]  ;;  %v1027_v5 = vld [vmem:[#allocation5 + $0x1578] sm:$0xff] }
 0x1a4   :  { %2614 = vmatpush1.bf16.msra.mxu0 %v2613_v25  ;;  %2966 = vmatpush1.bf16.msra.mxu1 %v2965_v24  ;;  %v2633_v25 = vpack.c.bf16 %v984_v12, %v980_v9  ;;  %v2985_v24 = vpack.c.bf16 %v986_v17, %v982_v16  ;;  %v1024_v9 = vld [vmem:[#allocation5 + $0x1560] sm:$0xff]  ;;  %v2651_v12 = vpack.c.bf16 %v1025_v3, %v1021_v2  ;;  %v1026_v16 = vld [vmem:[#allocation5 + $0x1570] sm:$0xff]  ;;  %v1029_v17 = vld [vmem:[#allocation5 + $0x1588] sm:$0xff] }
 0x1a5   :  { %2616 = vmatprep.subr.bf16.mxu0 %v2615_v28  ;;  %2968 = vmatprep.subr.bf16.mxu1 %v2967_v29  ;;  %v2635_v28 = vpack.c.bf16 %v993_v19, %v989_v18  ;;  %v2987_v29 = vpack.c.bf16 %v995_v22, %v991_v21  ;;  %v1033_v18 = vld [vmem:[#allocation5 + $0x15a8] sm:$0xff]  ;;  %v1031_v19 = vld [vmem:[#allocation5 + $0x1598] sm:$0xff] }
 0x1a6   :  { %v1035_v21 = vld [vmem:[#allocation5 + $0x15b8] sm:$0xff]  ;;  %v2655_v27 = vpack.c.bf16 %v1033_v18, %v1029_v17  ;;  %v2032_v2 = vld [vmem:[#allocation8 + $0xa8] sm:$0xff]  ;;  %v2063_v3 = vld [vmem:[#allocation8 + $0x1a0] sm:$0xff] }
 0x1a7   :  { %v2065_v17 = vld [vmem:[#allocation8 + $0x1b0] sm:$0xff]  ;;  %v2066_v18 = vld [vmem:[#allocation8 + $0x1b8] sm:$0xff] }
 0x1a8   :  { %2618 = vmatpush1.bf16.msra.mxu0 %v2617_v37  ;;  %2970 = vmatpush1.bf16.msra.mxu1 %v2969_v38  ;;  %v996_v37 = vld [vmem:[#allocation5 + $0x1480] sm:$0xff] }
 0x1a9   :  { %2620 = vmatprep.subr.bf16.mxu0 %v2619_v41  ;;  %2972 = vmatprep.subr.bf16.mxu1 %v2971_v42  ;;  %v1000_v38 = vld [vmem:[#allocation5 + $0x14a0] sm:$0xff]  ;;  %v998_v41 = vld [vmem:[#allocation5 + $0x1490] sm:$0xff] }
 0x1aa   :  { %v1002_v42 = vld [vmem:[#allocation5 + $0x14b0] sm:$0xff]  ;;  %v2641_v10 = vpack.c.bf16 %v1000_v38, %v996_v37  ;;  %v1040_v37 = vld [vmem:[#allocation5 + $0x15e0] sm:$0xff]  ;;  %v2659_v38 = vpack.c.bf16 %v1041_v32, %v1037_v31 }
 0x1ab   :  { %v2067_v31 = vld [vmem:[#allocation8 + $0x1c0] sm:$0xff]  ;;  %v2068_v32 = vld [vmem:[#allocation8 + $0x1c8] sm:$0xff] }
 0x1ac   :  { %2622 = vmatpush1.bf16.msra.mxu0 %v2621_v13  ;;  %2974 = vmatpush1.bf16.msra.mxu1 %v2973_v47  ;;  %v2993_v13 = vpack.c.bf16 %v1002_v42, %v998_v41  ;;  %v1004_v47 = vld [vmem:[#allocation5 + $0x14c0] sm:$0xff]  ;;  %v1042_v41 = vld [vmem:[#allocation5 + $0x15f0] sm:$0xff] }
 0x1ad   :  { %2624 = vmatprep.subr.bf16.mxu0 %v2623_v50  ;;  %2976 = vmatprep.subr.bf16.mxu1 %v2975_v51  ;;  %v2995_v50 = vpack.c.bf16 %v1011_v46, %v1007_v45  ;;  %v1006_v51 = vld [vmem:[#allocation5 + $0x14d0] sm:$0xff]  ;;  %v2645_v57 = vpack.c.bf16 %v1008_v48, %v1004_v47  ;;  %v2027_v42 = vld [vmem:[#allocation8 + $0x80] sm:$0xff] }
 0x1ae   :  { %v2060_v45 = vld [vmem:[#allocation8 + $0x188] sm:$0xff]  ;;  %v3015_v47 = vpack.c.bf16 %v2028_v43, %v2027_v42  ;;  %v2069_v42 = vld [vmem:[#allocation8 + $0x1d0] sm:$0xff]  ;;  %v2070_v43 = vld [vmem:[#allocation8 + $0x1d8] sm:$0xff] }
 0x1af   :  { %v3047_v48 = vpack.c.bf16 %v2060_v45, %v2059_v44 }
 0x1b0   :  { %2626 = vmatpush1.bf16.msra.mxu0 %v2625_v59  ;;  %2978 = vmatpush1.bf16.msra.mxu1 %v2977_v60  ;;  %v2997_v59 = vpack.c.bf16 %v1010_v52, %v1006_v51  ;;  %v1012_v60 = vld [vmem:[#allocation5 + $0x1500] sm:$0xff]  ;;  %v2029_v51 = vld [vmem:[#allocation8 + $0x90] sm:$0xff] }
 0x1b1   :  { %2628 = vmatprep.subr.bf16.mxu0 %v2627_v63  ;;  %2980 = vmatprep.subr.bf16.mxu1 %v2979_v0  ;;  %v2999_v63 = vpack.c.bf16 %v1019_v56, %v1015_v55  ;;  %v1014_v0 = vld [vmem:[#allocation5 + $0x1510] sm:$0xff]  ;;  %v2649_v6 = vpack.c.bf16 %v1016_v61, %v1012_v60  ;;  %v2030_v52 = vld [vmem:[#allocation8 + $0x98] sm:$0xff]  ;;  %v1143_v55 = vcombine.high %v3474_v58, %v3474_v58 }
 0x1b2   :  { %v2014_v60 = vld [vmem:[#allocation8 + $0x18] sm:$0xff]  ;;  %v3019_v61 = vpack.c.bf16 %v2030_v52, %v2029_v51  ;;  %v2071_v51 = vld [vmem:[#allocation8 + $0x1e0] sm:$0xff]  ;;  %v2072_v52 = vld [vmem:[#allocation8 + $0x1e8] sm:$0xff] }
 0x1b4   :  { %2630 = vmatpush1.bf16.msra.mxu0 %v2629_v34  ;;  %2982 = vmatpush1.bf16.msra.mxu1 %v2981_v7  ;;  %v3001_v34 = vpack.c.bf16 %v1018_v1, %v1014_v0  ;;  %v1020_v7 = vld [vmem:[#allocation5 + $0x1540] sm:$0xff] }
 0x1b5   :  { %2632 = vmatprep.subr.bf16.mxu0 %v2631_v14  ;;  %2984 = vmatprep.subr.bf16.mxu1 %v2983_v15  ;;  %v3003_v14 = vpack.c.bf16 %v1027_v5, %v1023_v4  ;;  %v1022_v15 = vld [vmem:[#allocation5 + $0x1550] sm:$0xff]  ;;  %v2653_v22 = vpack.c.bf16 %v1024_v9, %v1020_v7  ;;  %v2046_v0 = vld [vmem:[#allocation8 + $0x118] sm:$0xff]  ;;  %v2031_v1 = vld [vmem:[#allocation8 + $0xa0] sm:$0xff] }
 0x1b6   :  { %v2064_v4 = vld [vmem:[#allocation8 + $0x1a8] sm:$0xff]  ;;  %v3023_v7 = vpack.c.bf16 %v2032_v2, %v2031_v1  ;;  %v2042_v1 = vld [vmem:[#allocation8 + $0xf8] sm:$0xff]  ;;  %v2073_v2 = vld [vmem:[#allocation8 + $0x1f0] sm:$0xff] }
 0x1b7   :  { %1504 = vmatmul.mubr.f32.vlgmr.msra.gmra.mrb[0].mxu0 %v3474_v58  ;;  %1930 = vmatmul.mubr.f32.vlgmr.msra.gmra.mrb[0].mxu1 %v3474_v58  ;;  %v3055_v9 = vpack.c.bf16 %v2064_v4, %v2063_v3  ;;  %v2074_v4 = vld [vmem:[#allocation8 + $0x1f8] sm:$0xff] }
 0x1b8   :  { %2634 = vmatpush1.bf16.msra.mxu0 %v2633_v25  ;;  %2986 = vmatpush1.bf16.msra.mxu1 %v2985_v24  ;;  %v3005_v25 = vpack.c.bf16 %v1026_v16, %v1022_v15  ;;  %v1028_v24 = vld [vmem:[#allocation5 + $0x1580] sm:$0xff]  ;;  %v2033_v15 = vld [vmem:[#allocation8 + $0xb0] sm:$0xff] }
 0x1b9   :  { %2636 = vmatprep.subr.bf16.mxu0 %v2635_v28  ;;  %2988 = vmatprep.subr.bf16.mxu1 %v2987_v29  ;;  %v3007_v28 = vpack.c.bf16 %v1035_v21, %v1031_v19  ;;  %v1030_v29 = vld [vmem:[#allocation5 + $0x1590] sm:$0xff]  ;;  %v2657_v36 = vpack.c.bf16 %v1032_v26, %v1028_v24  ;;  %v2034_v16 = vld [vmem:[#allocation8 + $0xb8] sm:$0xff]  ;;  %v3059_v26 = vpack.c.bf16 %v2066_v18, %v2065_v17  ;;  %v1052_v17 = vsub.s32 1, %v3361_v20 }
 0x1ba   :  { %1574 = vmatprep.mubr.f32.mxu0 %v3269_v8  ;;  %2000 = vmatprep.mubr.f32.mxu1 %v3269_v8  ;;  %v3027_v24 = vpack.c.bf16 %v2034_v16, %v2033_v15  ;;  %v1056_v15 = vsub.s32 2, %v3361_v20  ;;  %v1044_v16 = vld [vmem:[#allocation7] sm:$0xf]  ;;  %v1060_v18 = vsub.s32 3, %v3361_v20 }
 0x1bc   :  { %2638 = vmatpush1.bf16.msra.mxu0 %v2637_v11  ;;  %2990 = vmatpush1.bf16.msra.mxu1 %v2989_v23  ;;  %v3009_v11 = vpack.c.bf16 %v1034_v30, %v1030_v29  ;;  %v1036_v23 = vld [vmem:[#allocation5 + $0x15c0] sm:$0xff]  ;;  %v2036_v30 = vld [vmem:[#allocation8 + $0xc8] sm:$0xff] }
 0x1bd   :  { %2640 = vmatprep.subr.bf16.mxu0 %v2639_v39  ;;  %2992 = vmatprep.subr.bf16.mxu1 %v2991_v40  ;;  %v3011_v39 = vpack.c.bf16 %v1043_v35, %v1039_v33  ;;  %v1038_v40 = vld [vmem:[#allocation5 + $0x15d0] sm:$0xff]  ;;  %v2661_v46 = vpack.c.bf16 %v1040_v37, %v1036_v23  ;;  %v2035_v29 = vld [vmem:[#allocation8 + $0xc0] sm:$0xff]  ;;  %v3063_v37 = vpack.c.bf16 %v2068_v32, %v2067_v31 }
 0x1be   :  { %v3013_v8 = vpack.c.bf16 %v1042_v41, %v1038_v40  ;;  %v3031_v23 = vpack.c.bf16 %v2036_v30, %v2035_v29  ;;  %v2037_v40 = vld [vmem:[#allocation8 + $0xd0] sm:$0xff]  ;;  %v2038_v41 = vld [vmem:[#allocation8 + $0xd8] sm:$0xff] }
 0x1c0   :  { %2642 = vmatpush1.bf16.msra.mxu0 %v2641_v10  ;;  %2994 = vmatpush1.bf16.msra.mxu1 %v2993_v13  ;;  %v2011_v10 = vld [vmem:[#allocation8] sm:$0xff]  ;;  %v2012_v13 = vld [vmem:[#allocation8 + $0x8] sm:$0xff] }
 0x1c1   :  { %2644 = vmatprep.subr.bf16.mxu0 %v2643_v49  ;;  %2996 = vmatprep.subr.bf16.mxu1 %v2995_v50  ;;  %v2043_v49 = vld [vmem:[#allocation8 + $0x100] sm:$0xff]  ;;  %v2044_v50 = vld [vmem:[#allocation8 + $0x108] sm:$0xff]  ;;  %v3017_v56 = vpack.c.bf16 %v2012_v13, %v2011_v10  ;;  %v3035_v10 = vpack.c.bf16 %v2038_v41, %v2037_v40  ;;  %v3067_v13 = vpack.c.bf16 %v2070_v43, %v2069_v42 }
 0x1c4   :  { %2646 = vmatpush1.bf16.msra.mxu0 %v2645_v57  ;;  %2998 = vmatpush1.bf16.msra.mxu1 %v2997_v59  ;;  %v3049_v57 = vpack.c.bf16 %v2044_v50, %v2043_v49  ;;  %v2013_v59 = vld [vmem:[#allocation8 + $0x10] sm:$0xff]  ;;  %v2039_v49 = vld [vmem:[#allocation8 + $0xe0] sm:$0xff]  ;;  %v2040_v50 = vld [vmem:[#allocation8 + $0xe8] sm:$0xff] }
 0x1c5   :  { %2648 = vmatprep.subr.bf16.mxu0 %v2647_v62  ;;  %3000 = vmatprep.subr.bf16.mxu1 %v2999_v63  ;;  %v3051_v62 = vpack.c.bf16 %v2062_v54, %v2061_v53  ;;  %v2045_v63 = vld [vmem:[#allocation8 + $0x110] sm:$0xff]  ;;  %v3021_v58 = vpack.c.bf16 %v2014_v60, %v2013_v59  ;;  %v2024_v59 = vld [vmem:[#allocation8 + $0x68] sm:$0xff]  ;;  %v2055_v60 = vld [vmem:[#allocation8 + $0x160] sm:$0xff] }
 0x1c6   :  { %v3053_v5 = vpack.c.bf16 %v2046_v0, %v2045_v63  ;;  %v2041_v0 = vld [vmem:[#allocation8 + $0xf0] sm:$0xff] }
 0x1c7   :  { %v3043_v3 = vpack.c.bf16 %v2042_v1, %v2041_v0 }
 0x1c8   :  { %2650 = vmatpush1.bf16.msra.mxu0 %v2649_v6  ;;  %3002 = vmatpush1.bf16.msra.mxu1 %v3001_v34  ;;  %v2015_v6 = vld [vmem:[#allocation8 + $0x20] sm:$0xff]  ;;  %v2016_v34 = vld [vmem:[#allocation8 + $0x28] sm:$0xff] }
 0x1c9   :  { %2652 = vmatprep.subr.bf16.mxu0 %v2651_v12  ;;  %3004 = vmatprep.subr.bf16.mxu1 %v3003_v14  ;;  %v2047_v12 = vld [vmem:[#allocation8 + $0x120] sm:$0xff]  ;;  %v2048_v14 = vld [vmem:[#allocation8 + $0x128] sm:$0xff]  ;;  %v3025_v19 = vpack.c.bf16 %v2016_v34, %v2015_v6  ;;  %v3075_v6 = vpack.c.bf16 %v2074_v4, %v2073_v2 }
 0x1ca   :  { %v3057_v21 = vpack.c.bf16 %v2048_v14, %v2047_v12  ;;  %v1048_v14 = vsub.s32 0, %v3361_v20 }
 0x1cc   :  { %2654 = vmatpush1.bf16.msra.mxu0 %v2653_v22  ;;  %3006 = vmatpush1.bf16.msra.mxu1 %v3005_v25  ;;  %v2017_v22 = vld [vmem:[#allocation8 + $0x30] sm:$0xff]  ;;  %v2018_v25 = vld [vmem:[#allocation8 + $0x38] sm:$0xff] }
 0x1cd   :  { %2656 = vmatprep.subr.bf16.mxu0 %v2655_v27  ;;  %3008 = vmatprep.subr.bf16.mxu1 %v3007_v28  ;;  %v2049_v27 = vld [vmem:[#allocation8 + $0x130] sm:$0xff]  ;;  %v2050_v28 = vld [vmem:[#allocation8 + $0x138] sm:$0xff]  ;;  %v3029_v33 = vpack.c.bf16 %v2018_v25, %v2017_v22  ;;  %v1053_v22 = vrot.slane %v1044_v16, %v1052_v17  ;;  %v1061_v25 = vrot.slane %v1044_v16, %v1060_v18 }
 0x1ce   :  { %v3061_v35 = vpack.c.bf16 %v2050_v28, %v2049_v27 }
 0x1d0   :  { %2658 = vmatpush1.bf16.msra.mxu0 %v2657_v36  ;;  %3010 = vmatpush1.bf16.msra.mxu1 %v3009_v11  ;;  %v2019_v36 = vld [vmem:[#allocation8 + $0x40] sm:$0xff]  ;;  %v2020_v11 = vld [vmem:[#allocation8 + $0x48] sm:$0xff] }
 0x1d1   :  { %2660 = vmatprep.subr.bf16.mxu0 %v2659_v38  ;;  %3012 = vmatprep.subr.bf16.mxu1 %v3011_v39  ;;  %v2051_v38 = vld [vmem:[#allocation8 + $0x140] sm:$0xff]  ;;  %v2052_v39 = vld [vmem:[#allocation8 + $0x148] sm:$0xff]  ;;  %v3033_v44 = vpack.c.bf16 %v2020_v11, %v2019_v36 }
 0x1d2   :  { %v3065_v45 = vpack.c.bf16 %v2052_v39, %v2051_v38 }
 0x1d4   :  { %2662 = vmatpush1.bf16.msra.mxu0 %v2661_v46  ;;  %3014 = vmatpush1.bf16.msra.mxu1 %v3013_v8  ;;  %v2021_v46 = vld [vmem:[#allocation8 + $0x50] sm:$0xff]  ;;  %v2022_v8 = vld [vmem:[#allocation8 + $0x58] sm:$0xff] }
 0x1d5   :  { %3016 = vmatprep.subr.bf16.mxu0 %v3015_v47  ;;  %3048 = vmatprep.subr.bf16.mxu1 %v3047_v48  ;;  %v2053_v47 = vld [vmem:[#allocation8 + $0x150] sm:$0xff]  ;;  %v2054_v48 = vld [vmem:[#allocation8 + $0x158] sm:$0xff]  ;;  %v3037_v53 = vpack.c.bf16 %v2022_v8, %v2021_v46 }
 0x1d6   :  { %v3069_v54 = vpack.c.bf16 %v2054_v48, %v2053_v47 }
 0x1d7   :  { %1575 = vmatmul.mubr.f32.vlgmr.msra.gmra.mrb[0].mxu0 %v1143_v55  ;;  %2001 = vmatmul.mubr.f32.vlgmr.msra.gmra.mrb[0].mxu1 %v1143_v55  ;;  %v3039_v55 = vpack.c.bf16 %v2040_v50, %v2039_v49 }
 0x1d8   :  { %3018 = vmatpush3.bf16.msra.mxu0 %v3017_v56  ;;  %3050 = vmatpush3.bf16.msra.mxu1 %v3049_v57  ;;  %v3071_v56 = vpack.c.bf16 %v2072_v52, %v2071_v51  ;;  %v2023_v57 = vld [vmem:[#allocation8 + $0x60] sm:$0xff] }
 0x1d9   :  { %3020 = vmatprep.subr.bf16.mxu0 %v3019_v61  ;;  %3052 = vmatprep.subr.bf16.mxu1 %v3051_v62  ;;  %v3041_v61 = vpack.c.bf16 %v2024_v59, %v2023_v57  ;;  %v2056_v62 = vld [vmem:[#allocation8 + $0x168] sm:$0xff] }
 0x1da   :  { %v3073_v63 = vpack.c.bf16 %v2056_v62, %v2055_v60 }
 0x1dc   :  { %3022 = vmatpush3.bf16.msra.mxu0 %v3021_v58  ;;  %3054 = vmatpush3.bf16.msra.mxu1 %v3053_v5  ;;  %v2025_v58 = vld [vmem:[#allocation8 + $0x70] sm:$0xff]  ;;  %v2026_v5 = vld [vmem:[#allocation8 + $0x78] sm:$0xff] }
 0x1dd   :  { %3024 = vmatprep.subr.bf16.mxu0 %v3023_v7  ;;  %3056 = vmatprep.subr.bf16.mxu1 %v3055_v9  ;;  %v3045_v34 = vpack.c.bf16 %v2026_v5, %v2025_v58  ;;  %v2057_v7 = vld [vmem:[#allocation8 + $0x170] sm:$0xff]  ;;  %v2058_v9 = vld [vmem:[#allocation8 + $0x178] sm:$0xff] }
 0x1de   :  { %v3077_v12 = vpack.c.bf16 %v2058_v9, %v2057_v7 }
 0x1e0   :  { %3026 = vmatpush3.bf16.msra.mxu0 %v3025_v19  ;;  %3058 = vmatpush3.bf16.msra.mxu1 %v3057_v21  ;;  %v1049_v19 = vrot.slane %v1044_v16, %v1048_v14  ;;  %v1057_v21 = vrot.slane %v1044_v16, %v1056_v15 }
 0x1e1   :  { %3028 = vmatprep.subr.bf16.mxu0 %v3027_v24  ;;  %3060 = vmatprep.subr.bf16.mxu1 %v3059_v26 }
 0x1e4   :  { %3030 = vmatpush3.bf16.msra.mxu0 %v3029_v33  ;;  %3062 = vmatpush3.bf16.msra.mxu1 %v3061_v35 }
 0x1e5   :  { %3032 = vmatprep.subr.bf16.mxu0 %v3031_v23  ;;  %3064 = vmatprep.subr.bf16.mxu1 %v3063_v37  ;;  %v2240_v37 = vld [vmem:[#allocation10] ss:$0 sm:$0xff] }
 0x1e8   :  { %3034 = vmatpush3.bf16.msra.mxu0 %v3033_v44  ;;  %3066 = vmatpush3.bf16.msra.mxu1 %v3065_v45 }
 0x1e9   :  { %3036 = vmatprep.subr.bf16.mxu0 %v3035_v10  ;;  %3068 = vmatprep.subr.bf16.mxu1 %v3067_v13 }
 0x1ec   :  { %3038 = vmatpush3.bf16.msra.mxu0 %v3037_v53  ;;  %3070 = vmatpush3.bf16.msra.mxu1 %v3069_v54 }
 0x1ed   :  { %3040 = vmatprep.subr.bf16.mxu0 %v3039_v55  ;;  %3072 = vmatprep.subr.bf16.mxu1 %v3071_v56 }
 0x1f0   :  { %3042 = vmatpush3.bf16.msra.mxu0 %v3041_v61  ;;  %3074 = vmatpush3.bf16.msra.mxu1 %v3073_v63 }
 0x1f1   :  { %3044 = vmatprep.subr.bf16.mxu0 %v3043_v3  ;;  %3076 = vmatprep.subr.bf16.mxu1 %v3075_v6 }
 0x1f4   :  { %3046 = vmatpush3.bf16.msra.mxu0 %v3045_v34  ;;  %3078 = vmatpush3.bf16.msra.mxu1 %v3077_v12 }
 0x2aa   :  { %v1576_v24 = vpop.f32.mrb[0].mxu0  ;;  %v2002_v26 = vpop.f32.mrb[0].mxu1 }
 0x2ab   :  { %v3079_v27 = vadd.f32 %v1576_v24, %v1049_v19  ;;  %v3081_v28 = vadd.f32 %v2002_v26, %v1057_v21  ;;  %v1578_v29 = vpop.f32.mrb[1].mxu0  ;;  %v2004_v30 = vpop.f32.mrb[1].mxu1 }
 0x2ac   :  { %v3080_v31 = vadd.f32 %v1578_v29, %v1053_v22  ;;  %v3082_v32 = vadd.f32 %v2004_v30, %v1061_v25 }
 0x2ad   :  { %v2007_v36 = vmax.f32 %v3079_v27, 0.0  ;;  %v2009_v11 = vmax.f32 %v3081_v28, 0.0 }
 0x2ae   :  { %v2008_v33 = vmax.f32 %v3080_v31, 0.0  ;;  %v2010_v35 = vmax.f32 %v3082_v32, 0.0 }
 0x2b0   :  { %2146 = vmatprep.mubr.f32.mxu0 %v2008_v33  ;;  %2216 = vmatprep.mubr.f32.mxu1 %v2010_v35 }
 0x2b1   :  { %2147 = vmatmul.mubr.f32.vlgmr.msra.gmra.mrb[2].mxu0 %v2007_v36  ;;  %2217 = vmatmul.mubr.f32.vlgmr.msra.gmra.mrb[2].mxu1 %v2009_v11 }
 0x384   :  { %v2273_v20 = vpop.f32.mrb[2].mxu0  ;;  %v2308_v23 = vpop.f32.mrb[2].mxu1 }
 0x385   :  { %v2274_v38 = vpop.f32.mrb[3].mxu0  ;;  %v2309_v39 = vpop.f32.mrb[3].mxu1 }
 0x386   :  { %v2275_v40 = vadd.f32 %v2274_v38, %v2273_v20  ;;  %v2310_v41 = vadd.f32 %v2309_v39, %v2308_v23 }
 0x388   :  { %v2149_v42 = vadd.f32 %v2275_v40, %v2240_v37 }
 0x38a   :  { %v2219_v43 = vadd.f32 %v2310_v41, %v2149_v42 }
 0x38c   :  { %2222 = vst [vmem:[#allocation11] sm:$0x3] %v2219_v43 }
 0x38d   :  { %3238 = shalt.err (!%p3235_p2)
}
 0x38e   :  { %s3239_s8 = scalar_lea.hbm %s3501_s5, 32 }
 0x38f   :  { %p3240_p3 = scmp.ne.s32.totalorder %s3501_s5, %s3239_s8  ;;  %p3243_p4 = scmp.lt.u32.totalorder %s3239_s8, %s3501_s5 }
 0x391   :  { %p3245_p5 = pnand %p3243_p4, %p3240_p3 }
 0x393   :  { %3248 = shalt.err (!%p3245_p5)
}
 0x394   :  { %2232 = dma.vmem_to_hbm [thread:$0]  %s2230_s3, 32, %s3501_s5, [#allocation4]  }
 0x395   :  { %3255 = dma.done.wait [#allocation4], 32  }
 0x396   :  { %3256 = vsyncadd [#allocation4], 4294967264 }
 0x397   :  { %2236 = vsyncpa [#allocation3], 1 }
 0x398   :  { %2237 = vsyncpa [#allocation6], 1 }
 0x399   :  { %2238 = vsyncpa [#allocation9], 1 }
 0x39a   :  { %2239 = vsyncpa [#allocation4], 1 }

</bundles_post_ra>
